<compile_context>
chip_gen: v5e
topology: v5e:2x2
jax: 0.10.0
libtpu: 0.0.40
codegen_flags: <defaults>
</compile_context>

<pallas_src>
import functools

import jax
import jax.numpy as jnp
from jax import lax
from jax.experimental import pallas as pl
from jax.experimental.pallas import tpu as pltpu

# Model config: MLPBlocks(input_size=128, hidden_size=128, normalization='layer',
#               dropout=0.0, num_layers=3, output_size=128, use_residuals=True), eval.
INPUT_SIZE = 128        # multiple of 128 -> lane-dense
HIDDEN = 128
OUTPUT_SIZE = 128
NUM_LAYERS = 3          # 1 input layer + (NUM_LAYERS - 1) middle layers
USE_RESIDUALS = True
LN_EPS = 1e-5

BATCH = 256
MAX_TILE_B = 1024       # rows per grid step cap (VMEM-safe on v7x's 64 MiB)


def mlp_kernel(x_ref, w_in_ref, b_in_ref, w_mid_ref, b_mid_ref,
               gamma_ref, beta_ref, w_out_ref, b_out_ref, out_ref, old_ref,
               *, num_mid_layers, use_residuals):
    f32 = jnp.float32
    bf16 = jnp.bfloat16
    inv_h = 1.0 / HIDDEN

    x = x_ref[...]                                                  # [TB, IN] bf16

    # input_layer -> Dropout(p=0, identity) -> ReLU
    h = jnp.dot(x, w_in_ref[...],
                preferred_element_type=f32) + b_in_ref[...]         # [TB, H] f32
    h = jnp.maximum(h, 0.0)
    if use_residuals:
        old_ref[...] = h                                            # residual in VMEM

    for l in range(num_mid_layers):
        # Linear -> Dropout(identity) -> ReLU
        z = jnp.dot(h.astype(bf16), w_mid_ref[l],
                    preferred_element_type=f32) + b_mid_ref[l]
        z = jnp.maximum(z, 0.0)
        # One-pass LayerNorm over hidden dim (f32 stats, biased variance, eps=1e-5):
        # two independent XLU lane reductions, then a single VPU epilogue.
        s1 = jnp.sum(z, axis=-1, keepdims=True)
        s2 = jnp.sum(z * z, axis=-1, keepdims=True)
        mean = s1 * inv_h
        var = jnp.maximum(s2 * inv_h - mean * mean, 0.0)
        z = (z - mean) * lax.rsqrt(var + LN_EPS) * gamma_ref[l] + beta_ref[l]
        if use_residuals:
            z = z + old_ref[...]
            old_ref[...] = z
        h = z

    # output_layer
    out = jnp.dot(h.astype(bf16), w_out_ref[...],
                  preferred_element_type=f32) + b_out_ref[...]
    out_ref[...] = out.astype(out_ref.dtype)


def init_params(key, in_size, hidden, out_size, num_layers):
    """PyTorch-Linear-like init (uniform +/- 1/sqrt(fan_in)); weights stored bf16."""
    lm = num_layers - 1

    def lin(k, fan_in, shape):
        bound = float(fan_in) ** -0.5
        return jax.random.uniform(k, shape, jnp.float32, -bound, bound)

    keys = jax.random.split(key, 6)
    return {
        "w_in": lin(keys[0], in_size, (in_size, hidden)).astype(jnp.bfloat16),
        "b_in": lin(keys[1], in_size, (1, hidden)),
        "w_mid": lin(keys[2], hidden, (lm, hidden, hidden)).astype(jnp.bfloat16),
        "b_mid": lin(keys[3], hidden, (lm, 1, hidden)),
        # LayerNorm affine params (PyTorch default: ones / zeros)
        "gamma": jnp.ones((lm, 1, hidden), jnp.float32),
        "beta": jnp.zeros((lm, 1, hidden), jnp.float32),
        "w_out": lin(keys[4], hidden, (hidden, out_size)).astype(jnp.bfloat16),
        "b_out": lin(keys[5], hidden, (1, out_size)),
    }


def mlp_forward(x, params):
    B, IN = x.shape
    OUT = params["w_out"].shape[-1]
    Lm = params["w_mid"].shape[0]

    x = x.astype(jnp.bfloat16)                       # bf16 per-row HBM stream

    # Single grid step when the batch fits; otherwise big lane-dense tiles.
    tile_b = B if B <= MAX_TILE_B else MAX_TILE_B
    assert B % tile_b == 0
    num_steps = B // tile_b
    grid = (num_steps,)

    # Constant operands: single-buffer when the grid actually iterates.
    const_pipeline = pl.Buffered(1) if num_steps > 1 else None

    def full_spec(shape):
        nd = len(shape)
        idx = lambda *_args, _nd=nd: (0,) * _nd
        if const_pipeline is not None:
            return pl.BlockSpec(shape, idx, pipeline_mode=const_pipeline)
        return pl.BlockSpec(shape, idx)

    flops = 2 * B * (IN * HIDDEN + Lm * HIDDEN * HIDDEN + HIDDEN * OUT)
    bytes_accessed = B * IN * 2 + B * OUT * 2 + sum(
        int(v.size) * v.dtype.itemsize for v in params.values())
    cost = pl.CostEstimate(flops=flops, transcendentals=Lm * B,
                           bytes_accessed=bytes_accessed)

    return pl.pallas_call(
        functools.partial(mlp_kernel, num_mid_layers=Lm,
                          use_residuals=USE_RESIDUALS),
        out_shape=jax.ShapeDtypeStruct((B, OUT), jnp.bfloat16),
        grid=grid,
        in_specs=[
            pl.BlockSpec((tile_b, IN), lambda i: (i, 0)),   # x tiles over batch
            full_spec(params["w_in"].shape),
            full_spec(params["b_in"].shape),
            full_spec(params["w_mid"].shape),
            full_spec(params["b_mid"].shape),
            full_spec(params["gamma"].shape),
            full_spec(params["beta"].shape),
            full_spec(params["w_out"].shape),
            full_spec(params["b_out"].shape),
        ],
        out_specs=pl.BlockSpec((tile_b, OUT), lambda i: (i, 0)),
        scratch_shapes=[pltpu.VMEM((tile_b, HIDDEN), jnp.float32)],  # residual `old`
        compiler_params=pltpu.CompilerParams(
            dimension_semantics=(("parallel",) if num_steps > 1 else ("arbitrary",)),
            vmem_limit_bytes=32 * 1024 * 1024),
        cost_estimate=cost,
    )(x, params["w_in"], params["b_in"], params["w_mid"], params["b_mid"],
      params["gamma"], params["beta"], params["w_out"], params["b_out"])


def reference_forward(x, params):
    """Pure-JAX reference with identical numerics (bf16 matmul operands, f32 math)."""
    f32, bf16 = jnp.float32, jnp.bfloat16
    inv_h = 1.0 / HIDDEN
    xb = x.astype(bf16)
    h = jnp.dot(xb, params["w_in"], preferred_element_type=f32) + params["b_in"]
    h = jnp.maximum(h, 0.0)
    old = h
    for l in range(params["w_mid"].shape[0]):
        z = jnp.dot(h.astype(bf16), params["w_mid"][l],
                    preferred_element_type=f32) + params["b_mid"][l]
        z = jnp.maximum(z, 0.0)
        s1 = jnp.sum(z, axis=-1, keepdims=True)
        s2 = jnp.sum(z * z, axis=-1, keepdims=True)
        mean = s1 * inv_h
        var = jnp.maximum(s2 * inv_h - mean * mean, 0.0)
        z = (z - mean) * lax.rsqrt(var + LN_EPS) * params["gamma"][l] + params["beta"][l]
        if USE_RESIDUALS:
            z = z + old
            old = z
        h = z
    return jnp.dot(h.astype(bf16), params["w_out"],
                   preferred_element_type=f32) + params["b_out"]


if __name__ == "__main__":
    key = jax.random.PRNGKey(0)
    k_param, k_x = jax.random.split(key)

    params = init_params(k_param, INPUT_SIZE, HIDDEN, OUTPUT_SIZE, NUM_LAYERS)
    x = jax.random.normal(k_x, (BATCH, INPUT_SIZE), jnp.float32)

    out = mlp_forward(x, params)
    jax.block_until_ready(out)
    assert out.shape == (BATCH, OUTPUT_SIZE)
    assert out.dtype == jnp.bfloat16

    ref = reference_forward(x, params)                       # f32 reference
    max_err = float(jnp.max(jnp.abs(out.astype(jnp.float32) - ref)))
    scale = float(jnp.max(jnp.abs(ref)))
    tol = 1e-3 + 2e-2 * scale                                # bf16-output rounding budget
    assert max_err <= tol, f"mismatch vs reference: {max_err} (tol {tol})"

    # TODO(synk): normalization='batch' (BatchNorm1d running stats) and dropout>0
    # (training-mode RNG mask) paths are not implemented; only 'layer' eval semantics.
    print("KERNEL_OK")
</pallas_src>

<mosaic_0001>
module attributes {stable_mosaic.version = 11 : i64} {
  func.func @mlp_kernel(%arg0: i32, %arg1: memref<256x128xbf16, #tpu.memory_space<vmem>>, %arg2: memref<128x128xbf16, #tpu.memory_space<vmem>>, %arg3: memref<1x128xf32, #tpu.memory_space<vmem>>, %arg4: memref<2x128x128xbf16, #tpu.memory_space<vmem>>, %arg5: memref<2x1x128xf32, #tpu.memory_space<vmem>>, %arg6: memref<2x1x128xf32, #tpu.memory_space<vmem>>, %arg7: memref<2x1x128xf32, #tpu.memory_space<vmem>>, %arg8: memref<128x128xbf16, #tpu.memory_space<vmem>>, %arg9: memref<1x128xf32, #tpu.memory_space<vmem>>, %arg10: memref<256x128xbf16, #tpu.memory_space<vmem>>, %arg11: memref<256x128xf32, #tpu.memory_space<vmem>>) attributes {dimension_semantics = [#tpu.dimension_semantics<arbitrary>], iteration_bounds = array<i64: 1>, scalar_prefetch = 0 : i64, scratch_operands = 1 : i64, tpu.core_type = #tpu.core_type<tc>, window_params = [{transform_indices = @transform_0, window_bounds = array<i64: 256, 128>}, {pipeline_mode = #tpu.pipeline_mode<synchronous>, transform_indices = @transform_1, window_bounds = array<i64: 128, 128>}, {pipeline_mode = #tpu.pipeline_mode<synchronous>, transform_indices = @transform_2, window_bounds = array<i64: 1, 128>}, {pipeline_mode = #tpu.pipeline_mode<synchronous>, transform_indices = @transform_3, window_bounds = array<i64: 2, 128, 128>}, {pipeline_mode = #tpu.pipeline_mode<synchronous>, transform_indices = @transform_4, window_bounds = array<i64: 2, 1, 128>}, {pipeline_mode = #tpu.pipeline_mode<synchronous>, transform_indices = @transform_5, window_bounds = array<i64: 2, 1, 128>}, {pipeline_mode = #tpu.pipeline_mode<synchronous>, transform_indices = @transform_6, window_bounds = array<i64: 2, 1, 128>}, {pipeline_mode = #tpu.pipeline_mode<synchronous>, transform_indices = @transform_7, window_bounds = array<i64: 128, 128>}, {pipeline_mode = #tpu.pipeline_mode<synchronous>, transform_indices = @transform_8, window_bounds = array<i64: 1, 128>}, {transform_indices = @transform_9, window_bounds = array<i64: 256, 128>}]} {
    %c0 = arith.constant 0 : index
    %c0_0 = arith.constant 0 : index
    %0 = vector.load %arg1[%c0, %c0_0] : memref<256x128xbf16, #tpu.memory_space<vmem>>, vector<256x128xbf16>
    %c0_1 = arith.constant 0 : index
    %c0_2 = arith.constant 0 : index
    %1 = vector.load %arg2[%c0_1, %c0_2] : memref<128x128xbf16, #tpu.memory_space<vmem>>, vector<128x128xbf16>
    %cst = arith.constant dense<0.000000e+00> : vector<256x128xf32>
    %2 = tpu.matmul %0, %1, %cst {dimension_numbers = #tpu.dot_dimension_numbers<[1], [0], [0], [1], [0, 0, 1, 1], [], []>} : vector<256x128xbf16>, vector<128x128xbf16>, vector<256x128xf32> -> vector<256x128xf32>
    %c0_3 = arith.constant 0 : index
    %c0_4 = arith.constant 0 : index
    %3 = vector.load %arg3[%c0_3, %c0_4] : memref<1x128xf32, #tpu.memory_space<vmem>>, vector<1x128xf32>
    %4 = vector.broadcast %3 : vector<1x128xf32> to vector<256x128xf32>
    %5 = arith.addf %2, %4 : vector<256x128xf32>
    %cst_5 = arith.constant 0.000000e+00 : f32
    %6 = vector.broadcast %cst_5 : f32 to vector<256x128xf32>
    %7 = arith.maximumf %5, %6 : vector<256x128xf32>
    %c0_6 = arith.constant 0 : index
    %c0_7 = arith.constant 0 : index
    %8 = vector.load %arg11[%c0_6, %c0_7] : memref<256x128xf32, #tpu.memory_space<vmem>>, vector<256x128xf32>
    tpu.vector_store %arg11[%c0_6, %c0_7], %7 {strides = array<i32>} : memref<256x128xf32, #tpu.memory_space<vmem>>, vector<256x128xf32>,
    %9 = arith.truncf %7 : vector<256x128xf32> to vector<256x128xbf16>
    %c0_8 = arith.constant 0 : index
    %c0_9 = arith.constant 0 : index
    %c0_10 = arith.constant 0 : index
    %10 = vector.load %arg4[%c0_8, %c0_9, %c0_10] : memref<2x128x128xbf16, #tpu.memory_space<vmem>>, vector<1x128x128xbf16>
    %11 = vector.shape_cast %10 : vector<1x128x128xbf16> to vector<128x128xbf16>
    %cst_11 = arith.constant dense<0.000000e+00> : vector<256x128xf32>
    %12 = tpu.matmul %9, %11, %cst_11 {dimension_numbers = #tpu.dot_dimension_numbers<[1], [0], [0], [1], [0, 0, 1, 1], [], []>} : vector<256x128xbf16>, vector<128x128xbf16>, vector<256x128xf32> -> vector<256x128xf32>
    %c0_12 = arith.constant 0 : index
    %c0_13 = arith.constant 0 : index
    %c0_14 = arith.constant 0 : index
    %13 = vector.load %arg5[%c0_12, %c0_13, %c0_14] : memref<2x1x128xf32, #tpu.memory_space<vmem>>, vector<1x1x128xf32>
    %14 = vector.shape_cast %13 : vector<1x1x128xf32> to vector<1x128xf32>
    %15 = vector.broadcast %14 : vector<1x128xf32> to vector<256x128xf32>
    %16 = arith.addf %12, %15 : vector<256x128xf32>
    %cst_15 = arith.constant 0.000000e+00 : f32
    %17 = vector.broadcast %cst_15 : f32 to vector<256x128xf32>
    %18 = arith.maximumf %16, %17 : vector<256x128xf32>
    %cst_16 = arith.constant dense<0.000000e+00> : vector<256xf32>
    %19 = vector.multi_reduction <add>, %18, %cst_16 [1] : vector<256x128xf32> to vector<256xf32>
    %20 = vector.shape_cast %19 : vector<256xf32> to vector<256x1xf32>
    %21 = arith.mulf %18, %18 : vector<256x128xf32>
    %cst_17 = arith.constant dense<0.000000e+00> : vector<256xf32>
    %22 = vector.multi_reduction <add>, %21, %cst_17 [1] : vector<256x128xf32> to vector<256xf32>
    %23 = vector.shape_cast %22 : vector<256xf32> to vector<256x1xf32>
    %cst_18 = arith.constant 7.812500e-03 : f32
    %24 = vector.broadcast %cst_18 : f32 to vector<256x1xf32>
    %25 = arith.mulf %20, %24 : vector<256x1xf32>
    %cst_19 = arith.constant 7.812500e-03 : f32
    %26 = vector.broadcast %cst_19 : f32 to vector<256x1xf32>
    %27 = arith.mulf %23, %26 : vector<256x1xf32>
    %28 = arith.mulf %25, %25 : vector<256x1xf32>
    %29 = arith.subf %27, %28 : vector<256x1xf32>
    %cst_20 = arith.constant 0.000000e+00 : f32
    %30 = vector.broadcast %cst_20 : f32 to vector<256x1xf32>
    %31 = arith.maximumf %29, %30 : vector<256x1xf32>
    %32 = vector.broadcast %25 : vector<256x1xf32> to vector<256x128xf32>
    %33 = arith.subf %18, %32 : vector<256x128xf32>
    %cst_21 = arith.constant 9.99999974E-6 : f32
    %34 = vector.broadcast %cst_21 : f32 to vector<256x1xf32>
    %35 = arith.addf %31, %34 : vector<256x1xf32>
    %36 = math.rsqrt %35 : vector<256x1xf32>
    %37 = vector.broadcast %36 : vector<256x1xf32> to vector<256x128xf32>
    %38 = arith.mulf %33, %37 : vector<256x128xf32>
    %c0_22 = arith.constant 0 : index
    %c0_23 = arith.constant 0 : index
    %c0_24 = arith.constant 0 : index
    %39 = vector.load %arg6[%c0_22, %c0_23, %c0_24] : memref<2x1x128xf32, #tpu.memory_space<vmem>>, vector<1x1x128xf32>
    %40 = vector.shape_cast %39 : vector<1x1x128xf32> to vector<1x128xf32>
    %41 = vector.broadcast %40 : vector<1x128xf32> to vector<256x128xf32>
    %42 = arith.mulf %38, %41 : vector<256x128xf32>
    %c0_25 = arith.constant 0 : index
    %c0_26 = arith.constant 0 : index
    %c0_27 = arith.constant 0 : index
    %43 = vector.load %arg7[%c0_25, %c0_26, %c0_27] : memref<2x1x128xf32, #tpu.memory_space<vmem>>, vector<1x1x128xf32>
    %44 = vector.shape_cast %43 : vector<1x1x128xf32> to vector<1x128xf32>
    %45 = vector.broadcast %44 : vector<1x128xf32> to vector<256x128xf32>
    %46 = arith.addf %42, %45 : vector<256x128xf32>
    %c0_28 = arith.constant 0 : index
    %c0_29 = arith.constant 0 : index
    %47 = vector.load %arg11[%c0_28, %c0_29] : memref<256x128xf32, #tpu.memory_space<vmem>>, vector<256x128xf32>
    %48 = arith.addf %46, %47 : vector<256x128xf32>
    %c0_30 = arith.constant 0 : index
    %c0_31 = arith.constant 0 : index
    %49 = vector.load %arg11[%c0_30, %c0_31] : memref<256x128xf32, #tpu.memory_space<vmem>>, vector<256x128xf32>
    tpu.vector_store %arg11[%c0_30, %c0_31], %48 {strides = array<i32>} : memref<256x128xf32, #tpu.memory_space<vmem>>, vector<256x128xf32>,
    %50 = arith.truncf %48 : vector<256x128xf32> to vector<256x128xbf16>
    %c1 = arith.constant 1 : index
    %c0_32 = arith.constant 0 : index
    %c0_33 = arith.constant 0 : index
    %51 = vector.load %arg4[%c1, %c0_32, %c0_33] : memref<2x128x128xbf16, #tpu.memory_space<vmem>>, vector<1x128x128xbf16>
    %52 = vector.shape_cast %51 : vector<1x128x128xbf16> to vector<128x128xbf16>
    %cst_34 = arith.constant dense<0.000000e+00> : vector<256x128xf32>
    %53 = tpu.matmul %50, %52, %cst_34 {dimension_numbers = #tpu.dot_dimension_numbers<[1], [0], [0], [1], [0, 0, 1, 1], [], []>} : vector<256x128xbf16>, vector<128x128xbf16>, vector<256x128xf32> -> vector<256x128xf32>
    %c1_35 = arith.constant 1 : index
    %c0_36 = arith.constant 0 : index
    %c0_37 = arith.constant 0 : index
    %54 = vector.load %arg5[%c1_35, %c0_36, %c0_37] : memref<2x1x128xf32, #tpu.memory_space<vmem>>, vector<1x1x128xf32>
    %55 = vector.shape_cast %54 : vector<1x1x128xf32> to vector<1x128xf32>
    %56 = vector.broadcast %55 : vector<1x128xf32> to vector<256x128xf32>
    %57 = arith.addf %53, %56 : vector<256x128xf32>
    %cst_38 = arith.constant 0.000000e+00 : f32
    %58 = vector.broadcast %cst_38 : f32 to vector<256x128xf32>
    %59 = arith.maximumf %57, %58 : vector<256x128xf32>
    %cst_39 = arith.constant dense<0.000000e+00> : vector<256xf32>
    %60 = vector.multi_reduction <add>, %59, %cst_39 [1] : vector<256x128xf32> to vector<256xf32>
    %61 = vector.shape_cast %60 : vector<256xf32> to vector<256x1xf32>
    %62 = arith.mulf %59, %59 : vector<256x128xf32>
    %cst_40 = arith.constant dense<0.000000e+00> : vector<256xf32>
    %63 = vector.multi_reduction <add>, %62, %cst_40 [1] : vector<256x128xf32> to vector<256xf32>
    %64 = vector.shape_cast %63 : vector<256xf32> to vector<256x1xf32>
    %cst_41 = arith.constant 7.812500e-03 : f32
    %65 = vector.broadcast %cst_41 : f32 to vector<256x1xf32>
    %66 = arith.mulf %61, %65 : vector<256x1xf32>
    %cst_42 = arith.constant 7.812500e-03 : f32
    %67 = vector.broadcast %cst_42 : f32 to vector<256x1xf32>
    %68 = arith.mulf %64, %67 : vector<256x1xf32>
    %69 = arith.mulf %66, %66 : vector<256x1xf32>
    %70 = arith.subf %68, %69 : vector<256x1xf32>
    %cst_43 = arith.constant 0.000000e+00 : f32
    %71 = vector.broadcast %cst_43 : f32 to vector<256x1xf32>
    %72 = arith.maximumf %70, %71 : vector<256x1xf32>
    %73 = vector.broadcast %66 : vector<256x1xf32> to vector<256x128xf32>
    %74 = arith.subf %59, %73 : vector<256x128xf32>
    %cst_44 = arith.constant 9.99999974E-6 : f32
    %75 = vector.broadcast %cst_44 : f32 to vector<256x1xf32>
    %76 = arith.addf %72, %75 : vector<256x1xf32>
    %77 = math.rsqrt %76 : vector<256x1xf32>
    %78 = vector.broadcast %77 : vector<256x1xf32> to vector<256x128xf32>
    %79 = arith.mulf %74, %78 : vector<256x128xf32>
    %c1_45 = arith.constant 1 : index
    %c0_46 = arith.constant 0 : index
    %c0_47 = arith.constant 0 : index
    %80 = vector.load %arg6[%c1_45, %c0_46, %c0_47] : memref<2x1x128xf32, #tpu.memory_space<vmem>>, vector<1x1x128xf32>
    %81 = vector.shape_cast %80 : vector<1x1x128xf32> to vector<1x128xf32>
    %82 = vector.broadcast %81 : vector<1x128xf32> to vector<256x128xf32>
    %83 = arith.mulf %79, %82 : vector<256x128xf32>
    %c1_48 = arith.constant 1 : index
    %c0_49 = arith.constant 0 : index
    %c0_50 = arith.constant 0 : index
    %84 = vector.load %arg7[%c1_48, %c0_49, %c0_50] : memref<2x1x128xf32, #tpu.memory_space<vmem>>, vector<1x1x128xf32>
    %85 = vector.shape_cast %84 : vector<1x1x128xf32> to vector<1x128xf32>
    %86 = vector.broadcast %85 : vector<1x128xf32> to vector<256x128xf32>
    %87 = arith.addf %83, %86 : vector<256x128xf32>
    %c0_51 = arith.constant 0 : index
    %c0_52 = arith.constant 0 : index
    %88 = vector.load %arg11[%c0_51, %c0_52] : memref<256x128xf32, #tpu.memory_space<vmem>>, vector<256x128xf32>
    %89 = arith.addf %87, %88 : vector<256x128xf32>
    %c0_53 = arith.constant 0 : index
    %c0_54 = arith.constant 0 : index
    %90 = vector.load %arg11[%c0_53, %c0_54] : memref<256x128xf32, #tpu.memory_space<vmem>>, vector<256x128xf32>
    tpu.vector_store %arg11[%c0_53, %c0_54], %89 {strides = array<i32>} : memref<256x128xf32, #tpu.memory_space<vmem>>, vector<256x128xf32>,
    %91 = arith.truncf %89 : vector<256x128xf32> to vector<256x128xbf16>
    %c0_55 = arith.constant 0 : index
    %c0_56 = arith.constant 0 : index
    %92 = vector.load %arg8[%c0_55, %c0_56] : memref<128x128xbf16, #tpu.memory_space<vmem>>, vector<128x128xbf16>
    %cst_57 = arith.constant dense<0.000000e+00> : vector<256x128xf32>
    %93 = tpu.matmul %91, %92, %cst_57 {dimension_numbers = #tpu.dot_dimension_numbers<[1], [0], [0], [1], [0, 0, 1, 1], [], []>} : vector<256x128xbf16>, vector<128x128xbf16>, vector<256x128xf32> -> vector<256x128xf32>
    %c0_58 = arith.constant 0 : index
    %c0_59 = arith.constant 0 : index
    %94 = vector.load %arg9[%c0_58, %c0_59] : memref<1x128xf32, #tpu.memory_space<vmem>>, vector<1x128xf32>
    %95 = vector.broadcast %94 : vector<1x128xf32> to vector<256x128xf32>
    %96 = arith.addf %93, %95 : vector<256x128xf32>
    %97 = arith.truncf %96 : vector<256x128xf32> to vector<256x128xbf16>
    %c0_60 = arith.constant 0 : index
    %c0_61 = arith.constant 0 : index
    %98 = vector.load %arg10[%c0_60, %c0_61] : memref<256x128xbf16, #tpu.memory_space<vmem>>, vector<256x128xbf16>
    tpu.vector_store %arg10[%c0_60, %c0_61], %97 {strides = array<i32>} : memref<256x128xbf16, #tpu.memory_space<vmem>>, vector<256x128xbf16>,
    return
  }
  func.func @transform_0(%arg0: i32) -> (i32, i32) {
    %c0_i32 = arith.constant 0 : i32
    %c0_i32_0 = arith.constant 0 : i32
    return %arg0, %c0_i32 : i32, i32
  }
  func.func @transform_1(%arg0: i32) -> (i32, i32) {
    %c0_i32 = arith.constant 0 : i32
    %c0_i32_0 = arith.constant 0 : i32
    %c0_i32_1 = arith.constant 0 : i32
    return %c0_i32, %c0_i32_0 : i32, i32
  }
  func.func @transform_2(%arg0: i32) -> (i32, i32) {
    %c0_i32 = arith.constant 0 : i32
    %c0_i32_0 = arith.constant 0 : i32
    %c0_i32_1 = arith.constant 0 : i32
    return %c0_i32, %c0_i32_0 : i32, i32
  }
  func.func @transform_3(%arg0: i32) -> (i32, i32, i32) {
    %c0_i32 = arith.constant 0 : i32
    %c0_i32_0 = arith.constant 0 : i32
    %c0_i32_1 = arith.constant 0 : i32
    %c0_i32_2 = arith.constant 0 : i32
    return %c0_i32, %c0_i32_0, %c0_i32_1 : i32, i32, i32
  }
  func.func @transform_4(%arg0: i32) -> (i32, i32, i32) {
    %c0_i32 = arith.constant 0 : i32
    %c0_i32_0 = arith.constant 0 : i32
    %c0_i32_1 = arith.constant 0 : i32
    %c0_i32_2 = arith.constant 0 : i32
    return %c0_i32, %c0_i32_0, %c0_i32_1 : i32, i32, i32
  }
  func.func @transform_5(%arg0: i32) -> (i32, i32, i32) {
    %c0_i32 = arith.constant 0 : i32
    %c0_i32_0 = arith.constant 0 : i32
    %c0_i32_1 = arith.constant 0 : i32
    %c0_i32_2 = arith.constant 0 : i32
    return %c0_i32, %c0_i32_0, %c0_i32_1 : i32, i32, i32
  }
  func.func @transform_6(%arg0: i32) -> (i32, i32, i32) {
    %c0_i32 = arith.constant 0 : i32
    %c0_i32_0 = arith.constant 0 : i32
    %c0_i32_1 = arith.constant 0 : i32
    %c0_i32_2 = arith.constant 0 : i32
    return %c0_i32, %c0_i32_0, %c0_i32_1 : i32, i32, i32
  }
  func.func @transform_7(%arg0: i32) -> (i32, i32) {
    %c0_i32 = arith.constant 0 : i32
    %c0_i32_0 = arith.constant 0 : i32
    %c0_i32_1 = arith.constant 0 : i32
    return %c0_i32, %c0_i32_0 : i32, i32
  }
  func.func @transform_8(%arg0: i32) -> (i32, i32) {
    %c0_i32 = arith.constant 0 : i32
    %c0_i32_0 = arith.constant 0 : i32
    %c0_i32_1 = arith.constant 0 : i32
    return %c0_i32, %c0_i32_0 : i32, i32
  }
  func.func @transform_9(%arg0: i32) -> (i32, i32) {
    %c0_i32 = arith.constant 0 : i32
    %c0_i32_0 = arith.constant 0 : i32
    return %arg0, %c0_i32 : i32, i32
  }
}

</mosaic_0001>

<bundles_post_ra>
// kernel: tpu_custom_call.1
= control target key start
LH: loop header
LB: loop body
LE: loop exit
PB: predicated region body
PF: predicated region fallthrough
CT: control target
= control target key end

     0   :  { %14 = vsyncpa [#allocation4], 0  ;;  %s5883_s0 = inlined_call_operand.hbm [shape: bf16[256,128], index: 0, kind: input, shape index: {}]   ;;  %s5884_s1 = inlined_call_operand.hbm [shape: bf16[128,128], index: 1, kind: input, shape index: {}]   ;;  %s5885_s2 = inlined_call_operand.hbm [shape: f32[1,128], index: 2, kind: input, shape index: {}]   ;;  %s5886_s3 = inlined_call_operand.hbm [shape: bf16[2,128,128], index: 3, kind: input, shape index: {}]   ;;  %s5887_s4 = inlined_call_operand.vmem [shape: f32[2,1,128], index: 4, kind: input, shape index: {}]   ;;  %s5888_s5 = inlined_call_operand.vmem [shape: f32[2,1,128], index: 5, kind: input, shape index: {}]   ;;  %s5889_s6 = inlined_call_operand.hbm [shape: f32[2,1,128], index: 6, kind: input, shape index: {}]   ;;  %s5890_s7 = inlined_call_operand.hbm [shape: bf16[128,128], index: 7, kind: input, shape index: {}]   ;;  %s5891_s8 = inlined_call_operand.vmem [shape: f32[1,128], index: 8, kind: input, shape index: {}]   ;;  %s5892_s9 = inlined_call_operand.hbm [shape: bf16[256,128], index: 9, kind: output, shape index: {}]  }
   0x1   :  { %15 = vsyncpa [#allocation7], 0 }
   0x2   :  { %16 = vsyncpa [#allocation10], 0 }
   0x3   :  { %17 = vsyncpa [#allocation13], 0 }
   0x4   :  { %18 = vsyncpa [#allocation5], 0  ;;  %s36_s11 = sshll.u32 %s5884_s1, 4  ;;  %s3626_s12 = smov [#allocation6]   ;;  %s37_s11 = int_to_ptr.hbm [resolvable:$true] %s36_s11 }
   0x5   :  { %s38_s13 = sshll.u32 %s3626_s12, 4  ;;  %s60_s16 = sshll.u32 %s5886_s3, 4  ;;  %s39_s13 = int_to_ptr.vmem [resolvable:$true] %s38_s13  ;;  %s61_s16 = int_to_ptr.hbm [resolvable:$true] %s60_s16 }
   0x6   :  { %s3627_s17 = smov 64   ;;  %s3628_s18 = smov 4  }
   0x7   :  { %44 = dma.hbm_to_vmem [thread:$0]  %s37_s11, 1024, %s39_s13, [#allocation7], %s3627_s17, %s3627_s17, %s3628_s18  }
   0x8   :  { %s3629_s19 = smov [#allocation9]   ;;  %s23_s1 = sshll.u32 %s5883_s0, 4  ;;  %s24_s1 = int_to_ptr.hbm [resolvable:$true] %s23_s1 }
   0x9   :  { %s62_s20 = sshll.u32 %s3629_s19, 4  ;;  %s50_s24 = sshll.u32 %s5885_s2, 4  ;;  %s63_s20 = int_to_ptr.vmem [resolvable:$true] %s62_s20  ;;  %s51_s24 = int_to_ptr.hbm [resolvable:$true] %s50_s24 }
   0xa   :  { %68 = dma.hbm_to_vmem [thread:$0]  %s61_s16, 2048, %s63_s20, [#allocation10], %s3627_s17, %s3627_s17, %s3628_s18  }
   0xb   :  { %s3630_s25 = smov [#allocation3]   ;;  %s3631_s27 = smov [#allocation8]  }
   0xc   :  { %s25_s26 = sshll.u32 %s3630_s25, 4  ;;  %s52_s0 = sshll.u32 %s3631_s27, 4  ;;  %s26_s26 = int_to_ptr.vmem [resolvable:$true] %s25_s26  ;;  %s53_s0 = int_to_ptr.vmem [resolvable:$true] %s52_s0 }
   0xd   :  { %31 = dma.hbm_to_vmem [thread:$0]  %s24_s1, 2048, %s26_s26, [#allocation4], %s3627_s17, %s3627_s17, %s3628_s18  }
   0xe   :  { %s77_s30 = sshll.u32 %s5889_s6, 4  ;;  %s3632_s10 = smov [#allocation11]   ;;  %s78_s30 = int_to_ptr.hbm [resolvable:$true] %s77_s30 }
   0xf   :  { %55 = dma.hbm_to_vmem [thread:$0]  %s51_s24, 16, %s53_s0, [#allocation7]  }
  0x10   :  { %s79_s11 = sshll.u32 %s3632_s10, 4  ;;  %s90_s13 = sshll.u32 %s5890_s7, 4  ;;  %s80_s11 = int_to_ptr.vmem [resolvable:$true] %s79_s11  ;;  %s91_s13 = int_to_ptr.hbm [resolvable:$true] %s90_s13 }
  0x11   :  { %s3633_s14 = smov 16   ;;  %s3634_s15 = smov 1  }
  0x12   :  { %85 = dma.hbm_to_vmem [thread:$0]  %s78_s30, 32, %s80_s11, [#allocation10], %s3633_s14, %s3633_s14, %s3634_s15  }
  0x13   :  { %s3635_s16 = smov [#allocation12]  }
  0x14   :  { %s92_s19 = sshll.u32 %s3635_s16, 4  ;;  %s93_s19 = int_to_ptr.vmem [resolvable:$true] %s92_s19 }
  0x15   :  { %98 = dma.hbm_to_vmem [thread:$0]  %s91_s13, 1024, %s93_s19, [#allocation13], %s3627_s17, %s3627_s17, %s3628_s18  }
  0x16   :  { %3616 = dma.done.wait [#allocation4], 2048  }
  0x17   :  { %3617 = vsyncadd [#allocation4], 4294965248 }
  0x18   :  { %3618 = dma.done.wait [#allocation7], 1040  }
  0x19   :  { %3619 = vsyncadd [#allocation7], 4294966256 }
  0x1a   :  { %3620 = dma.done.wait [#allocation10], 2080  }
  0x1b   :  { %3621 = vsyncadd [#allocation10], 4294965216 }
  0x1c   :  { %3622 = dma.done.wait [#allocation13], 1024  }
  0x1d   :  { %3623 = vsyncadd [#allocation13], 4294966272  ;;  %v3172_v0 = vld [vmem:[#allocation6 + $0x38] sm:$0xff]  ;;  %v3171_v1 = vld [vmem:[#allocation6 + $0x30] sm:$0xff]  ;;  %s2939_s16 = sshll.u32 %s5892_s9, 4  ;;  %s2940_s16 = int_to_ptr.hbm [resolvable:$true] %s2939_s16 }
  0x1e   :  { %321 = vmatpush.bf16.msra.mxu0 %v3172_v0  ;;  %v3170_v2 = vld [vmem:[#allocation6 + $0x28] sm:$0xff]  ;;  %v3169_v3 = vld [vmem:[#allocation6 + $0x20] sm:$0xff]  ;;  %v3168_v4 = vld [vmem:[#allocation6 + $0x18] sm:$0xff] }
  0x1f   :  { %v3167_v5 = vld [vmem:[#allocation6 + $0x10] sm:$0xff]  ;;  %v3166_v6 = vld [vmem:[#allocation6 + $0x8] sm:$0xff]  ;;  %v3165_v7 = vld [vmem:[#allocation6] sm:$0xff] }
  0x20   :  { %v3149_v8 = vld [vmem:[#allocation3] sm:$0xff]  ;;  %v3150_v9 = vld [vmem:[#allocation3 + $0x8] sm:$0xff]  ;;  %v3151_v10 = vld [vmem:[#allocation3 + $0x10] sm:$0xff] }
  0x21   :  { %v3152_v11 = vld [vmem:[#allocation3 + $0x18] sm:$0xff]  ;;  %v3153_v12 = vld [vmem:[#allocation3 + $0x20] sm:$0xff]  ;;  %v3154_v14 = vld [vmem:[#allocation3 + $0x28] sm:$0xff] }
  0x22   :  { %322 = vmatpush.bf16.msra.mxu0 %v3171_v1  ;;  %v3180_v13 = vld [vmem:[#allocation9 + $0x38] sm:$0xff]  ;;  %v3179_v15 = vld [vmem:[#allocation9 + $0x30] sm:$0xff]  ;;  %v3178_v16 = vld [vmem:[#allocation9 + $0x28] sm:$0xff] }
  0x23   :  { %558 = vmatpush.bf16.msra.mxu1 %v3180_v13  ;;  %v3177_v17 = vld [vmem:[#allocation9 + $0x20] sm:$0xff]  ;;  %v3176_v18 = vld [vmem:[#allocation9 + $0x18] sm:$0xff]  ;;  %v3155_v19 = vld [vmem:[#allocation3 + $0x30] sm:$0xff] }
  0x24   :  { %v3175_v20 = vld [vmem:[#allocation9 + $0x10] sm:$0xff]  ;;  %v3174_v21 = vld [vmem:[#allocation9 + $0x8] sm:$0xff]  ;;  %v3173_v22 = vld [vmem:[#allocation9] sm:$0xff] }
  0x25   :  { %v3156_v23 = vld [vmem:[#allocation3 + $0x38] sm:$0xff]  ;;  %v3157_v24 = vld [vmem:[#allocation3 + $0x40] sm:$0xff]  ;;  %v3158_v33 = vld [vmem:[#allocation3 + $0x48] sm:$0xff] }
  0x26   :  { %323 = vmatpush.bf16.msra.mxu0 %v3170_v2  ;;  %v3717_v26 = vld [vmem:[#allocation8] ss:$0 sm:$0xff]  ;;  %v3159_v41 = vld [vmem:[#allocation3 + $0x50] sm:$0xff]  ;;  %v3160_v49 = vld [vmem:[#allocation3 + $0x58] sm:$0xff] }
  0x27   :  { %559 = vmatpush.bf16.msra.mxu1 %v3179_v15  ;;  %v3161_v57 = vld [vmem:[#allocation3 + $0x60] sm:$0xff]  ;;  %v3162_v1 = vld [vmem:[#allocation3 + $0x68] sm:$0xff] }
  0x2a   :  { %324 = vmatpush.bf16.msra.mxu0 %v3169_v3 }
  0x2b   :  { %560 = vmatpush.bf16.msra.mxu1 %v3178_v16 }
  0x2e   :  { %325 = vmatpush.bf16.msra.mxu0 %v3168_v4 }
  0x2f   :  { %561 = vmatpush.bf16.msra.mxu1 %v3177_v17 }
  0x32   :  { %326 = vmatpush.bf16.msra.mxu0 %v3167_v5 }
  0x33   :  { %562 = vmatpush.bf16.msra.mxu1 %v3176_v18 }
  0x36   :  { %327 = vmatpush.bf16.msra.mxu0 %v3166_v6 }
  0x37   :  { %563 = vmatpush.bf16.msra.mxu1 %v3175_v20 }
  0x3a   :  { %328 = vmatpush.bf16.msra.mxu0 %v3165_v7 }
  0x3b   :  { %564 = vmatpush.bf16.msra.mxu1 %v3174_v21 }
  0x3d   :  { %329 = vmatmul.bf16.vlgmr.msra.gmra.mxu0 %v3149_v8 }
  0x3f   :  { %565 = vmatpush.bf16.msra.mxu1 %v3173_v22 }
  0x4d   :  { %334 = vmatmul.bf16.gmra.mxu0 %v3150_v9  ;;  %v3163_v9 = vld [vmem:[#allocation3 + $0x70] sm:$0xff] }
  0x5d   :  { %339 = vmatmul.bf16.gmra.mxu0 %v3151_v10 }
  0x6d   :  { %344 = vmatmul.bf16.gmra.mxu0 %v3152_v11 }
  0x7d   :  { %349 = vmatmul.bf16.gmra.mxu0 %v3153_v12 }
  0x8d   :  { %354 = vmatmul.bf16.gmra.mxu0 %v3154_v14 }
  0x9d   :  { %359 = vmatmul.bf16.gmra.mxu0 %v3155_v19 }
  0xad   :  { %364 = vmatmul.bf16.gmra.mxu0 %v3156_v23 }
  0xba   :  { %v330_v25 = vpop.f32.mrf.mxu0 }
  0xbb   :  { %v3720_v27 = vadd.f32 %v3717_v26, %v330_v25 }
  0xbd   :  { %369 = vmatmul.bf16.gmra.mxu0 %v3157_v24  ;;  %v5922_v30 = vmax.f32 %v3720_v27, 0.0 }
  0xc2   :  { %v332_v28 = vpop.f32.mrf.mxu0 }
  0xc3   :  { %v3723_v29 = vadd.f32 %v3717_v26, %v332_v28  ;;  %v3164_v28 = vld [vmem:[#allocation3 + $0x78] sm:$0xff] }
  0xc5   :  { %v5921_v31 = vmax.f32 %v3723_v29, 0.0 }
  0xc7   :  { %v474_v32 = vpack.c.bf16 %v5921_v31, %v5922_v30 }
  0xc9   :  { %566 = vmatmul.bf16.vlgmr.msra.gmra.mxu1 %v474_v32 }
  0xca   :  { %v335_v34 = vpop.f32.mrf.mxu0 }
  0xcb   :  { %v3732_v35 = vadd.f32 %v3717_v26, %v335_v34 }
  0xcd   :  { %374 = vmatmul.bf16.gmra.mxu0 %v3158_v33  ;;  %v5920_v38 = vmax.f32 %v3732_v35, 0.0 }
  0xd2   :  { %v337_v36 = vpop.f32.mrf.mxu0 }
  0xd3   :  { %v3735_v37 = vadd.f32 %v3717_v26, %v337_v36  ;;  %v3825_v36 = vld [vmem:[%s5887_s4] ss:$0 sm:$0xff] }
  0xd5   :  { %v5919_v39 = vmax.f32 %v3735_v37, 0.0 }
  0xd7   :  { %v475_v40 = vpack.c.bf16 %v5919_v39, %v5920_v38 }
  0xd9   :  { %571 = vmatmul.bf16.gmra.mxu1 %v475_v40 }
  0xda   :  { %v340_v42 = vpop.f32.mrf.mxu0 }
  0xdb   :  { %v3744_v43 = vadd.f32 %v3717_v26, %v340_v42 }
  0xdd   :  { %379 = vmatmul.bf16.gmra.mxu0 %v3159_v41  ;;  %v5918_v45 = vmax.f32 %v3744_v43, 0.0 }
  0xe2   :  { %v342_v44 = vpop.f32.mrf.mxu0 }
  0xe3   :  { %v3748_v46 = vadd.f32 %v3717_v26, %v342_v44 }
  0xe5   :  { %v5917_v47 = vmax.f32 %v3748_v46, 0.0 }
  0xe7   :  { %v476_v48 = vpack.c.bf16 %v5917_v47, %v5918_v45  ;;  %v3183_v45 = vld [vmem:[#allocation9 + $0x50] sm:$0xff] }
  0xe9   :  { %576 = vmatmul.bf16.gmra.mxu1 %v476_v48 }
  0xea   :  { %v345_v50 = vpop.f32.mrf.mxu0 }
  0xeb   :  { %v3756_v51 = vadd.f32 %v3717_v26, %v345_v50 }
  0xed   :  { %384 = vmatmul.bf16.gmra.mxu0 %v3160_v49  ;;  %v5916_v53 = vmax.f32 %v3756_v51, 0.0 }
  0xf2   :  { %v347_v52 = vpop.f32.mrf.mxu0 }
  0xf3   :  { %v3760_v54 = vadd.f32 %v3717_v26, %v347_v52 }
  0xf5   :  { %v5915_v55 = vmax.f32 %v3760_v54, 0.0 }
  0xf7   :  { %v477_v56 = vpack.c.bf16 %v5915_v55, %v5916_v53 }
  0xf9   :  { %581 = vmatmul.bf16.gmra.mxu1 %v477_v56 }
  0xfa   :  { %v350_v58 = vpop.f32.mrf.mxu0 }
  0xfb   :  { %v3768_v59 = vadd.f32 %v3717_v26, %v350_v58 }
  0xfd   :  { %389 = vmatmul.bf16.gmra.mxu0 %v3161_v57  ;;  %v5912_v61 = vmax.f32 %v3768_v59, 0.0 }
 0x102   :  { %v352_v60 = vpop.f32.mrf.mxu0 }
 0x103   :  { %v3772_v62 = vadd.f32 %v3717_v26, %v352_v60 }
 0x105   :  { %v5911_v63 = vmax.f32 %v3772_v62, 0.0 }
 0x107   :  { %v478_v0 = vpack.c.bf16 %v5911_v63, %v5912_v61  ;;  %v3187_v61 = vld [vmem:[#allocation9 + $0x70] sm:$0xff] }
 0x109   :  { %586 = vmatmul.bf16.gmra.mxu1 %v478_v0 }
 0x10a   :  { %v355_v2 = vpop.f32.mrf.mxu0 }
 0x10b   :  { %v3780_v3 = vadd.f32 %v3717_v26, %v355_v2 }
 0x10d   :  { %394 = vmatmul.bf16.gmra.mxu0 %v3162_v1  ;;  %v5910_v5 = vmax.f32 %v3780_v3, 0.0 }
 0x112   :  { %v357_v4 = vpop.f32.mrf.mxu0 }
 0x113   :  { %v3784_v6 = vadd.f32 %v3717_v26, %v357_v4 }
 0x115   :  { %v5909_v7 = vmax.f32 %v3784_v6, 0.0 }
 0x117   :  { %v479_v8 = vpack.c.bf16 %v5909_v7, %v5910_v5  ;;  %v3188_v7 = vld [vmem:[#allocation9 + $0x78] sm:$0xff] }
 0x118   :  { %1669 = vmatpush.bf16.msra.mxu2 %v3188_v7  ;;  %v3184_v7 = vld [vmem:[#allocation9 + $0x58] sm:$0xff] }
 0x119   :  { %591 = vmatmul.bf16.gmra.mxu1 %v479_v8 }
 0x11a   :  { %v360_v10 = vpop.f32.mrf.mxu0 }
 0x11b   :  { %v3792_v11 = vadd.f32 %v3717_v26, %v360_v10 }
 0x11c   :  { %1670 = vmatpush.bf16.msra.mxu2 %v3187_v61 }
 0x11d   :  { %399 = vmatmul.bf16.gmra.mxu0 %v3163_v9  ;;  %v5906_v13 = vmax.f32 %v3792_v11, 0.0 }
 0x122   :  { %v362_v12 = vpop.f32.mrf.mxu0 }
 0x123   :  { %v3796_v14 = vadd.f32 %v3717_v26, %v362_v12 }
 0x125   :  { %v5905_v15 = vmax.f32 %v3796_v14, 0.0 }
 0x127   :  { %v480_v16 = vpack.c.bf16 %v5905_v15, %v5906_v13 }
 0x129   :  { %596 = vmatmul.bf16.gmra.mxu1 %v480_v16 }
 0x12a   :  { %v365_v17 = vpop.f32.mrf.mxu0 }
 0x12b   :  { %v3804_v18 = vadd.f32 %v3717_v26, %v365_v17 }
 0x12d   :  { %v5904_v20 = vmax.f32 %v3804_v18, 0.0  ;;  %404 = vmatmul.bf16.gmra.mxu0 %v3164_v28 }
 0x132   :  { %v367_v19 = vpop.f32.mrf.mxu0 }
 0x133   :  { %v3808_v21 = vadd.f32 %v3717_v26, %v367_v19 }
 0x135   :  { %v5903_v22 = vmax.f32 %v3808_v21, 0.0 }
 0x137   :  { %v481_v23 = vpack.c.bf16 %v5903_v22, %v5904_v20 }
 0x139   :  { %601 = vmatmul.bf16.gmra.mxu1 %v481_v23 }
 0x13a   :  { %v370_v24 = vpop.f32.mrf.mxu0 }
 0x13b   :  { %v3816_v25 = vadd.f32 %v3717_v26, %v370_v24 }
 0x13d   :  { %v5900_v33 = vmax.f32 %v3816_v25, 0.0 }
 0x142   :  { %v372_v32 = vpop.f32.mrf.mxu0 }
 0x143   :  { %v3820_v34 = vadd.f32 %v3717_v26, %v372_v32 }
 0x145   :  { %5966 = vst [vmem:[#allocation20_spill] sm:$0xff] %v3820_v34  ;;  %v5899_v40 = vmax.f32 %v3820_v34, 0.0 }
 0x146   :  { %v567_v41 = vpop.f32.mrf.mxu1 }
 0x147   :  { %v568_v42 = vadd.f32 %v3825_v36, %v567_v41  ;;  %v482_v44 = vpack.c.bf16 %v5899_v40, %v5900_v33 }
 0x149   :  { %v3833_v48 = vmax.f32 %v568_v42, 0.0  ;;  %606 = vmatmul.bf16.gmra.mxu1 %v482_v44 }
 0x14a   :  { %v375_v49 = vpop.f32.mrf.mxu0 }
 0x14b   :  { %679 = vadd.xlane.f32.xlu0 %v3833_v48  ;;  %v743_v50 = vmul.f32 %v3833_v48, %v3833_v48  ;;  %v3839_v56 = vadd.f32 %v3717_v26, %v375_v49 }
 0x14d   :  { %775 = vadd.xlane.f32.xlu1 %v743_v50  ;;  %5967 = vst [vmem:[#allocation21_spill] sm:$0xff] %v3839_v56  ;;  %v5898_v0 = vmax.f32 %v3839_v56, 0.0 }
 0x14e   :  { %v569_v52 = vpop.f32.mrf.mxu1 }
 0x14f   :  { %v570_v57 = vadd.f32 %v3825_v36, %v569_v52 }
 0x151   :  { %v3842_v58 = vmax.f32 %v570_v57, 0.0 }
 0x152   :  { %v377_v60 = vpop.f32.mrf.mxu0 }
 0x153   :  { %v3846_v1 = vadd.f32 %v3717_v26, %v377_v60  ;;  %681 = vadd.xlane.f32.xlu0 %v3842_v58  ;;  %v744_v2 = vmul.f32 %v3842_v58, %v3842_v58 }
 0x155   :  { %5968 = vst [vmem:[#allocation22_spill] sm:$0xff] %v3846_v1  ;;  %v5897_v4 = vmax.f32 %v3846_v1, 0.0  ;;  %777 = vadd.xlane.f32.xlu1 %v744_v2 }
 0x156   :  { %v572_v8 = vpop.f32.mrf.mxu1 }
 0x157   :  { %v573_v9 = vadd.f32 %v3825_v36, %v572_v8  ;;  %v483_v10 = vpack.c.bf16 %v5897_v4, %v5898_v0 }
 0x159   :  { %v3857_v12 = vmax.f32 %v573_v9, 0.0  ;;  %611 = vmatmul.bf16.gmra.mxu1 %v483_v10 }
 0x15a   :  { %v380_v16 = vpop.f32.mrf.mxu0 }
 0x15b   :  { %683 = vadd.xlane.f32.xlu2 %v3857_v12  ;;  %v745_v17 = vmul.f32 %v3857_v12, %v3857_v12  ;;  %v3863_v23 = vadd.f32 %v3717_v26, %v380_v16 }
 0x15d   :  { %779 = vadd.xlane.f32.xlu0 %v745_v17  ;;  %5969 = vst [vmem:[#allocation23_spill] sm:$0xff] %v3863_v23  ;;  %v5894_v41 = vmax.f32 %v3863_v23, 0.0 }
 0x15e   :  { %v574_v19 = vpop.f32.mrf.mxu1 }
 0x15f   :  { %v575_v24 = vadd.f32 %v3825_v36, %v574_v19 }
 0x161   :  { %v3866_v28 = vmax.f32 %v575_v24, 0.0 }
 0x162   :  { %v382_v32 = vpop.f32.mrf.mxu0 }
 0x163   :  { %v3870_v42 = vadd.f32 %v3717_v26, %v382_v32  ;;  %685 = vadd.xlane.f32.xlu2 %v3866_v28  ;;  %v746_v44 = vmul.f32 %v3866_v28, %v3866_v28 }
 0x165   :  { %5970 = vst [vmem:[#allocation24_spill] sm:$0xff] %v3870_v42  ;;  %v5893_v49 = vmax.f32 %v3870_v42, 0.0  ;;  %781 = vadd.xlane.f32.xlu1 %v746_v44 }
 0x166   :  { %v577_v50 = vpop.f32.mrf.mxu1 }
 0x167   :  { %v578_v52 = vadd.f32 %v3825_v36, %v577_v50  ;;  %v484_v57 = vpack.c.bf16 %v5893_v49, %v5894_v41 }
 0x169   :  { %v3881_v60 = vmax.f32 %v578_v52, 0.0  ;;  %616 = vmatmul.bf16.gmra.mxu1 %v484_v57 }
 0x16a   :  { %v385_v2 = vpop.f32.mrf.mxu0 }
 0x16b   :  { %687 = vadd.xlane.f32.xlu2 %v3881_v60  ;;  %v747_v8 = vmul.f32 %v3881_v60, %v3881_v60  ;;  %v3887_v10 = vadd.f32 %v3717_v26, %v385_v2 }
 0x16d   :  { %783 = vadd.xlane.f32.xlu1 %v747_v8  ;;  %5971 = vst [vmem:[#allocation25_spill] sm:$0xff] %v3887_v10  ;;  %v5896_v24 = vmax.f32 %v3887_v10, 0.0 }
 0x16e   :  { %v579_v9 = vpop.f32.mrf.mxu1 }
 0x16f   :  { %v580_v16 = vadd.f32 %v3825_v36, %v579_v9 }
 0x171   :  { %v3890_v17 = vmax.f32 %v580_v16, 0.0 }
 0x172   :  { %v387_v19 = vpop.f32.mrf.mxu0 }
 0x173   :  { %v3894_v32 = vadd.f32 %v3717_v26, %v387_v19  ;;  %689 = vadd.xlane.f32.xlu0 %v3890_v17  ;;  %v748_v44 = vmul.f32 %v3890_v17, %v3890_v17 }
 0x175   :  { %5972 = vst [vmem:[#allocation26_spill] sm:$0xff] %v3894_v32  ;;  %v5895_v50 = vmax.f32 %v3894_v32, 0.0  ;;  %785 = vadd.xlane.f32.xlu2 %v748_v44 }
 0x176   :  { %v582_v52 = vpop.f32.mrf.mxu1 }
 0x177   :  { %v583_v57 = vadd.f32 %v3825_v36, %v582_v52  ;;  %v485_v2 = vpack.c.bf16 %v5895_v50, %v5896_v24 }
 0x179   :  { %v3905_v8 = vmax.f32 %v583_v57, 0.0  ;;  %621 = vmatmul.bf16.gmra.mxu1 %v485_v2 }
 0x17a   :  { %v390_v9 = vpop.f32.mrf.mxu0 }
 0x17b   :  { %691 = vadd.xlane.f32.xlu0 %v3905_v8  ;;  %v749_v16 = vmul.f32 %v3905_v8, %v3905_v8  ;;  %v3911_v44 = vadd.f32 %v3717_v26, %v390_v9 }
 0x17d   :  { %787 = vadd.xlane.f32.xlu2 %v749_v16  ;;  %5973 = vst [vmem:[#allocation27_spill] sm:$0xff] %v3911_v44  ;;  %v5902_v57 = vmax.f32 %v3911_v44, 0.0 }
 0x17e   :  { %v584_v19 = vpop.f32.mrf.mxu1 }
 0x17f   :  { %v585_v52 = vadd.f32 %v3825_v36, %v584_v19 }
 0x181   :  { %v3914_v49 = vmax.f32 %v585_v52, 0.0 }
 0x182   :  { %v392_v41 = vpop.f32.mrf.mxu0 }
 0x183   :  { %v3918_v2 = vadd.f32 %v3717_v26, %v392_v41  ;;  %693 = vadd.xlane.f32.xlu1 %v3914_v49  ;;  %v750_v50 = vmul.f32 %v3914_v49, %v3914_v49 }
 0x185   :  { %5974 = vst [vmem:[#allocation28_spill] sm:$0xff] %v3918_v2  ;;  %v5901_v16 = vmax.f32 %v3918_v2, 0.0  ;;  %789 = vadd.xlane.f32.xlu0 %v750_v50 }
 0x186   :  { %v587_v9 = vpop.f32.mrf.mxu1 }
 0x187   :  { %v486_v19 = vpack.c.bf16 %v5901_v16, %v5902_v57  ;;  %v588_v52 = vadd.f32 %v3825_v36, %v587_v9 }
 0x189   :  { %v3929_v24 = vmax.f32 %v588_v52, 0.0  ;;  %626 = vmatmul.bf16.gmra.mxu1 %v486_v19 }
 0x18a   :  { %v395_v41 = vpop.f32.mrf.mxu0 }
 0x18b   :  { %695 = vadd.xlane.f32.xlu1 %v3929_v24  ;;  %v751_v4 = vmul.f32 %v3929_v24, %v3929_v24  ;;  %v3935_v50 = vadd.f32 %v3717_v26, %v395_v41 }
 0x18d   :  { %791 = vadd.xlane.f32.xlu0 %v751_v4  ;;  %5975 = vst [vmem:[#allocation29_spill] sm:$0xff] %v3935_v50  ;;  %v5908_v9 = vmax.f32 %v3935_v50, 0.0 }
 0x18e   :  { %v589_v0 = vpop.f32.mrf.mxu1 }
 0x18f   :  { %v590_v40 = vadd.f32 %v3825_v36, %v589_v0 }
 0x191   :  { %v3938_v33 = vmax.f32 %v590_v40, 0.0 }
 0x192   :  { %v397_v16 = vpop.f32.mrf.mxu0 }
 0x193   :  { %v3942_v19 = vadd.f32 %v3717_v26, %v397_v16  ;;  %697 = vadd.xlane.f32.xlu2 %v3938_v33  ;;  %v752_v52 = vmul.f32 %v3938_v33, %v3938_v33 }
 0x195   :  { %5976 = vst [vmem:[#allocation30_spill] sm:$0xff] %v3942_v19  ;;  %v5907_v4 = vmax.f32 %v3942_v19, 0.0  ;;  %793 = vadd.xlane.f32.xlu1 %v752_v52 }
 0x196   :  { %v592_v41 = vpop.f32.mrf.mxu1 }
 0x197   :  { %v487_v40 = vpack.c.bf16 %v5907_v4, %v5908_v9  ;;  %v593_v0 = vadd.f32 %v3825_v36, %v592_v41 }
 0x199   :  { %v3953_v57 = vmax.f32 %v593_v0, 0.0  ;;  %631 = vmatmul.bf16.gmra.mxu1 %v487_v40 }
 0x19a   :  { %v400_v16 = vpop.f32.mrf.mxu0 }
 0x19b   :  { %699 = vadd.xlane.f32.xlu2 %v3953_v57  ;;  %v753_v22 = vmul.f32 %v3953_v57, %v3953_v57  ;;  %v3959_v52 = vadd.f32 %v3717_v26, %v400_v16 }
 0x19d   :  { %795 = vadd.xlane.f32.xlu1 %v753_v22  ;;  %5977 = vst [vmem:[#allocation31_spill] sm:$0xff] %v3959_v52  ;;  %v5914_v41 = vmax.f32 %v3959_v52, 0.0 }
 0x19e   :  { %v594_v20 = vpop.f32.mrf.mxu1 }
 0x19f   :  { %v595_v15 = vadd.f32 %v3825_v36, %v594_v20 }
 0x1a1   :  { %v3962_v13 = vmax.f32 %v595_v15, 0.0 }
 0x1a2   :  { %v402_v4 = vpop.f32.mrf.mxu0 }
 0x1a3   :  { %v3966_v40 = vadd.f32 %v3717_v26, %v402_v4  ;;  %701 = vadd.xlane.f32.xlu0 %v3962_v13  ;;  %v754_v0 = vmul.f32 %v3962_v13, %v3962_v13 }
 0x1a5   :  { %5978 = vst [vmem:[#allocation32_spill] sm:$0xff] %v3966_v40  ;;  %v5913_v22 = vmax.f32 %v3966_v40, 0.0  ;;  %797 = vadd.xlane.f32.xlu2 %v754_v0 }
 0x1a6   :  { %v597_v16 = vpop.f32.mrf.mxu1 }
 0x1a7   :  { %v488_v15 = vpack.c.bf16 %v5913_v22, %v5914_v41  ;;  %v598_v20 = vadd.f32 %v3825_v36, %v597_v16  ;;  %v3185_v41 = vld [vmem:[#allocation9 + $0x60] sm:$0xff] }
 0x1a9   :  { %v3977_v9 = vmax.f32 %v598_v20, 0.0  ;;  %636 = vmatmul.bf16.gmra.mxu1 %v488_v15  ;;  %v3186_v15 = vld [vmem:[#allocation9 + $0x68] sm:$0xff] }
 0x1aa   :  { %1671 = vmatpush.bf16.msra.mxu2 %v3186_v15  ;;  %v405_v53 = vpop.f32.mrf.mxu0 }
 0x1ab   :  { %703 = vadd.xlane.f32.xlu0 %v3977_v9  ;;  %v755_v4 = vmul.f32 %v3977_v9, %v3977_v9 }
 0x1ad   :  { %799 = vadd.xlane.f32.xlu2 %v755_v4 }
 0x1ae   :  { %v599_v5 = vpop.f32.mrf.mxu1  ;;  %1672 = vmatpush.bf16.msra.mxu2 %v3185_v41 }
 0x1af   :  { %v600_v0 = vadd.f32 %v3825_v36, %v599_v5 }
 0x1b1   :  { %v3983_v63 = vmax.f32 %v600_v0, 0.0 }
 0x1b2   :  { %1673 = vmatpush.bf16.msra.mxu2 %v3184_v7  ;;  %v407_v30 = vpop.f32.mrf.mxu0 }
 0x1b3   :  { %705 = vadd.xlane.f32.xlu1 %v3983_v63  ;;  %v756_v16 = vmul.f32 %v3983_v63, %v3983_v63 }
 0x1b5   :  { %801 = vadd.xlane.f32.xlu0 %v756_v16 }
 0x1b6   :  { %v602_v20 = vpop.f32.mrf.mxu1  ;;  %1674 = vmatpush.bf16.msra.mxu2 %v3183_v45 }
 0x1b7   :  { %v603_v22 = vadd.f32 %v3825_v36, %v602_v20 }
 0x1b9   :  { %v3989_v4 = vmax.f32 %v603_v22, 0.0 }
 0x1bb   :  { %707 = vadd.xlane.f32.xlu1 %v3989_v4  ;;  %v757_v5 = vmul.f32 %v3989_v4, %v3989_v4 }
 0x1bd   :  { %803 = vadd.xlane.f32.xlu0 %v757_v5 }
 0x1be   :  { %v604_v0 = vpop.f32.mrf.mxu1  ;;  %v680_v55 = vpop.xlane.xlu0 %679 }
 0x1bf   :  { %v605_v61 = vadd.f32 %v3825_v36, %v604_v0  ;;  %v3995_v16 = vmul.f32 0.0078125, %v680_v55  ;;  %v3182_v55 = vld [vmem:[#allocation9 + $0x48] sm:$0xff] }
 0x1c0   :  { %v776_v15 = vpop.xlane.xlu1 %775  ;;  %1675 = vmatpush.bf16.msra.mxu2 %v3182_v55 }
 0x1c1   :  { %v3997_v22 = vmax.f32 %v605_v61, 0.0  ;;  %v903_v20 = vmul.f32 %v3995_v16, %v3995_v16  ;;  %v871_v47 = vmul.f32 0.0078125, %v776_v15 }
 0x1c3   :  { %v935_v39 = vsub.f32 %v871_v47, %v903_v20  ;;  %709 = vadd.xlane.f32.xlu2 %v3997_v22  ;;  %v758_v41 = vmul.f32 %v3997_v22, %v3997_v22  ;;  %v4008_v47 = vadd.f32 %v3717_v26, %v405_v53  ;;  %v4011_v20 = vadd.f32 %v3717_v26, %v407_v30 }
 0x1c5   :  { %v967_v5 = vmax.f32 %v935_v39, 0.0  ;;  %805 = vadd.xlane.f32.xlu1 %v758_v41  ;;  %5979 = vst [vmem:[#allocation33_spill] sm:$0xff] %v4008_v47  ;;  %v3181_v41 = vld [vmem:[#allocation9 + $0x40] sm:$0xff] }
 0x1c6   :  { %v607_v0 = vpop.f32.mrf.mxu1  ;;  %v682_v7 = vpop.xlane.xlu0 %681  ;;  %5980 = vst [vmem:[#allocation34_spill] sm:$0xff] %v4011_v20  ;;  %1676 = vmatpush.bf16.msra.mxu2 %v3181_v41 }
 0x1c7   :  { %v1031_v38 = vadd.f32 1e-05, %v967_v5  ;;  %v608_v61 = vadd.f32 %v3825_v36, %v607_v0  ;;  %v4005_v31 = vmul.f32 0.0078125, %v682_v7  ;;  %v5930_v0 = vmax.f32 %v4008_v47, 0.0 }
 0x1c8   :  { %v778_v15 = vpop.xlane.xlu1 %777  ;;  %v5929_v7 = vmax.f32 %v4011_v20, 0.0 }
 0x1c9   :  { %3311 = vrsqrt.f32 %v1031_v38  ;;  %v4013_v39 = vmax.f32 %v608_v61, 0.0  ;;  %v904_v45 = vmul.f32 %v4005_v31, %v4005_v31  ;;  %v872_v5 = vmul.f32 0.0078125, %v778_v15 }
 0x1ca   :  { %v489_v30 = vpack.c.bf16 %v5929_v7, %v5930_v0  ;;  %vm1069_vm1 = vweird.f32 %v1031_v38 }
 0x1cb   :  { %711 = vadd.xlane.f32.xlu2 %v4013_v39  ;;  %v759_v53 = vmul.f32 %v4013_v39, %v4013_v39  ;;  %v936_v26 = vsub.f32 %v872_v5, %v904_v45 }
 0x1cc   :  { %641 = vmatmul.bf16.gmra.mxu1 %v489_v30 }
 0x1cd   :  { %807 = vadd.xlane.f32.xlu1 %v759_v53  ;;  %v968_v55 = vmax.f32 %v936_v26, 0.0 }
 0x1ce   :  { %v609_v61 = vpop.f32.mrf.mxu1  ;;  %v684_v15 = vpop.xlane.xlu2 %683 }
 0x1cf   :  { %v3312_v40 = vpop.eup %3311  ;;  %v610_v52 = vadd.f32 %v3825_v36, %v609_v61  ;;  %v4027_v19 = vmul.f32 0.0078125, %v684_v15  ;;  %v1032_v2 = vadd.f32 1e-05, %v968_v55 }
 0x1d0   :  { %v1064_v50 = vmul.f32 %v3312_v40, %v1031_v38  ;;  %v780_v44 = vpop.xlane.xlu0 %779  ;;  %vm1070_vm0 = vweird.f32 %v3312_v40 }
 0x1d1   :  { %v4029_v41 = vmax.f32 %v610_v52, 0.0  ;;  %v905_v45 = vmul.f32 %v4027_v19, %v4027_v19  ;;  %v873_v5 = vmul.f32 0.0078125, %v780_v44  ;;  %3313 = vrsqrt.f32 %v1032_v2  ;;  %vm1071_vm2 = vmor %vm1069_vm1, %vm1070_vm0 }
 0x1d2   :  { %v1065_v7 = vmul.f32 %v3312_v40, %v1064_v50  ;;  %vm1079_vm4 = vweird.f32 %v1032_v2 }
 0x1d3   :  { %v937_v53 = vsub.f32 %v873_v5, %v905_v45  ;;  %713 = vadd.xlane.f32.xlu0 %v4029_v41  ;;  %v760_v26 = vmul.f32 %v4029_v41, %v4029_v41 }
 0x1d4   :  { %v1066_v30 = vmul.f32 0.5, %v1065_v7 }
 0x1d5   :  { %v969_v61 = vmax.f32 %v937_v53, 0.0  ;;  %809 = vadd.xlane.f32.xlu2 %v760_v26 }
 0x1d6   :  { %v1067_v15 = vsub.f32 1.5, %v1066_v30  ;;  %v612_v55 = vpop.f32.mrf.mxu1  ;;  %v686_v0 = vpop.xlane.xlu2 %685 }
 0x1d7   :  { %v4036_v52 = vadd.f32 1e-05, %v969_v61  ;;  %v613_v20 = vadd.f32 %v3825_v36, %v612_v55  ;;  %v4039_v44 = vmul.f32 0.0078125, %v686_v0  ;;  %v3314_v50 = vpop.eup %3313  ;;  %v999_v0 = vsub.f32 %v3833_v48, %v3995_v16 }
 0x1d8   :  { %v1068_v45 = vmul.f32 %v3312_v40, %v1067_v15  ;;  %v782_v5 = vpop.xlane.xlu1 %781  ;;  %v1074_v47 = vmul.f32 %v3314_v50, %v1032_v2  ;;  %vm1080_vm3 = vweird.f32 %v3314_v50 }
 0x1d9   :  { %3315 = vrsqrt.f32 %v4036_v52  ;;  %v4042_v7 = vmax.f32 %v613_v20, 0.0  ;;  %v906_v53 = vmul.f32 %v4039_v44, %v4039_v44  ;;  %v874_v26 = vmul.f32 0.0078125, %v782_v5  ;;  %vm1081_vm5 = vmor %vm1079_vm4, %vm1080_vm3 }
 0x1da   :  { %v1075_v30 = vmul.f32 %v3314_v50, %v1074_v47  ;;  %v1072_v61 = vsel %vm1071_vm2, %v3312_v40, %v1068_v45  ;;  %v4054_v47 = vld [vmem:[%s5888_s5] ss:$0 sm:$0xff]  ;;  %v1000_v5 = vsub.f32 %v3842_v58, %v4005_v31  ;;  %v4070_v31 = vld [vmem:[#allocation11] ss:$0 sm:$0xff]  ;;  %vm1089_vm7 = vweird.f32 %v4036_v52 }
 0x1db   :  { %5981 = vst [vmem:[#allocation35_spill] sm:$0xff] %v4042_v7  ;;  %v938_v55 = vsub.f32 %v874_v26, %v906_v53  ;;  %715 = vadd.xlane.f32.xlu0 %v4042_v7  ;;  %v761_v38 = vmul.f32 %v4042_v7, %v4042_v7  ;;  %v1383_v42 = vmul.f32 %v1072_v61, %v999_v0 }
 0x1dc   :  { %v1076_v15 = vmul.f32 0.5, %v1075_v30 }
 0x1dd   :  { %v970_v32 = vmax.f32 %v938_v55, 0.0  ;;  %811 = vadd.xlane.f32.xlu2 %v761_v38 }
 0x1de   :  { %v614_v20 = vpop.f32.mrf.mxu1  ;;  %v688_v10 = vpop.xlane.xlu2 %687  ;;  %v1077_v45 = vsub.f32 1.5, %v1076_v15  ;;  %v1419_v15 = vmul.f32 %v4054_v47, %v1383_v42 }
 0x1df   :  { %v3316_v40 = vpop.eup %3315  ;;  %v615_v48 = vadd.f32 %v3825_v36, %v614_v20  ;;  %v4057_v16 = vmul.f32 0.0078125, %v688_v10  ;;  %v4062_v26 = vadd.f32 1e-05, %v970_v32 }
 0x1e0   :  { %v1084_v53 = vmul.f32 %v3316_v40, %v4036_v52  ;;  %v784_v30 = vpop.xlane.xlu1 %783  ;;  %v1078_v61 = vmul.f32 %v3314_v50, %v1077_v45  ;;  %v1455_v42 = vadd.f32 %v4070_v31, %v1419_v15  ;;  %vm1090_vm6 = vweird.f32 %v3316_v40 }
 0x1e1   :  { %v4064_v0 = vmax.f32 %v615_v48, 0.0  ;;  %v907_v55 = vmul.f32 %v4057_v16, %v4057_v16  ;;  %3317 = vrsqrt.f32 %v4062_v26  ;;  %v875_v10 = vmul.f32 0.0078125, %v784_v30  ;;  %vm4089_vm8 = vmor %vm1089_vm7, %vm1090_vm6 }
 0x1e2   :  { %v1085_v38 = vmul.f32 %v3316_v40, %v1084_v53  ;;  %v1082_v32 = vsel %vm1081_vm5, %v3314_v50, %v1078_v61  ;;  %v5986_v52 = vmax.f32 %v3723_v29, 0.0  ;;  %vm1099_vm10 = vweird.f32 %v4062_v26 }
 0x1e3   :  { %5982 = vst [vmem:[#allocation36_spill] sm:$0xff] %v4064_v0  ;;  %717 = vadd.xlane.f32.xlu1 %v4064_v0  ;;  %v762_v58 = vmul.f32 %v4064_v0, %v4064_v0  ;;  %v939_v20 = vsub.f32 %v875_v10, %v907_v55  ;;  %v1384_v45 = vmul.f32 %v1082_v32, %v1000_v5 }
 0x1e4   :  { %v1086_v2 = vmul.f32 0.5, %v1085_v38 }
 0x1e5   :  { %813 = vadd.xlane.f32.xlu0 %v762_v58  ;;  %v971_v23 = vmax.f32 %v939_v20, 0.0  ;;  %v1420_v30 = vmul.f32 %v4054_v47, %v1384_v45  ;;  %v1001_v45 = vsub.f32 %v3857_v12, %v4027_v19 }
 0x1e6   :  { %v1087_v48 = vsub.f32 1.5, %v1086_v2  ;;  %v617_v53 = vpop.f32.mrf.mxu1  ;;  %v690_v1 = vpop.xlane.xlu0 %689 }
 0x1e7   :  { %v618_v56 = vadd.f32 %v3825_v36, %v617_v53  ;;  %v4078_v7 = vmul.f32 0.0078125, %v690_v1  ;;  %v3318_v34 = vpop.eup %3317  ;;  %v4080_v50 = vadd.f32 1e-05, %v971_v23  ;;  %v1456_v5 = vadd.f32 %v4070_v31, %v1420_v30 }
 0x1e8   :  { %v1088_v0 = vmul.f32 %v3316_v40, %v1087_v48  ;;  %v786_v61 = vpop.xlane.xlu2 %785  ;;  %v1094_v55 = vmul.f32 %v3318_v34, %v4062_v26  ;;  %v5985_v23 = vmax.f32 %v3720_v27, 0.0  ;;  %vm1100_vm9 = vweird.f32 %v3318_v34 }
 0x1e9   :  { %v4085_v38 = vmax.f32 %v618_v56, 0.0  ;;  %v908_v10 = vmul.f32 %v4078_v7, %v4078_v7  ;;  %3319 = vrsqrt.f32 %v4080_v50  ;;  %v876_v1 = vmul.f32 0.0078125, %v786_v61  ;;  %vm1101_vm11 = vmor %vm1099_vm10, %vm1100_vm9 }
 0x1ea   :  { %v4096_v58 = vadd.f32 %v1455_v42, %v5985_v23  ;;  %v1095_v32 = vmul.f32 %v3318_v34, %v1094_v55  ;;  %v4103_v2 = vadd.f32 %v1456_v5, %v5986_v52  ;;  %v1092_v20 = vsel %vm4089_vm8, %v3316_v40, %v1088_v0 }
 0x1eb   :  { %719 = vadd.xlane.f32.xlu1 %v4085_v38  ;;  %v763_v56 = vmul.f32 %v4085_v38, %v4085_v38  ;;  %v940_v48 = vsub.f32 %v876_v1, %v908_v10  ;;  %v1385_v55 = vmul.f32 %v1092_v20, %v1001_v45  ;;  %v1002_v1 = vsub.f32 %v3866_v28, %v4039_v44 }
 0x1ec   :  { %v1096_v27 = vmul.f32 0.5, %v1095_v32  ;;  %v1583_v53 = vpack.c.bf16 %v4103_v2, %v4096_v58  ;;  %vm1109_vm12 = vweird.f32 %v4080_v50 }
 0x1ed   :  { %815 = vadd.xlane.f32.xlu0 %v763_v56  ;;  %v972_v30 = vmax.f32 %v940_v48, 0.0  ;;  %v1421_v56 = vmul.f32 %v4054_v47, %v1385_v55 }
 0x1ee   :  { %v619_v42 = vpop.f32.mrf.mxu1  ;;  %v692_v61 = vpop.xlane.xlu0 %691  ;;  %v1097_v23 = vsub.f32 1.5, %v1096_v27  ;;  %1677 = vmatmul.bf16.vlgmr.msra.gmra.mxu2 %v1583_v53 }
 0x1ef   :  { %v620_v29 = vadd.f32 %v3825_v36, %v619_v42  ;;  %v4112_v5 = vmul.f32 0.0078125, %v692_v61  ;;  %v4114_v40 = vpop.eup %3319  ;;  %v1036_v12 = vadd.f32 1e-05, %v972_v30  ;;  %v1457_v42 = vadd.f32 %v4070_v31, %v1421_v56 }
 0x1f0   :  { %v788_v19 = vpop.xlane.xlu2 %787  ;;  %v1098_v0 = vmul.f32 %v3318_v34, %v1097_v23  ;;  %v1104_v10 = vmul.f32 %v4114_v40, %v4080_v50  ;;  %vm1110_vm13 = vweird.f32 %v4114_v40 }
 0x1f1   :  { %v4119_v15 = vmax.f32 %v620_v29, 0.0  ;;  %3321 = vrsqrt.f32 %v1036_v12  ;;  %v909_v32 = vmul.f32 %v4112_v5, %v4112_v5  ;;  %v877_v20 = vmul.f32 0.0078125, %v788_v19  ;;  %vm4145_vm14 = vmor %vm1109_vm12, %vm1110_vm13 }
 0x1f2   :  { %v1105_v52 = vmul.f32 %v4114_v40, %v1104_v10  ;;  %v1102_v45 = vsel %vm1101_vm11, %v3318_v34, %v1098_v0  ;;  %vm1119_vm15 = vweird.f32 %v1036_v12 }
 0x1f3   :  { %721 = vadd.xlane.f32.xlu2 %v4119_v15  ;;  %v764_v26 = vmul.f32 %v4119_v15, %v4119_v15  ;;  %v1386_v48 = vmul.f32 %v1102_v45, %v1002_v1  ;;  %v941_v53 = vsub.f32 %v877_v20, %v909_v32 }
 0x1f4   :  { %v1106_v27 = vmul.f32 0.5, %v1105_v52 }
 0x1f5   :  { %817 = vadd.xlane.f32.xlu1 %v764_v26  ;;  %v1422_v30 = vmul.f32 %v4054_v47, %v1386_v48  ;;  %v973_v55 = vmax.f32 %v941_v53, 0.0  ;;  %v5989_v48 = vmax.f32 %v3732_v35, 0.0  ;;  %v5990_v53 = vmax.f32 %v3735_v37, 0.0 }
 0x1f6   :  { %v622_v28 = vpop.f32.mrf.mxu1  ;;  %v694_v44 = vpop.xlane.xlu1 %693  ;;  %v1107_v61 = vsub.f32 1.5, %v1106_v27  ;;  %v1003_v37 = vsub.f32 %v3881_v60, %v4057_v16 }
 0x1f7   :  { %v623_v23 = vadd.f32 %v3825_v36, %v622_v28  ;;  %v4135_v29 = vmul.f32 0.0078125, %v694_v44  ;;  %v3322_v34 = vpop.eup %3321  ;;  %v1458_v0 = vadd.f32 %v4070_v31, %v1422_v30  ;;  %v4139_v32 = vadd.f32 1e-05, %v973_v55 }
 0x1f8   :  { %v790_v19 = vpop.xlane.xlu0 %789  ;;  %v1108_v10 = vmul.f32 %v4114_v40, %v1107_v61  ;;  %v1114_v1 = vmul.f32 %v3322_v34, %v1036_v12  ;;  %v4156_v27 = vadd.f32 %v1457_v42, %v5989_v48  ;;  %vm1120_vm0 = vweird.f32 %v3322_v34 }
 0x1f9   :  { %v4149_v52 = vmax.f32 %v623_v23, 0.0  ;;  %v910_v20 = vmul.f32 %v4135_v29, %v4135_v29  ;;  %v878_v26 = vmul.f32 0.0078125, %v790_v19  ;;  %3323 = vrsqrt.f32 %v4139_v32  ;;  %vm4176_vm1 = vmor %vm1119_vm15, %vm1120_vm0 }
 0x1fa   :  { %v1115_v45 = vmul.f32 %v3322_v34, %v1114_v1  ;;  %v4160_v50 = vadd.f32 %v1458_v0, %v5990_v53  ;;  %v1112_v35 = vsel %vm4145_vm14, %v4114_v40, %v1108_v10  ;;  %v1004_v48 = vsub.f32 %v3890_v17, %v4078_v7 }
 0x1fb   :  { %v942_v28 = vsub.f32 %v878_v26, %v910_v20  ;;  %723 = vadd.xlane.f32.xlu2 %v4149_v52  ;;  %v765_v44 = vmul.f32 %v4149_v52, %v4149_v52  ;;  %v1387_v10 = vmul.f32 %v1112_v35, %v1003_v37  ;;  %vm1129_vm2 = vweird.f32 %v4139_v32 }
 0x1fc   :  { %v1116_v30 = vmul.f32 0.5, %v1115_v45  ;;  %v1584_v61 = vpack.c.bf16 %v4160_v50, %v4156_v27 }
 0x1fd   :  { %v974_v42 = vmax.f32 %v942_v28, 0.0  ;;  %819 = vadd.xlane.f32.xlu1 %v765_v44  ;;  %v1423_v35 = vmul.f32 %v4054_v47, %v1387_v10 }
 0x1fe   :  { %v624_v55 = vpop.f32.mrf.mxu1  ;;  %v696_v23 = vpop.xlane.xlu1 %695  ;;  %v1117_v19 = vsub.f32 1.5, %v1116_v30  ;;  %1682 = vmatmul.bf16.gmra.mxu2 %v1584_v61 }
 0x1ff   :  { %v625_v0 = vadd.f32 %v3825_v36, %v624_v55  ;;  %v4173_v1 = vmul.f32 0.0078125, %v696_v23  ;;  %v1038_v56 = vadd.f32 1e-05, %v974_v42  ;;  %v3324_v26 = vpop.eup %3323  ;;  %v1459_v10 = vadd.f32 %v4070_v31, %v1423_v35 }
 0x200   :  { %v792_v40 = vpop.xlane.xlu0 %791  ;;  %v1118_v60 = vmul.f32 %v3322_v34, %v1117_v19  ;;  %v1124_v53 = vmul.f32 %v3324_v26, %v4139_v32  ;;  %vm1130_vm3 = vweird.f32 %v3324_v26 }
 0x201   :  { %v4180_v16 = vmax.f32 %v625_v0, 0.0  ;;  %v911_v45 = vmul.f32 %v4173_v1, %v4173_v1  ;;  %3325 = vrsqrt.f32 %v1038_v56  ;;  %v879_v12 = vmul.f32 0.0078125, %v792_v40  ;;  %vm4206_vm4 = vmor %vm1129_vm2, %vm1130_vm3 }
 0x202   :  { %v1122_v44 = vsel %vm4176_vm1, %v3322_v34, %v1118_v60  ;;  %v1125_v30 = vmul.f32 %v3324_v26, %v1124_v53  ;;  %vm1139_vm5 = vweird.f32 %v1038_v56 }
 0x203   :  { %725 = vadd.xlane.f32.xlu0 %v4180_v16  ;;  %v766_v28 = vmul.f32 %v4180_v16, %v4180_v16  ;;  %v1388_v61 = vmul.f32 %v1122_v44, %v1004_v48  ;;  %v943_v37 = vsub.f32 %v879_v12, %v911_v45 }
 0x204   :  { %v1126_v42 = vmul.f32 0.5, %v1125_v30 }
 0x205   :  { %821 = vadd.xlane.f32.xlu2 %v766_v28  ;;  %v1424_v55 = vmul.f32 %v4054_v47, %v1388_v61  ;;  %v975_v23 = vmax.f32 %v943_v37, 0.0 }
 0x206   :  { %v627_v17 = vpop.f32.mrf.mxu1  ;;  %v698_v7 = vpop.xlane.xlu2 %697  ;;  %v1127_v20 = vsub.f32 1.5, %v1126_v42  ;;  %v5995_v42 = vmax.f32 %v3744_v43, 0.0 }
 0x207   :  { %v628_v19 = vadd.f32 %v3825_v36, %v627_v17  ;;  %v4196_v0 = vmul.f32 0.0078125, %v698_v7  ;;  %v3326_v34 = vpop.eup %3325  ;;  %v1460_v60 = vadd.f32 %v4070_v31, %v1424_v55  ;;  %v4200_v48 = vadd.f32 1e-05, %v975_v23 }
 0x208   :  { %v794_v40 = vpop.xlane.xlu1 %793  ;;  %v1134_v45 = vmul.f32 %v3326_v34, %v1038_v56  ;;  %v1128_v12 = vmul.f32 %v3324_v26, %v1127_v20  ;;  %v4218_v32 = vadd.f32 %v1459_v10, %v5995_v42  ;;  %v5996_v17 = vmax.f32 %v3748_v46, 0.0 }
 0x209   :  { %v4202_v53 = vmax.f32 %v628_v19, 0.0  ;;  %v912_v44 = vmul.f32 %v4196_v0, %v4196_v0  ;;  %v880_v30 = vmul.f32 0.0078125, %v794_v40  ;;  %3327 = vrsqrt.f32 %v4200_v48 }
 0x20a   :  { %v1135_v61 = vmul.f32 %v3326_v34, %v1134_v45  ;;  %v4222_v7 = vadd.f32 %v1460_v60, %v5996_v17  ;;  %vm1140_vm6 = vweird.f32 %v3326_v34  ;;  %v1132_v23 = vsel %vm4206_vm4, %v3324_v26, %v1128_v12 }
 0x20b   :  { %727 = vadd.xlane.f32.xlu0 %v4202_v53  ;;  %v767_v35 = vmul.f32 %v4202_v53, %v4202_v53  ;;  %v944_v37 = vsub.f32 %v880_v30, %v912_v44  ;;  %v1005_v19 = vsub.f32 %v3905_v8, %v4112_v5  ;;  %vm4233_vm7 = vmor %vm1139_vm5, %vm1140_vm6  ;;  %vm1149_vm8 = vweird.f32 %v4200_v48 }
 0x20c   :  { %v1136_v55 = vmul.f32 0.5, %v1135_v61  ;;  %v1585_v43 = vpack.c.bf16 %v4222_v7, %v4218_v32  ;;  %v1006_v61 = vsub.f32 %v3914_v49, %v4135_v29 }
 0x20d   :  { %823 = vadd.xlane.f32.xlu2 %v767_v35  ;;  %v976_v20 = vmax.f32 %v944_v37, 0.0  ;;  %v1389_v12 = vmul.f32 %v1132_v23, %v1005_v19 }
 0x20e   :  { %v629_v40 = vpop.f32.mrf.mxu1  ;;  %v700_v10 = vpop.xlane.xlu2 %699  ;;  %v1137_v45 = vsub.f32 1.5, %v1136_v55  ;;  %1687 = vmatmul.bf16.gmra.mxu2 %v1585_v43 }
 0x20f   :  { %v630_v46 = vadd.f32 %v3825_v36, %v629_v40  ;;  %v4231_v60 = vmul.f32 0.0078125, %v700_v10  ;;  %v1040_v28 = vadd.f32 1e-05, %v976_v20  ;;  %v3328_v8 = vpop.eup %3327  ;;  %v1425_v19 = vmul.f32 %v4054_v47, %v1389_v12 }
 0x210   :  { %v796_v26 = vpop.xlane.xlu1 %795  ;;  %v1138_v5 = vmul.f32 %v3326_v34, %v1137_v45  ;;  %v1144_v35 = vmul.f32 %v3328_v8, %v4200_v48  ;;  %vm1150_vm9 = vweird.f32 %v3328_v8  ;;  %v6002_v48 = vmax.f32 %v3760_v54, 0.0 }
 0x211   :  { %v4237_v44 = vmax.f32 %v630_v46, 0.0  ;;  %v913_v30 = vmul.f32 %v4231_v60, %v4231_v60  ;;  %3329 = vrsqrt.f32 %v1040_v28  ;;  %v881_v37 = vmul.f32 0.0078125, %v796_v26  ;;  %vm4261_vm10 = vmor %vm1149_vm8, %vm1150_vm9 }
 0x212   :  { %v1142_v17 = vsel %vm4233_vm7, %v3326_v34, %v1138_v5  ;;  %v1145_v55 = vmul.f32 %v3328_v8, %v1144_v35  ;;  %v1461_v12 = vadd.f32 %v4070_v31, %v1425_v19  ;;  %vm1159_vm11 = vweird.f32 %v1040_v28 }
 0x213   :  { %729 = vadd.xlane.f32.xlu1 %v4237_v44  ;;  %v768_v42 = vmul.f32 %v4237_v44, %v4237_v44  ;;  %v1390_v23 = vmul.f32 %v1142_v17, %v1006_v61  ;;  %v945_v20 = vsub.f32 %v881_v37, %v913_v30 }
 0x214   :  { %v1146_v43 = vmul.f32 0.5, %v1145_v55 }
 0x215   :  { %825 = vadd.xlane.f32.xlu0 %v768_v42  ;;  %v1426_v40 = vmul.f32 %v4054_v47, %v1390_v23  ;;  %v977_v10 = vmax.f32 %v945_v20, 0.0 }
 0x216   :  { %v632_v49 = vpop.f32.mrf.mxu1  ;;  %v702_v29 = vpop.xlane.xlu0 %701  ;;  %v1147_v56 = vsub.f32 1.5, %v1146_v43  ;;  %v6001_v43 = vmax.f32 %v3756_v51, 0.0 }
 0x217   :  { %v633_v45 = vadd.f32 %v3825_v36, %v632_v49  ;;  %v4253_v46 = vmul.f32 0.0078125, %v702_v29  ;;  %v3330_v34 = vpop.eup %3329  ;;  %v1462_v5 = vadd.f32 %v4070_v31, %v1426_v40  ;;  %v1041_v61 = vadd.f32 1e-05, %v977_v10 }
 0x218   :  { %v798_v26 = vpop.xlane.xlu2 %797  ;;  %v1154_v30 = vmul.f32 %v3330_v34, %v1040_v28  ;;  %v1148_v37 = vmul.f32 %v3328_v8, %v1147_v56  ;;  %v4272_v49 = vadd.f32 %v1461_v12, %v6001_v43  ;;  %vm1160_vm12 = vweird.f32 %v3330_v34 }
 0x219   :  { %v4257_v35 = vmax.f32 %v633_v45, 0.0  ;;  %v914_v17 = vmul.f32 %v4253_v46, %v4253_v46  ;;  %v882_v55 = vmul.f32 0.0078125, %v798_v26  ;;  %3331 = vrsqrt.f32 %v1041_v61  ;;  %vm4287_vm13 = vmor %vm1159_vm11, %vm1160_vm12 }
 0x21a   :  { %v1155_v23 = vmul.f32 %v3330_v34, %v1154_v30  ;;  %v4276_v29 = vadd.f32 %v1462_v5, %v6002_v48  ;;  %v1152_v10 = vsel %vm4261_vm10, %v3328_v8, %v1148_v37  ;;  %v1007_v45 = vsub.f32 %v3929_v24, %v4173_v1 }
 0x21b   :  { %731 = vadd.xlane.f32.xlu1 %v4257_v35  ;;  %v769_v19 = vmul.f32 %v4257_v35, %v4257_v35  ;;  %v946_v20 = vsub.f32 %v882_v55, %v914_v17  ;;  %vm1169_vm14 = vweird.f32 %v1041_v61 }
 0x21c   :  { %v1156_v40 = vmul.f32 0.5, %v1155_v23  ;;  %v1586_v51 = vpack.c.bf16 %v4276_v29, %v4272_v49  ;;  %v1391_v24 = vmul.f32 %v1152_v10, %v1007_v45 }
 0x21d   :  { %827 = vadd.xlane.f32.xlu0 %v769_v19  ;;  %v978_v56 = vmax.f32 %v946_v20, 0.0 }
 0x21e   :  { %v634_v26 = vpop.f32.mrf.mxu1  ;;  %v704_v12 = vpop.xlane.xlu0 %703  ;;  %v1157_v30 = vsub.f32 1.5, %v1156_v40  ;;  %1692 = vmatmul.bf16.gmra.mxu2 %v1586_v51  ;;  %v1427_v10 = vmul.f32 %v4054_v47, %v1391_v24 }
 0x21f   :  { %v635_v54 = vadd.f32 %v3825_v36, %v634_v26  ;;  %v4285_v5 = vmul.f32 0.0078125, %v704_v12  ;;  %v4291_v42 = vadd.f32 1e-05, %v978_v56  ;;  %v3332_v1 = vpop.eup %3331  ;;  %v1008_v36 = vsub.f32 %v3938_v33, %v4196_v0  ;;  %v4310_v12 = vld [vmem:[%s5887_s4] ss:$0 sm:$0xff] }
 0x220   :  { %v800_v8 = vpop.xlane.xlu2 %799  ;;  %v1158_v37 = vmul.f32 %v3330_v34, %v1157_v30  ;;  %v1164_v23 = vmul.f32 %v3332_v1, %v1041_v61  ;;  %vm1170_vm15 = vweird.f32 %v3332_v1  ;;  %v1463_v61 = vadd.f32 %v4070_v31, %v1427_v10 }
 0x221   :  { %v4293_v17 = vmax.f32 %v635_v54, 0.0  ;;  %v915_v55 = vmul.f32 %v4285_v5, %v4285_v5  ;;  %3333 = vrsqrt.f32 %v4291_v42  ;;  %v883_v19 = vmul.f32 0.0078125, %v800_v8  ;;  %vm4317_vm0 = vmor %vm1169_vm14, %vm1170_vm15 }
 0x222   :  { %v1162_v43 = vsel %vm4287_vm13, %v3330_v34, %v1158_v37  ;;  %v1165_v48 = vmul.f32 %v3332_v1, %v1164_v23  ;;  %vm1179_vm1 = vweird.f32 %v4291_v42 }
 0x223   :  { %733 = vadd.xlane.f32.xlu2 %v4293_v17  ;;  %v770_v20 = vmul.f32 %v4293_v17, %v4293_v17  ;;  %v1392_v40 = vmul.f32 %v1162_v43, %v1008_v36  ;;  %v947_v45 = vsub.f32 %v883_v19, %v915_v55 }
 0x224   :  { %v1166_v56 = vmul.f32 0.5, %v1165_v48  ;;  %v1009_v48 = vsub.f32 %v3953_v57, %v4231_v60 }
 0x225   :  { %829 = vadd.xlane.f32.xlu1 %v770_v20  ;;  %v1428_v51 = vmul.f32 %v4054_v47, %v1392_v40  ;;  %v979_v26 = vmax.f32 %v947_v45, 0.0 }
 0x226   :  { %v637_v33 = vpop.f32.mrf.mxu1  ;;  %v706_v0 = vpop.xlane.xlu1 %705  ;;  %v1167_v28 = vsub.f32 1.5, %v1166_v56  ;;  %v6007_v56 = vmax.f32 %v3768_v59, 0.0 }
 0x227   :  { %v638_v34 = vadd.f32 %v4310_v12, %v637_v33  ;;  %v4313_v30 = vmul.f32 0.0078125, %v706_v0  ;;  %v3334_v54 = vpop.eup %3333  ;;  %v1464_v24 = vadd.f32 %v4070_v31, %v1428_v51  ;;  %v1043_v36 = vadd.f32 1e-05, %v979_v26 }
 0x228   :  { %v802_v8 = vpop.xlane.xlu0 %801  ;;  %v1174_v55 = vmul.f32 %v3334_v54, %v4291_v42  ;;  %v1168_v19 = vmul.f32 %v3332_v1, %v1167_v28  ;;  %v4332_v33 = vadd.f32 %v1463_v61, %v6007_v56  ;;  %v6008_v0 = vmax.f32 %v3772_v62, 0.0 }
 0x229   :  { %v4322_v23 = vmax.f32 %v638_v34, 0.0  ;;  %v916_v20 = vmul.f32 %v4313_v30, %v4313_v30  ;;  %v884_v43 = vmul.f32 0.0078125, %v802_v8  ;;  %3335 = vrsqrt.f32 %v1043_v36 }
 0x22a   :  { %v1175_v40 = vmul.f32 %v3334_v54, %v1174_v55  ;;  %v4336_v51 = vadd.f32 %v1464_v24, %v6008_v0  ;;  %v1172_v26 = vsel %vm4317_vm0, %v3332_v1, %v1168_v19  ;;  %vm1180_vm2 = vweird.f32 %v3334_v54 }
 0x22b   :  { %v771_v10 = vmul.f32 %v4322_v23, %v4322_v23  ;;  %v948_v45 = vsub.f32 %v884_v43, %v916_v20  ;;  %v1393_v8 = vmul.f32 %v1172_v26, %v1009_v48  ;;  %vm1181_vm3 = vmor %vm1179_vm1, %vm1180_vm2  ;;  %v1010_v43 = vsub.f32 %v3962_v13, %v4253_v46 }
 0x22c   :  { %v1176_v34 = vmul.f32 0.5, %v1175_v40  ;;  %v1587_v59 = vpack.c.bf16 %v4336_v51, %v4332_v33  ;;  %vm1189_vm4 = vweird.f32 %v1043_v36 }
 0x22d   :  { %831 = vadd.xlane.f32.xlu2 %v771_v10  ;;  %735 = vadd.xlane.f32.xlu1 %v4322_v23  ;;  %v980_v57 = vmax.f32 %v948_v45, 0.0  ;;  %v1429_v40 = vmul.f32 %v4054_v47, %v1393_v8 }
 0x22e   :  { %v708_v60 = vpop.xlane.xlu1 %707  ;;  %v639_v28 = vpop.f32.mrf.mxu1  ;;  %v1177_v62 = vsub.f32 1.5, %v1176_v34  ;;  %1697 = vmatmul.bf16.gmra.mxu2 %v1587_v59 }
 0x22f   :  { %v4344_v61 = vmul.f32 0.0078125, %v708_v60  ;;  %v640_v24 = vadd.f32 %v4310_v12, %v639_v28  ;;  %v1044_v1 = vadd.f32 1e-05, %v980_v57  ;;  %v3336_v37 = vpop.eup %3335  ;;  %v1465_v60 = vadd.f32 %v4070_v31, %v1429_v40 }
 0x230   :  { %v804_v42 = vpop.xlane.xlu0 %803  ;;  %v1178_v55 = vmul.f32 %v3334_v54, %v1177_v62  ;;  %v1184_v48 = vmul.f32 %v3336_v37, %v1043_v36  ;;  %vm1190_vm5 = vweird.f32 %v3336_v37 }
 0x231   :  { %v917_v19 = vmul.f32 %v4344_v61, %v4344_v61  ;;  %v4349_v20 = vmax.f32 %v640_v24, 0.0  ;;  %3337 = vrsqrt.f32 %v1044_v1  ;;  %v885_v10 = vmul.f32 0.0078125, %v804_v42  ;;  %vm4360_vm6 = vmor %vm1189_vm4, %vm1190_vm5 }
 0x232   :  { %v1182_v45 = vsel %vm1181_vm3, %v3334_v54, %v1178_v55  ;;  %v1185_v56 = vmul.f32 %v3336_v37, %v1184_v48  ;;  %v6011_v48 = vmax.f32 %v3780_v3, 0.0  ;;  %vm1199_vm7 = vweird.f32 %v1044_v1 }
 0x233   :  { %v1394_v0 = vmul.f32 %v1182_v45, %v1010_v43  ;;  %v949_v26 = vsub.f32 %v885_v10, %v917_v19  ;;  %v6013_v10 = vmax.f32 %v3784_v6, 0.0 }
 0x234   :  { %v1186_v34 = vmul.f32 0.5, %v1185_v56  ;;  %v4368_v40 = vadd.f32 %v1465_v60, %v6011_v48 }
 0x235   :  { %737 = vadd.xlane.f32.xlu2 %v4349_v20  ;;  %v1430_v59 = vmul.f32 %v4054_v47, %v1394_v0  ;;  %v981_v13 = vmax.f32 %v949_v26, 0.0 }
 0x236   :  { %v710_v57 = vpop.xlane.xlu2 %709  ;;  %v1187_v8 = vsub.f32 1.5, %v1186_v34  ;;  %6012 = vst [vmem:[#allocation37_spill] sm:$0xff] %v4368_v40 }
 0x237   :  { %v4357_v46 = vmul.f32 0.0078125, %v710_v57  ;;  %v3338_v28 = vpop.eup %3337  ;;  %v1466_v54 = vadd.f32 %v4070_v31, %v1430_v59  ;;  %v1045_v42 = vadd.f32 1e-05, %v981_v13  ;;  %v1011_v57 = vsub.f32 %v3977_v9, %v4285_v5 }
 0x238   :  { %v806_v62 = vpop.xlane.xlu1 %805  ;;  %v1194_v24 = vmul.f32 %v3338_v28, %v1044_v1  ;;  %v1188_v19 = vmul.f32 %v3336_v37, %v1187_v8  ;;  %vm1200_vm8 = vweird.f32 %v3338_v28  ;;  %v1012_v9 = vsub.f32 %v3983_v63, %v4313_v30 }
 0x239   :  { %v918_v55 = vmul.f32 %v4357_v46, %v4357_v46  ;;  %v886_v43 = vmul.f32 0.0078125, %v806_v62  ;;  %v4372_v45 = vadd.f32 %v1466_v54, %v6013_v10  ;;  %3339 = vrsqrt.f32 %v1045_v42  ;;  %vm1201_vm9 = vmor %vm1199_vm7, %vm1200_vm8 }
 0x23a   :  { %v1195_v56 = vmul.f32 %v3338_v28, %v1194_v24  ;;  %v1192_v34 = vsel %vm4360_vm6, %v3336_v37, %v1188_v19  ;;  %vm1209_vm10 = vweird.f32 %v1045_v42 }
 0x23b   :  { %v950_v0 = vsub.f32 %v886_v43, %v918_v55  ;;  %v1588_v26 = vpack.c.bf16 %v4372_v45, %v4368_v40  ;;  %v1395_v8 = vmul.f32 %v1192_v34, %v1011_v57 }
 0x23c   :  { %v1196_v59 = vmul.f32 0.5, %v1195_v56 }
 0x23d   :  { %v982_v3 = vmax.f32 %v950_v0, 0.0  ;;  %v1431_v43 = vmul.f32 %v4054_v47, %v1395_v8 }
 0x23e   :  { %v712_v60 = vpop.xlane.xlu2 %711  ;;  %v1197_v6 = vsub.f32 1.5, %v1196_v59  ;;  %1702 = vmatmul.bf16.gmra.mxu2 %v1588_v26 }
 0x23f   :  { %v4380_v13 = vmul.f32 0.0078125, %v712_v60  ;;  %v1046_v62 = vadd.f32 1e-05, %v982_v3  ;;  %v3340_v24 = vpop.eup %3339  ;;  %v1467_v63 = vadd.f32 %v4070_v31, %v1431_v43 }
 0x240   :  { %v808_v54 = vpop.xlane.xlu1 %807  ;;  %v1198_v55 = vmul.f32 %v3338_v28, %v1197_v6  ;;  %v1204_v5 = vmul.f32 %v3340_v24, %v1045_v42  ;;  %vm1210_vm11 = vweird.f32 %v3340_v24 }
 0x241   :  { %v919_v37 = vmul.f32 %v4380_v13, %v4380_v13  ;;  %v887_v36 = vmul.f32 0.0078125, %v808_v54  ;;  %3341 = vrsqrt.f32 %v1046_v62  ;;  %vm4392_vm12 = vmor %vm1209_vm10, %vm1210_vm11  ;;  %vm1219_vm13 = vweird.f32 %v1046_v62 }
 0x242   :  { %v1202_v19 = vsel %vm1201_vm9, %v3338_v28, %v1198_v55  ;;  %v1205_v48 = vmul.f32 %v3340_v24, %v1204_v5  ;;  %v6018_v5 = vmax.f32 %v3796_v14, 0.0 }
 0x243   :  { %v951_v1 = vsub.f32 %v887_v36, %v919_v37  ;;  %v1396_v10 = vmul.f32 %v1202_v19, %v1012_v9  ;;  %v6016_v36 = vmax.f32 %v3792_v11, 0.0  ;;  %v1013_v19 = vsub.f32 %v3989_v4, %v4344_v61 }
 0x244   :  { %v1206_v0 = vmul.f32 0.5, %v1205_v48  ;;  %v1014_v61 = vsub.f32 %v3997_v22, %v4357_v46 }
 0x245   :  { %v983_v56 = vmax.f32 %v951_v1, 0.0  ;;  %v1432_v34 = vmul.f32 %v4054_v47, %v1396_v10  ;;  %v4400_v9 = vadd.f32 %v1467_v63, %v6016_v36 }
 0x246   :  { %v714_v26 = vpop.xlane.xlu0 %713  ;;  %v1207_v3 = vsub.f32 1.5, %v1206_v0 }
 0x247   :  { %v1047_v57 = vadd.f32 1e-05, %v983_v56  ;;  %v4388_v59 = vmul.f32 0.0078125, %v714_v26  ;;  %v3342_v30 = vpop.eup %3341  ;;  %v1468_v28 = vadd.f32 %v4070_v31, %v1432_v34  ;;  %6017 = vst [vmem:[#allocation38_spill] sm:$0xff] %v4400_v9 }
 0x248   :  { %v810_v60 = vpop.xlane.xlu2 %809  ;;  %v1214_v8 = vmul.f32 %v3342_v30, %v1046_v62  ;;  %v1208_v42 = vmul.f32 %v3340_v24, %v1207_v3  ;;  %vm1220_vm14 = vweird.f32 %v3342_v30 }
 0x249   :  { %3343 = vrsqrt.f32 %v1047_v57  ;;  %v920_v54 = vmul.f32 %v4388_v59, %v4388_v59  ;;  %v888_v55 = vmul.f32 0.0078125, %v810_v60  ;;  %v4404_v1 = vadd.f32 %v1468_v28, %v6018_v5  ;;  %vm1221_vm15 = vmor %vm1219_vm13, %vm1220_vm14 }
 0x24a   :  { %v1215_v37 = vmul.f32 %v3342_v30, %v1214_v8  ;;  %v1212_v48 = vsel %vm4392_vm12, %v3340_v24, %v1208_v42  ;;  %vm1229_vm0 = vweird.f32 %v1047_v57 }
 0x24b   :  { %6019 = vst [vmem:[#allocation39_spill] sm:$0xff] %v4404_v1  ;;  %v952_v43 = vsub.f32 %v888_v55, %v920_v54  ;;  %v1589_v56 = vpack.c.bf16 %v4404_v1, %v4400_v9  ;;  %v1397_v0 = vmul.f32 %v1212_v48, %v1013_v19 }
 0x24c   :  { %v1216_v10 = vmul.f32 0.5, %v1215_v37 }
 0x24d   :  { %v984_v11 = vmax.f32 %v952_v43, 0.0  ;;  %v1433_v6 = vmul.f32 %v4054_v47, %v1397_v0 }
 0x24e   :  { %v1217_v34 = vsub.f32 1.5, %v1216_v10  ;;  %v716_v14 = vpop.xlane.xlu0 %715  ;;  %1707 = vmatmul.bf16.gmra.mxu2 %v1589_v56 }
 0x24f   :  { %v3344_v26 = vpop.eup %3343  ;;  %v1048_v3 = vadd.f32 1e-05, %v984_v11  ;;  %v4412_v4 = vmul.f32 0.0078125, %v716_v14  ;;  %v1469_v46 = vadd.f32 %v4070_v31, %v1433_v6 }
 0x250   :  { %v1224_v63 = vmul.f32 %v3344_v26, %v1047_v57  ;;  %v1218_v24 = vmul.f32 %v3342_v30, %v1217_v34  ;;  %v812_v62 = vpop.xlane.xlu2 %811  ;;  %vm1230_vm1 = vweird.f32 %v3344_v26 }
 0x251   :  { %3345 = vrsqrt.f32 %v1048_v3  ;;  %v921_v28 = vmul.f32 %v4412_v4, %v4412_v4  ;;  %v889_v8 = vmul.f32 0.0078125, %v812_v62  ;;  %vm4424_vm2 = vmor %vm1229_vm0, %vm1230_vm1  ;;  %vm1239_vm3 = vweird.f32 %v1048_v3 }
 0x252   :  { %v1225_v60 = vmul.f32 %v3344_v26, %v1224_v63  ;;  %v1222_v42 = vsel %vm1221_vm15, %v3342_v30, %v1218_v24  ;;  %v6022_v63 = vmax.f32 %v3804_v18, 0.0  ;;  %v6024_v24 = vmax.f32 %v3808_v21, 0.0 }
 0x253   :  { %v1398_v55 = vmul.f32 %v1222_v42, %v1014_v61  ;;  %v953_v37 = vsub.f32 %v889_v8, %v921_v28  ;;  %v1015_v42 = vsub.f32 %v4013_v39, %v4380_v13  ;;  %v1016_v39 = vsub.f32 %v4029_v41, %v4388_v59 }
 0x254   :  { %v1226_v54 = vmul.f32 0.5, %v1225_v60  ;;  %v4432_v61 = vadd.f32 %v1469_v46, %v6022_v63 }
 0x255   :  { %v1434_v22 = vmul.f32 %v4054_v47, %v1398_v55  ;;  %v985_v19 = vmax.f32 %v953_v37, 0.0 }
 0x256   :  { %v1227_v36 = vsub.f32 1.5, %v1226_v54  ;;  %v718_v5 = vpop.xlane.xlu1 %717  ;;  %6023 = vst [vmem:[#allocation40_spill] sm:$0xff] %v4432_v61 }
 0x257   :  { %v4421_v43 = vmul.f32 0.0078125, %v718_v5  ;;  %v3346_v48 = vpop.eup %3345  ;;  %v1470_v11 = vadd.f32 %v4070_v31, %v1434_v22  ;;  %v1049_v0 = vadd.f32 1e-05, %v985_v19 }
 0x258   :  { %v1228_v10 = vmul.f32 %v3344_v26, %v1227_v36  ;;  %v814_v56 = vpop.xlane.xlu0 %813  ;;  %v1234_v57 = vmul.f32 %v3346_v48, %v1048_v3  ;;  %vm1240_vm4 = vweird.f32 %v3346_v48 }
 0x259   :  { %v922_v34 = vmul.f32 %v4421_v43, %v4421_v43  ;;  %v890_v14 = vmul.f32 0.0078125, %v814_v56  ;;  %v4436_v62 = vadd.f32 %v1470_v11, %v6024_v24  ;;  %3347 = vrsqrt.f32 %v1049_v0  ;;  %vm1241_vm5 = vmor %vm1239_vm3, %vm1240_vm4 }
 0x25a   :  { %v1235_v60 = vmul.f32 %v3346_v48, %v1234_v57  ;;  %v1232_v8 = vsel %vm4424_vm2, %v3344_v26, %v1228_v10  ;;  %vm1249_vm6 = vweird.f32 %v1049_v0 }
 0x25b   :  { %6025 = vst [vmem:[#allocation41_spill] sm:$0xff] %v4436_v62  ;;  %v954_v28 = vsub.f32 %v890_v14, %v922_v34  ;;  %v1590_v6 = vpack.c.bf16 %v4436_v62, %v4432_v61  ;;  %v1399_v36 = vmul.f32 %v1232_v8, %v1015_v42 }
 0x25c   :  { %v1236_v54 = vmul.f32 0.5, %v1235_v60 }
 0x25d   :  { %v986_v18 = vmax.f32 %v954_v28, 0.0  ;;  %v1435_v11 = vmul.f32 %v4054_v47, %v1399_v36 }
 0x25e   :  { %v720_v55 = vpop.xlane.xlu1 %719  ;;  %v1237_v21 = vsub.f32 1.5, %v1236_v54  ;;  %1712 = vmatmul.bf16.gmra.mxu2 %v1590_v6 }
 0x25f   :  { %v4444_v37 = vmul.f32 0.0078125, %v720_v55  ;;  %v1050_v5 = vadd.f32 1e-05, %v986_v18  ;;  %v3348_v46 = vpop.eup %3347  ;;  %v1471_v41 = vadd.f32 %v4070_v31, %v1435_v11 }
 0x260   :  { %v816_v22 = vpop.xlane.xlu0 %815  ;;  %v1238_v19 = vmul.f32 %v3346_v48, %v1237_v21  ;;  %v1244_v13 = vmul.f32 %v3348_v46, %v1049_v0  ;;  %vm1250_vm7 = vweird.f32 %v3348_v46  ;;  %v6028_v21 = vmax.f32 %v3816_v25, 0.0 }
 0x261   :  { %v923_v26 = vmul.f32 %v4444_v37, %v4444_v37  ;;  %v891_v10 = vmul.f32 0.0078125, %v816_v22  ;;  %3349 = vrsqrt.f32 %v1050_v5  ;;  %vm4458_vm8 = vmor %vm1249_vm6, %vm1250_vm7  ;;  %v6030_v22 = vld [vmem:[#allocation20_spill] sm:$0xff]  ;;  %vm1259_vm9 = vweird.f32 %v1050_v5 }
 0x262   :  { %v1242_v56 = vsel %vm1241_vm5, %v3346_v48, %v1238_v19  ;;  %v1245_v30 = vmul.f32 %v3348_v46, %v1244_v13  ;;  %v4467_v36 = vadd.f32 %v1471_v41, %v6028_v21  ;;  %v6031_v19 = vmax.f32 %v6030_v22, 0.0  ;;  %v4508_v22 = vpop.f32.mrf.mxu1 }
 0x263   :  { %v955_v3 = vsub.f32 %v891_v10, %v923_v26  ;;  %v1400_v57 = vmul.f32 %v1242_v56, %v1016_v39  ;;  %v6033_v26 = vld [vmem:[#allocation35_spill] sm:$0xff] }
 0x264   :  { %v1246_v14 = vmul.f32 0.5, %v1245_v30  ;;  %6029 = vst [vmem:[#allocation42_spill] sm:$0xff] %v4467_v36  ;;  %v1017_v10 = vsub.f32 %v6033_v26, %v4412_v4  ;;  %v4484_v4 = vld [vmem:[%s5887_s4 + $0x1] ss:$0 sm:$0xff] }
 0x265   :  { %v987_v34 = vmax.f32 %v955_v3, 0.0  ;;  %v1436_v24 = vmul.f32 %v4054_v47, %v1400_v57 }
 0x266   :  { %v722_v63 = vpop.xlane.xlu2 %721  ;;  %v1247_v6 = vsub.f32 1.5, %v1246_v14 }
 0x267   :  { %v4452_v60 = vadd.f32 1e-05, %v987_v34  ;;  %v4454_v28 = vmul.f32 0.0078125, %v722_v63  ;;  %v3350_v59 = vpop.eup %3349  ;;  %v1472_v8 = vadd.f32 %v4070_v31, %v1436_v24  ;;  %v6036_v24 = vld [vmem:[#allocation36_spill] sm:$0xff] }
 0x268   :  { %v818_v48 = vpop.xlane.xlu1 %817  ;;  %v1254_v0 = vmul.f32 %v3350_v59, %v1050_v5  ;;  %v1248_v54 = vmul.f32 %v3348_v46, %v1247_v6  ;;  %vm1260_vm10 = vweird.f32 %v3350_v59  ;;  %v1018_v41 = vsub.f32 %v6036_v24, %v4421_v43 }
 0x269   :  { %3351 = vrsqrt.f32 %v4452_v60  ;;  %v924_v47 = vmul.f32 %v4454_v28, %v4454_v28  ;;  %v892_v18 = vmul.f32 0.0078125, %v818_v48  ;;  %v4471_v31 = vadd.f32 %v1472_v8, %v6031_v19  ;;  %vm4486_vm11 = vmor %vm1259_vm9, %vm1260_vm10 }
 0x26a   :  { %v1255_v55 = vmul.f32 %v3350_v59, %v1254_v0  ;;  %v1252_v13 = vsel %vm4458_vm8, %v3348_v46, %v1248_v54  ;;  %v4502_v54 = vld [vmem:[%s5888_s5] ss:$0 sm:$0xff]  ;;  %vm1269_vm12 = vweird.f32 %v4452_v60 }
 0x26b   :  { %6032 = vst [vmem:[#allocation20_spill] sm:$0xff] %v4471_v31  ;;  %v956_v39 = vsub.f32 %v892_v18, %v924_v47  ;;  %v1591_v56 = vpack.c.bf16 %v4471_v31, %v4467_v36  ;;  %v1401_v11 = vmul.f32 %v1252_v13, %v1017_v10 }
 0x26c   :  { %v1256_v3 = vmul.f32 0.5, %v1255_v55 }
 0x26d   :  { %v988_v25 = vmax.f32 %v956_v39, 0.0  ;;  %v1437_v47 = vmul.f32 %v4502_v54, %v1401_v11 }
 0x26e   :  { %v1257_v57 = vsub.f32 1.5, %v1256_v3  ;;  %v724_v34 = vpop.xlane.xlu2 %723  ;;  %1717 = vmatmul.bf16.gmra.mxu2 %v1591_v56  ;;  %v4515_v56 = vld [vmem:[#allocation11] ss:$0 sm:$0xff] }
 0x26f   :  { %v4479_v30 = vpop.eup %3351  ;;  %v1052_v46 = vadd.f32 1e-05, %v988_v25  ;;  %v4492_v63 = vmul.f32 0.0078125, %v724_v34  ;;  %v1473_v25 = vadd.f32 %v4515_v56, %v1437_v47  ;;  %v6039_v47 = vld [vmem:[#allocation21_spill] sm:$0xff] }
 0x270   :  { %v1264_v5 = vmul.f32 %v4479_v30, %v4452_v60  ;;  %v1258_v6 = vmul.f32 %v3350_v59, %v1257_v57  ;;  %v820_v48 = vpop.xlane.xlu1 %819  ;;  %vm1270_vm13 = vweird.f32 %v4479_v30 }
 0x271   :  { %3353 = vrsqrt.f32 %v1052_v46  ;;  %v925_v42 = vmul.f32 %v4492_v63, %v4492_v63  ;;  %v1678_v0 = vpop.f32.mrf.mxu2  ;;  %v893_v55 = vmul.f32 0.0078125, %v820_v48  ;;  %vm4527_vm14 = vmor %vm1269_vm12, %vm1270_vm13  ;;  %vm1279_vm15 = vweird.f32 %v1052_v46 }
 0x272   :  { %v1265_v8 = vmul.f32 %v4479_v30, %v1264_v5  ;;  %v1679_v18 = vadd.f32 %v4484_v4, %v1678_v0  ;;  %v1262_v43 = vsel %vm4486_vm11, %v3350_v59, %v1258_v6 }
 0x273   :  { %v1402_v19 = vmul.f32 %v1262_v43, %v1018_v41  ;;  %v957_v10 = vsub.f32 %v893_v55, %v925_v42  ;;  %v6042_v43 = vld [vmem:[#allocation22_spill] sm:$0xff] }
 0x274   :  { %v1266_v21 = vmul.f32 0.5, %v1265_v8  ;;  %v4511_v26 = vmax.f32 %v1679_v18, 0.0  ;;  %v6040_v18 = vmax.f32 %v6039_v47, 0.0 }
 0x275   :  { %v1438_v3 = vmul.f32 %v4502_v54, %v1402_v19  ;;  %v989_v59 = vmax.f32 %v957_v10, 0.0 }
 0x276   :  { %v1267_v39 = vsub.f32 1.5, %v1266_v21  ;;  %v726_v13 = vpop.xlane.xlu0 %725  ;;  %1790 = vadd.xlane.f32.xlu2 %v4511_v26  ;;  %v1854_v57 = vmul.f32 %v4511_v26, %v4511_v26  ;;  %v4537_v55 = vadd.f32 %v1473_v25, %v6040_v18  ;;  %v6043_v21 = vmax.f32 %v6042_v43, 0.0 }
 0x277   :  { %v4519_v11 = vmul.f32 0.0078125, %v726_v13  ;;  %v3354_v34 = vpop.eup %3353  ;;  %v1474_v24 = vadd.f32 %v4515_v56, %v1438_v3  ;;  %v4531_v48 = vadd.f32 1e-05, %v989_v59 }
 0x278   :  { %v1268_v14 = vmul.f32 %v4479_v30, %v1267_v39  ;;  %v822_v5 = vpop.xlane.xlu2 %821  ;;  %v1274_v6 = vmul.f32 %v3354_v34, %v1052_v46  ;;  %1886 = vadd.xlane.f32.xlu0 %v1854_v57  ;;  %6041 = vst [vmem:[#allocation35_spill] sm:$0xff] %v4537_v55  ;;  %v1019_v39 = vsub.f32 %v4085_v38, %v4444_v37  ;;  %vm1280_vm0 = vweird.f32 %v3354_v34 }
 0x279   :  { %v926_v8 = vmul.f32 %v4519_v11, %v4519_v11  ;;  %v894_v42 = vmul.f32 0.0078125, %v822_v5  ;;  %v1680_v0 = vpop.f32.mrf.mxu2  ;;  %v4541_v60 = vadd.f32 %v1474_v24, %v6043_v21  ;;  %3355 = vrsqrt.f32 %v4531_v48  ;;  %v644_v5 = vpop.f32.mrf.mxu1  ;;  %vm4558_vm1 = vmor %vm1279_vm15, %vm1280_vm0 }
 0x27a   :  { %v1275_v19 = vmul.f32 %v3354_v34, %v1274_v6  ;;  %v1681_v10 = vadd.f32 %v4484_v4, %v1680_v0  ;;  %v1272_v25 = vsel %vm4527_vm14, %v4479_v30, %v1268_v14  ;;  %v1020_v21 = vsub.f32 %v4119_v15, %v4454_v28 }
 0x27b   :  { %6044 = vst [vmem:[#allocation36_spill] sm:$0xff] %v4541_v60  ;;  %v958_v13 = vsub.f32 %v894_v42, %v926_v8  ;;  %v1592_v3 = vpack.c.bf16 %v4541_v60, %v4537_v55  ;;  %v1403_v37 = vmul.f32 %v1272_v25, %v1019_v39  ;;  %v645_v42 = vadd.f32 %v4310_v12, %v644_v5 }
 0x27c   :  { %v1276_v59 = vmul.f32 0.5, %v1275_v19  ;;  %v4552_v57 = vmax.f32 %v1681_v10, 0.0  ;;  %vm1289_vm2 = vweird.f32 %v4531_v48 }
 0x27d   :  { %v990_v24 = vmax.f32 %v958_v13, 0.0  ;;  %v1439_v25 = vmul.f32 %v4502_v54, %v1403_v37 }
 0x27e   :  { %v728_v6 = vpop.xlane.xlu0 %727  ;;  %v1277_v0 = vsub.f32 1.5, %v1276_v59  ;;  %v1855_v38 = vmul.f32 %v4552_v57, %v4552_v57  ;;  %1722 = vmatmul.bf16.gmra.mxu2 %v1592_v3 }
 0x27f   :  { %v4554_v47 = vmul.f32 0.0078125, %v728_v6  ;;  %v4562_v30 = vadd.f32 1e-05, %v990_v24  ;;  %v4564_v14 = vpop.eup %3355  ;;  %v4580_v24 = vmax.f32 %v645_v42, 0.0  ;;  %v772_v6 = vmul.f32 %v4349_v20, %v4349_v20 }
 0x280   :  { %v824_v46 = vpop.xlane.xlu2 %823  ;;  %v1278_v41 = vmul.f32 %v3354_v34, %v1277_v0  ;;  %1888 = vadd.xlane.f32.xlu1 %v1855_v38  ;;  %1792 = vadd.xlane.f32.xlu0 %v4552_v57  ;;  %v1284_v19 = vmul.f32 %v4564_v14, %v4531_v48  ;;  %vm1290_vm3 = vweird.f32 %v4564_v14 }
 0x281   :  { %v927_v18 = vmul.f32 %v4554_v47, %v4554_v47  ;;  %v895_v43 = vmul.f32 0.0078125, %v824_v46  ;;  %3357 = vrsqrt.f32 %v4562_v30  ;;  %v1683_v10 = vpop.f32.mrf.mxu2  ;;  %vm4597_vm4 = vmor %vm1289_vm2, %vm1290_vm3  ;;  %vm1299_vm5 = vweird.f32 %v4562_v30 }
 0x282   :  { %v1684_v13 = vadd.f32 %v4484_v4, %v1683_v10  ;;  %v1282_v3 = vsel %vm4558_vm1, %v3354_v34, %v1278_v41  ;;  %v1285_v59 = vmul.f32 %v4564_v14, %v1284_v19  ;;  %v1475_v41 = vadd.f32 %v4515_v56, %v1439_v25 }
 0x283   :  { %v959_v39 = vsub.f32 %v895_v43, %v927_v18  ;;  %v1404_v5 = vmul.f32 %v1282_v3, %v1020_v21  ;;  %v643_v25 = vadd.f32 %v4310_v12, %v4508_v22 }
 0x284   :  { %v4582_v28 = vmax.f32 %v1684_v13, 0.0  ;;  %v1286_v0 = vmul.f32 0.5, %v1285_v59 }
 0x285   :  { %v991_v15 = vmax.f32 %v959_v39, 0.0  ;;  %v1440_v34 = vmul.f32 %v4502_v54, %v1404_v5  ;;  %v6049_v5 = vld [vmem:[#allocation23_spill] sm:$0xff] }
 0x286   :  { %v730_v38 = vpop.xlane.xlu1 %729  ;;  %v1856_v46 = vmul.f32 %v4582_v28, %v4582_v28  ;;  %v1287_v18 = vsub.f32 1.5, %v1286_v0 }
 0x287   :  { %v4589_v37 = vadd.f32 1e-05, %v991_v15  ;;  %v4591_v8 = vmul.f32 0.0078125, %v730_v38  ;;  %v3358_v42 = vpop.eup %3357  ;;  %v1476_v21 = vadd.f32 %v4515_v56, %v1440_v34  ;;  %v6050_v15 = vmax.f32 %v6049_v5, 0.0  ;;  %v6052_v38 = vld [vmem:[#allocation24_spill] sm:$0xff] }
 0x288   :  { %v826_v43 = vpop.xlane.xlu0 %825  ;;  %v1294_v19 = vmul.f32 %v3358_v42, %v4562_v30  ;;  %741 = vadd.xlane.f32.xlu1 %v4580_v24  ;;  %833 = vadd.xlane.f32.xlu0 %v772_v6  ;;  %v1288_v10 = vmul.f32 %v4564_v14, %v1287_v18  ;;  %v6053_v34 = vmax.f32 %v6052_v38, 0.0  ;;  %v1021_v6 = vsub.f32 %v4149_v52, %v4492_v63 }
 0x289   :  { %3359 = vrsqrt.f32 %v4589_v37  ;;  %v928_v39 = vmul.f32 %v4591_v8, %v4591_v8  ;;  %1890 = vadd.xlane.f32.xlu2 %v1856_v46  ;;  %v896_v13 = vmul.f32 0.0078125, %v826_v43  ;;  %v1685_v3 = vpop.f32.mrf.mxu2  ;;  %v4611_v0 = vadd.f32 %v1475_v41, %v6050_v15 }
 0x28a   :  { %v1295_v59 = vmul.f32 %v3358_v42, %v1294_v19  ;;  %v4615_v55 = vadd.f32 %v1476_v21, %v6053_v34  ;;  %v1686_v46 = vadd.f32 %v4484_v4, %v1685_v3  ;;  %v1292_v43 = vsel %vm4597_vm4, %v4564_v14, %v1288_v10 }
 0x28b   :  { %6051 = vst [vmem:[#allocation21_spill] sm:$0xff] %v4611_v0  ;;  %v960_v18 = vsub.f32 %v896_v13, %v928_v39  ;;  %vm1300_vm6 = vweird.f32 %v3358_v42  ;;  %v4628_v5 = vmax.f32 %v643_v25, 0.0  ;;  %v1405_v39 = vmul.f32 %v1292_v43, %v1021_v6 }
 0x28c   :  { %6054 = vst [vmem:[#allocation22_spill] sm:$0xff] %v4615_v55  ;;  %v1296_v12 = vmul.f32 0.5, %v1295_v59  ;;  %v1593_v22 = vpack.c.bf16 %v4615_v55, %v4611_v0  ;;  %vm4632_vm7 = vmor %vm1299_vm5, %vm1300_vm6  ;;  %v4638_v10 = vmax.f32 %v1686_v46, 0.0  ;;  %v1022_v15 = vsub.f32 %v4180_v16, %v4519_v11 }
 0x28d   :  { %v992_v41 = vmax.f32 %v960_v18, 0.0  ;;  %v1441_v46 = vmul.f32 %v4502_v54, %v1405_v39  ;;  %vm1309_vm8 = vweird.f32 %v4589_v37 }
 0x28e   :  { %v732_v21 = vpop.xlane.xlu1 %731  ;;  %v1297_v52 = vsub.f32 1.5, %v1296_v12  ;;  %1727 = vmatmul.bf16.gmra.mxu2 %v1593_v22 }
 0x28f   :  { %v4626_v19 = vpop.eup %3359  ;;  %v4630_v63 = vmul.f32 0.0078125, %v732_v21  ;;  %v1056_v14 = vadd.f32 1e-05, %v992_v41  ;;  %v773_v41 = vmul.f32 %v4628_v5, %v4628_v5  ;;  %v1477_v39 = vadd.f32 %v4515_v56, %v1441_v46 }
 0x290   :  { %v1304_v30 = vmul.f32 %v4626_v19, %v4589_v37  ;;  %v828_v13 = vpop.xlane.xlu0 %827  ;;  %v1298_v3 = vmul.f32 %v3358_v42, %v1297_v52  ;;  %739 = vadd.xlane.f32.xlu0 %v4628_v5  ;;  %1794 = vadd.xlane.f32.xlu1 %v4582_v28  ;;  %vm1310_vm9 = vweird.f32 %v4626_v19 }
 0x291   :  { %v929_v25 = vmul.f32 %v4630_v63, %v4630_v63  ;;  %v897_v59 = vmul.f32 0.0078125, %v828_v13  ;;  %3361 = vrsqrt.f32 %v1056_v14  ;;  %1796 = vadd.xlane.f32.xlu2 %v4638_v10  ;;  %v1688_v6 = vpop.f32.mrf.mxu2  ;;  %vm4664_vm10 = vmor %vm1309_vm8, %vm1310_vm9  ;;  %vm1319_vm11 = vweird.f32 %v1056_v14 }
 0x292   :  { %v1305_v38 = vmul.f32 %v4626_v19, %v1304_v30  ;;  %v1302_v18 = vsel %vm4632_vm7, %v3358_v42, %v1298_v3  ;;  %v1857_v42 = vmul.f32 %v4638_v10, %v4638_v10  ;;  %v1689_v3 = vadd.f32 %v4484_v4, %v1688_v6 }
 0x293   :  { %v961_v34 = vsub.f32 %v897_v59, %v929_v25  ;;  %v1406_v12 = vmul.f32 %v1302_v18, %v1022_v15  ;;  %v774_v25 = vmul.f32 %v4580_v24, %v4580_v24 }
 0x294   :  { %v1306_v43 = vmul.f32 0.5, %v1305_v38 }
 0x295   :  { %v993_v22 = vmax.f32 %v961_v34, 0.0  ;;  %v1442_v21 = vmul.f32 %v4502_v54, %v1406_v12  ;;  %v6059_v12 = vld [vmem:[#allocation25_spill] sm:$0xff] }
 0x296   :  { %v1307_v16 = vsub.f32 1.5, %v1306_v43  ;;  %v734_v11 = vpop.xlane.xlu2 %733 }
 0x297   :  { %v4656_v52 = vadd.f32 1e-05, %v993_v22  ;;  %v4658_v48 = vmul.f32 0.0078125, %v734_v11  ;;  %v3362_v37 = vpop.eup %3361  ;;  %v1478_v15 = vadd.f32 %v4515_v56, %v1442_v21  ;;  %v6060_v22 = vmax.f32 %v6059_v12, 0.0  ;;  %v6062_v11 = vld [vmem:[#allocation26_spill] sm:$0xff] }
 0x298   :  { %v1308_v30 = vmul.f32 %v4626_v19, %v1307_v16  ;;  %v830_v59 = vpop.xlane.xlu1 %829  ;;  %v1314_v38 = vmul.f32 %v3362_v37, %v1056_v14  ;;  %1892 = vadd.xlane.f32.xlu0 %v1857_v42  ;;  %835 = vadd.xlane.f32.xlu1 %v773_v41  ;;  %v6063_v21 = vmax.f32 %v6062_v11, 0.0  ;;  %v1023_v41 = vsub.f32 %v4202_v53, %v4554_v47 }
 0x299   :  { %3363 = vrsqrt.f32 %v4656_v52  ;;  %v930_v34 = vmul.f32 %v4658_v48, %v4658_v48  ;;  %837 = vadd.xlane.f32.xlu2 %v774_v25  ;;  %v898_v18 = vmul.f32 0.0078125, %v830_v59  ;;  %v1690_v43 = vpop.f32.mrf.mxu2  ;;  %v4680_v16 = vadd.f32 %v1477_v39, %v6060_v22 }
 0x29a   :  { %v1312_v6 = vsel %vm4664_vm10, %v4626_v19, %v1308_v30  ;;  %v1315_v46 = vmul.f32 %v3362_v37, %v1314_v38  ;;  %v4684_v0 = vadd.f32 %v1478_v15, %v6063_v21  ;;  %v4688_v42 = vmax.f32 %v1689_v3, 0.0 }
 0x29b   :  { %6061 = vst [vmem:[#allocation23_spill] sm:$0xff] %v4680_v16  ;;  %v1691_v25 = vadd.f32 %v4484_v4, %v1690_v43  ;;  %v962_v59 = vsub.f32 %v898_v18, %v930_v34  ;;  %vm1320_vm12 = vweird.f32 %v3362_v37  ;;  %v1407_v30 = vmul.f32 %v1312_v6, %v1023_v41 }
 0x29c   :  { %6064 = vst [vmem:[#allocation24_spill] sm:$0xff] %v4684_v0  ;;  %v1316_v13 = vmul.f32 0.5, %v1315_v46  ;;  %v1594_v19 = vpack.c.bf16 %v4684_v0, %v4680_v16  ;;  %vm4695_vm13 = vmor %vm1319_vm11, %vm1320_vm12  ;;  %v1858_v14 = vmul.f32 %v4688_v42, %v4688_v42  ;;  %v1024_v34 = vsub.f32 %v4237_v44, %v4591_v8 }
 0x29d   :  { %v994_v39 = vmax.f32 %v962_v59, 0.0  ;;  %v4693_v15 = vmax.f32 %v1691_v25, 0.0  ;;  %v1443_v6 = vmul.f32 %v4502_v54, %v1407_v30  ;;  %vm1329_vm14 = vweird.f32 %v4656_v52 }
 0x29e   :  { %v1317_v12 = vsub.f32 1.5, %v1316_v13  ;;  %1732 = vmatmul.bf16.gmra.mxu2 %v1594_v19 }
 0x29f   :  { %v3364_v38 = vpop.eup %3363  ;;  %v1058_v47 = vadd.f32 1e-05, %v994_v39  ;;  %v1479_v44 = vadd.f32 %v4515_v56, %v1443_v6  ;;  %v1859_v13 = vmul.f32 %v4693_v15, %v4693_v15 }
 0x2a0   :  { %v1324_v53 = vmul.f32 %v3364_v38, %v4656_v52  ;;  %v1318_v3 = vmul.f32 %v3362_v37, %v1317_v12  ;;  %1800 = vadd.xlane.f32.xlu1 %v4693_v15  ;;  %1798 = vadd.xlane.f32.xlu0 %v4688_v42  ;;  %vm1330_vm15 = vweird.f32 %v3364_v38  ;;  %v6069_v12 = vld [vmem:[#allocation27_spill] sm:$0xff] }
 0x2a1   :  { %3365 = vrsqrt.f32 %v1058_v47  ;;  %1894 = vadd.xlane.f32.xlu2 %v1858_v14  ;;  %v1693_v43 = vpop.f32.mrf.mxu2  ;;  %vm4717_vm0 = vmor %vm1329_vm14, %vm1330_vm15  ;;  %v6070_v22 = vmax.f32 %v6069_v12, 0.0  ;;  %v6072_v14 = vld [vmem:[#allocation28_spill] sm:$0xff]  ;;  %vm1339_vm1 = vweird.f32 %v1058_v47 }
 0x2a2   :  { %v1325_v18 = vmul.f32 %v3364_v38, %v1324_v53  ;;  %v1322_v46 = vsel %vm4695_vm13, %v3362_v37, %v1318_v3  ;;  %v1694_v21 = vadd.f32 %v4484_v4, %v1693_v43  ;;  %v6073_v3 = vmax.f32 %v6072_v14, 0.0 }
 0x2a3   :  { %v1408_v41 = vmul.f32 %v1322_v46, %v1024_v34  ;;  %v4725_v53 = vadd.f32 %v1479_v44, %v6070_v22  ;;  %v1025_v43 = vsub.f32 %v4257_v35, %v4630_v63 }
 0x2a4   :  { %v1326_v11 = vmul.f32 0.5, %v1325_v18  ;;  %v4713_v8 = vmax.f32 %v1694_v21, 0.0 }
 0x2a5   :  { %v1444_v59 = vmul.f32 %v4502_v54, %v1408_v41  ;;  %6071 = vst [vmem:[#allocation25_spill] sm:$0xff] %v4725_v53 }
 0x2a6   :  { %v1327_v25 = vsub.f32 1.5, %v1326_v11 }
 0x2a7   :  { %v3366_v19 = vpop.eup %3365  ;;  %v1480_v30 = vadd.f32 %v4515_v56, %v1444_v59 }
 0x2a8   :  { %v1328_v37 = vmul.f32 %v3364_v38, %v1327_v25  ;;  %v1334_v52 = vmul.f32 %v3366_v19, %v1058_v47  ;;  %1896 = vadd.xlane.f32.xlu0 %v1859_v13  ;;  %1802 = vadd.xlane.f32.xlu1 %v4713_v8  ;;  %vm1340_vm2 = vweird.f32 %v3366_v19  ;;  %v1026_v47 = vsub.f32 %v4293_v17, %v4658_v48  ;;  %v6075_v48 = vld [vmem:[#allocation29_spill] sm:$0xff] }
 0x2a9   :  { %v4729_v34 = vadd.f32 %v1480_v30, %v6073_v3  ;;  %v1695_v46 = vpop.f32.mrf.mxu2  ;;  %vm1341_vm3 = vmor %vm1339_vm1, %vm1340_vm2 }
 0x2aa   :  { %v1332_v18 = vsel %vm4717_vm0, %v3364_v38, %v1328_v37  ;;  %v1335_v6 = vmul.f32 %v3366_v19, %v1334_v52  ;;  %v1696_v11 = vadd.f32 %v4484_v4, %v1695_v46  ;;  %v1860_v38 = vmul.f32 %v4713_v8, %v4713_v8 }
 0x2ab   :  { %6074 = vst [vmem:[#allocation26_spill] sm:$0xff] %v4729_v34  ;;  %v1595_v21 = vpack.c.bf16 %v4729_v34, %v4725_v53  ;;  %v1409_v59 = vmul.f32 %v1332_v18, %v1025_v43 }
 0x2ac   :  { %v1336_v41 = vmul.f32 0.5, %v1335_v6  ;;  %v4738_v25 = vmax.f32 %v1696_v11, 0.0  ;;  %v6078_v6 = vld [vmem:[#allocation30_spill] sm:$0xff] }
 0x2ad   :  { %v1445_v13 = vmul.f32 %v4502_v54, %v1409_v59  ;;  %v6079_v46 = vmax.f32 %v6078_v6, 0.0 }
 0x2ae   :  { %v1337_v44 = vsub.f32 1.5, %v1336_v41  ;;  %1804 = vadd.xlane.f32.xlu2 %v4738_v25  ;;  %1737 = vmatmul.bf16.gmra.mxu2 %v1595_v21  ;;  %v1861_v35 = vmul.f32 %v4738_v25, %v4738_v25 }
 0x2af   :  { %v1481_v14 = vadd.f32 %v4515_v56, %v1445_v13 }
 0x2b0   :  { %v1338_v63 = vmul.f32 %v3366_v19, %v1337_v44  ;;  %1898 = vadd.xlane.f32.xlu0 %v1860_v38  ;;  %1900 = vadd.xlane.f32.xlu1 %v1861_v35 }
 0x2b1   :  { %v1698_v39 = vpop.f32.mrf.mxu2 }
 0x2b2   :  { %v1342_v37 = vsel %vm1341_vm3, %v3366_v19, %v1338_v63  ;;  %v1699_v30 = vadd.f32 %v4484_v4, %v1698_v39  ;;  %v6076_v19 = vmax.f32 %v6075_v48, 0.0  ;;  %v736_v39 = vpop.xlane.xlu1 %735 }
 0x2b3   :  { %v1410_v52 = vmul.f32 %v1342_v37, %v1026_v47 }
 0x2b4   :  { %v4749_v12 = vmax.f32 %v1699_v30, 0.0  ;;  %v4759_v18 = vadd.f32 %v1481_v14, %v6076_v19 }
 0x2b5   :  { %v1446_v22 = vmul.f32 %v4502_v54, %v1410_v52 }
 0x2b6   :  { %1806 = vadd.xlane.f32.xlu2 %v4749_v12  ;;  %v1862_v3 = vmul.f32 %v4749_v12, %v4749_v12  ;;  %6077 = vst [vmem:[#allocation27_spill] sm:$0xff] %v4759_v18 }
 0x2b7   :  { %v1482_v17 = vadd.f32 %v4515_v56, %v1446_v22  ;;  %v4785_v22 = vmul.f32 0.0078125, %v736_v39 }
 0x2b8   :  { %1902 = vadd.xlane.f32.xlu1 %v1862_v3  ;;  %v832_v3 = vpop.xlane.xlu2 %831 }
 0x2b9   :  { %v4763_v43 = vadd.f32 %v1482_v17, %v6079_v46  ;;  %v1700_v11 = vpop.f32.mrf.mxu2  ;;  %v899_v48 = vmul.f32 0.0078125, %v832_v3  ;;  %v931_v19 = vmul.f32 %v4785_v22, %v4785_v22  ;;  %v3194_v3 = vld [vmem:[#allocation12 + $0x28] sm:$0xff] }
 0x2ba   :  { %v1701_v21 = vadd.f32 %v4484_v4, %v1700_v11 }
 0x2bb   :  { %6080 = vst [vmem:[#allocation28_spill] sm:$0xff] %v4763_v43  ;;  %v1596_v41 = vpack.c.bf16 %v4763_v43, %v4759_v18  ;;  %v963_v11 = vsub.f32 %v899_v48, %v931_v19  ;;  %v3193_v19 = vld [vmem:[#allocation12 + $0x20] sm:$0xff] }
 0x2bc   :  { %v4768_v59 = vmax.f32 %v1701_v21, 0.0 }
 0x2be   :  { %1808 = vadd.xlane.f32.xlu0 %v4768_v59  ;;  %1742 = vmatmul.bf16.gmra.mxu2 %v1596_v41  ;;  %v1863_v44 = vmul.f32 %v4768_v59, %v4768_v59 }
 0x2c0   :  { %1904 = vadd.xlane.f32.xlu2 %v1863_v44  ;;  %v3196_v44 = vld [vmem:[#allocation12 + $0x38] sm:$0xff]  ;;  %v738_v39 = vpop.xlane.xlu2 %737 }
 0x2c1   :  { %v1703_v38 = vpop.f32.mrf.mxu2  ;;  %2780 = vmatpush.bf16.msra.mxu3 %v3196_v44 }
 0x2c2   :  { %v1704_v35 = vadd.f32 %v4484_v4, %v1703_v38  ;;  %v995_v38 = vmax.f32 %v963_v11, 0.0 }
 0x2c4   :  { %v4774_v63 = vmax.f32 %v1704_v35, 0.0 }
 0x2c6   :  { %1810 = vadd.xlane.f32.xlu0 %v4774_v63  ;;  %v1864_v47 = vmul.f32 %v4774_v63, %v4774_v63 }
 0x2c8   :  { %1906 = vadd.xlane.f32.xlu2 %v1864_v47 }
 0x2c9   :  { %v1705_v13 = vpop.f32.mrf.mxu2 }
 0x2ca   :  { %v1706_v37 = vadd.f32 %v4484_v4, %v1705_v13  ;;  %v3195_v13 = vld [vmem:[#allocation12 + $0x30] sm:$0xff] }
 0x2cb   :  { %2781 = vmatpush.bf16.msra.mxu3 %v3195_v13 }
 0x2cc   :  { %v4780_v30 = vmax.f32 %v1706_v37, 0.0  ;;  %v4801_v37 = vadd.f32 1e-05, %v995_v38 }
 0x2ce   :  { %1812 = vadd.xlane.f32.xlu1 %v4780_v30  ;;  %v1865_v52 = vmul.f32 %v4780_v30, %v4780_v30  ;;  %3367 = vrsqrt.f32 %v4801_v37  ;;  %vm1349_vm4 = vweird.f32 %v4801_v37 }
 0x2cf   :  { %2782 = vmatpush.bf16.msra.mxu3 %v3194_v3 }
 0x2d0   :  { %1908 = vadd.xlane.f32.xlu0 %v1865_v52 }
 0x2d1   :  { %v1708_v14 = vpop.f32.mrf.mxu2 }
 0x2d2   :  { %v1709_v17 = vadd.f32 %v4484_v4, %v1708_v14 }
 0x2d3   :  { %2783 = vmatpush.bf16.msra.mxu3 %v3193_v19 }
 0x2d4   :  { %v4790_v6 = vmax.f32 %v1709_v17, 0.0  ;;  %v4810_v11 = vpop.eup %3367 }
 0x2d5   :  { %vm1350_vm5 = vweird.f32 %v4810_v11 }
 0x2d6   :  { %6081 = vst [vmem:[#allocation29_spill] sm:$0xff] %v4790_v6  ;;  %1814 = vadd.xlane.f32.xlu1 %v4790_v6  ;;  %v1866_v46 = vmul.f32 %v4790_v6, %v4790_v6  ;;  %vm4855_vm6 = vmor %vm1349_vm4, %vm1350_vm5 }
 0x2d8   :  { %1910 = vadd.xlane.f32.xlu0 %v1866_v46 }
 0x2d9   :  { %v1710_v21 = vpop.f32.mrf.mxu2 }
 0x2da   :  { %v1711_v41 = vadd.f32 %v4484_v4, %v1710_v21 }
 0x2dc   :  { %v4796_v35 = vmax.f32 %v1711_v41, 0.0 }
 0x2de   :  { %1816 = vadd.xlane.f32.xlu2 %v4796_v35  ;;  %v1867_v47 = vmul.f32 %v4796_v35, %v4796_v35 }
 0x2e0   :  { %1912 = vadd.xlane.f32.xlu1 %v1867_v47  ;;  %v3192_v47 = vld [vmem:[#allocation12 + $0x18] sm:$0xff] }
 0x2e1   :  { %v1713_v52 = vpop.f32.mrf.mxu2  ;;  %2784 = vmatpush.bf16.msra.mxu3 %v3192_v47  ;;  %v3190_v47 = vld [vmem:[#allocation12 + $0x8] sm:$0xff] }
 0x2e2   :  { %v1714_v14 = vadd.f32 %v4484_v4, %v1713_v52 }
 0x2e4   :  { %v4805_v17 = vmax.f32 %v1714_v14, 0.0  ;;  %v1344_v14 = vmul.f32 %v4810_v11, %v4801_v37 }
 0x2e6   :  { %6082 = vst [vmem:[#allocation30_spill] sm:$0xff] %v4805_v17  ;;  %1818 = vadd.xlane.f32.xlu2 %v4805_v17  ;;  %v1868_v48 = vmul.f32 %v4805_v17, %v4805_v17  ;;  %v1345_v18 = vmul.f32 %v4810_v11, %v1344_v14 }
 0x2e8   :  { %1914 = vadd.xlane.f32.xlu1 %v1868_v48 }
 0x2e9   :  { %v1791_v46 = vpop.xlane.xlu2 %1790  ;;  %v1715_v41 = vpop.f32.mrf.mxu2 }
 0x2ea   :  { %v4812_v21 = vmul.f32 0.0078125, %v1791_v46  ;;  %v1716_v44 = vadd.f32 %v4484_v4, %v1715_v41  ;;  %v3191_v46 = vld [vmem:[#allocation12 + $0x10] sm:$0xff] }
 0x2eb   :  { %v1887_v38 = vpop.xlane.xlu0 %1886  ;;  %2785 = vmatpush.bf16.msra.mxu3 %v3191_v46 }
 0x2ec   :  { %v2014_v13 = vmul.f32 %v4812_v21, %v4812_v21  ;;  %v1982_v52 = vmul.f32 0.0078125, %v1887_v38  ;;  %v4819_v3 = vmax.f32 %v1716_v44, 0.0 }
 0x2ee   :  { %6083 = vst [vmem:[#allocation43_spill] sm:$0xff] %v4819_v3  ;;  %v2046_v48 = vsub.f32 %v1982_v52, %v2014_v13  ;;  %1820 = vadd.xlane.f32.xlu0 %v4819_v3  ;;  %v1869_v19 = vmul.f32 %v4819_v3, %v4819_v3  ;;  %v1346_v52 = vmul.f32 0.5, %v1345_v18 }
 0x2ef   :  { %2786 = vmatpush.bf16.msra.mxu3 %v3190_v47 }
 0x2f0   :  { %v2078_v41 = vmax.f32 %v2046_v48, 0.0  ;;  %1916 = vadd.xlane.f32.xlu2 %v1869_v19 }
 0x2f1   :  { %v1718_v38 = vpop.f32.mrf.mxu2 }
 0x2f2   :  { %v4825_v43 = vadd.f32 1e-05, %v2078_v41  ;;  %v1719_v53 = vadd.f32 %v4484_v4, %v1718_v38  ;;  %v3189_v41 = vld [vmem:[#allocation12] sm:$0xff]  ;;  %v1347_v38 = vsub.f32 1.5, %v1346_v52 }
 0x2f3   :  { %v1793_v44 = vpop.xlane.xlu0 %1792  ;;  %v1889_v34 = vpop.xlane.xlu1 %1888  ;;  %2787 = vmatpush.bf16.msra.mxu3 %v3189_v41 }
 0x2f4   :  { %3369 = vrsqrt.f32 %v4825_v43  ;;  %v4829_v13 = vmul.f32 0.0078125, %v1793_v44  ;;  %v4831_v16 = vmax.f32 %v1719_v53, 0.0  ;;  %v1983_v48 = vmul.f32 0.0078125, %v1889_v34 }
 0x2f5   :  { %v4840_v44 = vmul.f32 0.0078125, %v738_v39  ;;  %v1348_v41 = vmul.f32 %v4810_v11, %v1347_v38  ;;  %vm2180_vm8 = vweird.f32 %v4825_v43 }
 0x2f6   :  { %6084 = vst [vmem:[#allocation44_spill] sm:$0xff] %v4831_v16  ;;  %v2015_v14 = vmul.f32 %v4829_v13, %v4829_v13  ;;  %1822 = vadd.xlane.f32.xlu0 %v4831_v16  ;;  %v1870_v19 = vmul.f32 %v4831_v16, %v4831_v16 }
 0x2f7   :  { %v932_v52 = vmul.f32 %v4840_v44, %v4840_v44  ;;  %v1352_v38 = vsel %vm4855_vm6, %v4810_v11, %v1348_v41 }
 0x2f8   :  { %v2047_v46 = vsub.f32 %v1983_v48, %v2015_v14  ;;  %1918 = vadd.xlane.f32.xlu2 %v1870_v19 }
 0x2f9   :  { %v1720_v18 = vpop.f32.mrf.mxu2 }
 0x2fa   :  { %v4838_v0 = vpop.eup %3369  ;;  %v2079_v53 = vmax.f32 %v2047_v46, 0.0  ;;  %v1721_v47 = vadd.f32 %v4484_v4, %v1720_v18 }
 0x2fb   :  { %v2175_v34 = vmul.f32 %v4838_v0, %v4825_v43  ;;  %v834_v14 = vpop.xlane.xlu0 %833  ;;  %v742_v48 = vpop.xlane.xlu1 %741  ;;  %vm2181_vm7 = vweird.f32 %v4838_v0 }
 0x2fc   :  { %v4849_v19 = vadd.f32 1e-05, %v2079_v53  ;;  %v900_v39 = vmul.f32 0.0078125, %v834_v14  ;;  %v1891_v46 = vpop.xlane.xlu2 %1890  ;;  %v4853_v55 = vmax.f32 %v1721_v47, 0.0  ;;  %vm4899_vm10 = vmor %vm2180_vm8, %vm2181_vm7 }
 0x2fd   :  { %v2176_v37 = vmul.f32 %v4838_v0, %v2175_v34  ;;  %v1027_v34 = vsub.f32 %v4322_v23, %v4785_v22  ;;  %v1984_v23 = vmul.f32 0.0078125, %v1891_v46  ;;  %v4877_v22 = vmul.f32 0.0078125, %v742_v48 }
 0x2fe   :  { %6085 = vst [vmem:[#allocation45_spill] sm:$0xff] %v4853_v55  ;;  %3371 = vrsqrt.f32 %v4849_v19  ;;  %v964_v18 = vsub.f32 %v900_v39, %v932_v52  ;;  %1824 = vadd.xlane.f32.xlu1 %v4853_v55  ;;  %v1871_v53 = vmul.f32 %v4853_v55, %v4853_v55  ;;  %v2110_v48 = vsub.f32 %v4511_v26, %v4812_v21 }
 0x2ff   :  { %v2177_v36 = vmul.f32 0.5, %v2176_v37  ;;  %v1411_v62 = vmul.f32 %v1352_v38, %v1027_v34  ;;  %vm2190_vm9 = vweird.f32 %v4849_v19 }
 0x300   :  { %v996_v14 = vmax.f32 %v964_v18, 0.0  ;;  %1920 = vadd.xlane.f32.xlu0 %v1871_v53 }
 0x301   :  { %v1723_v31 = vpop.f32.mrf.mxu2  ;;  %v2178_v16 = vsub.f32 1.5, %v2177_v36  ;;  %v1447_v38 = vmul.f32 %v4502_v54, %v1411_v62  ;;  %v934_v62 = vmul.f32 %v4877_v22, %v4877_v22 }
 0x302   :  { %v4868_v47 = vadd.f32 1e-05, %v996_v14  ;;  %v1724_v52 = vadd.f32 %v4484_v4, %v1723_v31 }
 0x303   :  { %v740_v39 = vpop.xlane.xlu0 %739  ;;  %v1795_v37 = vpop.xlane.xlu1 %1794  ;;  %v2179_v31 = vmul.f32 %v4838_v0, %v2178_v16  ;;  %v2111_v16 = vsub.f32 %v4552_v57, %v4829_v13 }
 0x304   :  { %v3372_v61 = vpop.eup %3371  ;;  %3373 = vrsqrt.f32 %v4868_v47  ;;  %v1797_v18 = vpop.xlane.xlu2 %1796  ;;  %v4872_v55 = vmul.f32 0.0078125, %v1795_v37  ;;  %v4875_v11 = vmax.f32 %v1724_v52, 0.0  ;;  %v4879_v41 = vmul.f32 0.0078125, %v740_v39 }
 0x305   :  { %v2185_v60 = vmul.f32 %v3372_v61, %v4849_v19  ;;  %v4891_v46 = vmul.f32 0.0078125, %v1797_v18  ;;  %vm2191_vm11 = vweird.f32 %v3372_v61  ;;  %vm1359_vm14 = vweird.f32 %v4868_v47 }
 0x306   :  { %6088 = vst [vmem:[#allocation46_spill] sm:$0xff] %v4875_v11  ;;  %v2016_v36 = vmul.f32 %v4872_v55, %v4872_v55  ;;  %1826 = vadd.xlane.f32.xlu1 %v4875_v11  ;;  %v1872_v14 = vmul.f32 %v4875_v11, %v4875_v11  ;;  %v933_v54 = vmul.f32 %v4879_v41, %v4879_v41  ;;  %vm2192_vm12 = vmor %vm2190_vm9, %vm2191_vm11 }
 0x307   :  { %v2186_v53 = vmul.f32 %v3372_v61, %v2185_v60 }
 0x308   :  { %v2048_v34 = vsub.f32 %v1984_v23, %v2016_v36  ;;  %1922 = vadd.xlane.f32.xlu0 %v1872_v14  ;;  %v2183_v23 = vsel %vm4899_vm10, %v4838_v0, %v2179_v31  ;;  %v2017_v36 = vmul.f32 %v4891_v46, %v4891_v46  ;;  %v4926_v0 = vld [vmem:[%s5888_s5 + $0x1] ss:$0 sm:$0xff] }
 0x309   :  { %v2187_v52 = vmul.f32 0.5, %v2186_v53  ;;  %v1725_v43 = vpop.f32.mrf.mxu2 }
 0x30a   :  { %v4897_v39 = vpop.eup %3373  ;;  %v2080_v26 = vmax.f32 %v2048_v34, 0.0  ;;  %v1726_v13 = vadd.f32 %v4484_v4, %v1725_v43 }
 0x30b   :  { %v2188_v57 = vsub.f32 1.5, %v2187_v52  ;;  %v1354_v21 = vmul.f32 %v4897_v39, %v4868_v47  ;;  %v1893_v18 = vpop.xlane.xlu0 %1892  ;;  %v836_v60 = vpop.xlane.xlu1 %835  ;;  %vm1360_vm13 = vweird.f32 %v4897_v39 }
 0x30c   :  { %v4915_v53 = vadd.f32 1e-05, %v2080_v26  ;;  %v1985_v14 = vmul.f32 0.0078125, %v1893_v18  ;;  %v838_v34 = vpop.xlane.xlu2 %837  ;;  %v901_v11 = vmul.f32 0.0078125, %v836_v60  ;;  %v4918_v9 = vmax.f32 %v1726_v13, 0.0  ;;  %vm4965_vm15 = vmor %vm1359_vm14, %vm1360_vm13 }
 0x30d   :  { %v2189_v52 = vmul.f32 %v3372_v61, %v2188_v57  ;;  %v1355_v17 = vmul.f32 %v4897_v39, %v1354_v21  ;;  %v902_v43 = vmul.f32 0.0078125, %v838_v34  ;;  %v2494_v26 = vmul.f32 %v2183_v23, %v2110_v48  ;;  %v4937_v48 = vld [vmem:[#allocation11 + $0x1] ss:$0 sm:$0xff] }
 0x30e   :  { %3375 = vrsqrt.f32 %v4915_v53  ;;  %v2049_v31 = vsub.f32 %v1985_v14, %v2017_v36  ;;  %v965_v37 = vsub.f32 %v901_v11, %v933_v54  ;;  %1828 = vadd.xlane.f32.xlu2 %v4918_v9  ;;  %v1873_v21 = vmul.f32 %v4918_v9, %v4918_v9 }
 0x30f   :  { %v1356_v57 = vmul.f32 0.5, %v1355_v17  ;;  %v966_v18 = vsub.f32 %v902_v43, %v934_v62  ;;  %v2193_v13 = vsel %vm2192_vm12, %v3372_v61, %v2189_v52  ;;  %v2531_v17 = vmul.f32 %v4926_v0, %v2494_v26 }
 0x310   :  { %v2081_v19 = vmax.f32 %v2049_v31, 0.0  ;;  %v997_v60 = vmax.f32 %v965_v37, 0.0  ;;  %v2495_v34 = vmul.f32 %v2193_v13, %v2111_v16  ;;  %1924 = vadd.xlane.f32.xlu1 %v1873_v21  ;;  %v1483_v23 = vadd.f32 %v4515_v56, %v1447_v38 }
 0x311   :  { %v1357_v3 = vsub.f32 1.5, %v1356_v57  ;;  %v998_v1 = vmax.f32 %v966_v18, 0.0  ;;  %v1728_v11 = vpop.f32.mrf.mxu2  ;;  %v2568_v38 = vadd.f32 %v4937_v48, %v2531_v17  ;;  %v1028_v37 = vsub.f32 %v4349_v20, %v4840_v44  ;;  %v6093_v18 = vld [vmem:[#allocation31_spill] sm:$0xff] }
 0x312   :  { %v4932_v6 = vadd.f32 1e-05, %v2081_v19  ;;  %v4934_v40 = vadd.f32 1e-05, %v997_v60  ;;  %v1729_v61 = vadd.f32 %v4484_v4, %v1728_v11  ;;  %v2532_v31 = vmul.f32 %v4926_v0, %v2495_v34 }
 0x313   :  { %v4940_v62 = vadd.f32 1e-05, %v998_v1  ;;  %v1799_v54 = vpop.xlane.xlu0 %1798  ;;  %v1801_v16 = vpop.xlane.xlu1 %1800  ;;  %v1358_v14 = vmul.f32 %v4897_v39, %v1357_v3  ;;  %v6094_v21 = vmax.f32 %v6093_v18, 0.0  ;;  %vm2200_vm0 = vweird.f32 %v4915_v53 }
 0x314   :  { %v4944_v36 = vpop.eup %3375  ;;  %3377 = vrsqrt.f32 %v4932_v6  ;;  %v4948_v52 = vmul.f32 0.0078125, %v1799_v54  ;;  %v1895_v43 = vpop.xlane.xlu2 %1894  ;;  %v4956_v56 = vmax.f32 %v1729_v61, 0.0  ;;  %v2569_v60 = vadd.f32 %v4937_v48, %v2532_v31 }
 0x315   :  { %v2195_v1 = vmul.f32 %v4944_v36, %v4915_v53  ;;  %3379 = vrsqrt.f32 %v4940_v62  ;;  %v1986_v57 = vmul.f32 0.0078125, %v1895_v43  ;;  %v4972_v13 = vadd.f32 %v1483_v23, %v6094_v21 }
 0x316   :  { %3381 = vrsqrt.f32 %v4934_v40  ;;  %v2018_v3 = vmul.f32 %v4948_v52, %v4948_v52  ;;  %v1362_v19 = vsel %vm4965_vm15, %v4897_v39, %v1358_v14  ;;  %1830 = vadd.xlane.f32.xlu2 %v4956_v56  ;;  %v1874_v44 = vmul.f32 %v4956_v56, %v4956_v56 }
 0x317   :  { %v2196_v26 = vmul.f32 %v4944_v36, %v2195_v1  ;;  %v4985_v61 = vmul.f32 0.0078125, %v1801_v16  ;;  %v2632_v14 = vadd.f32 %v2568_v38, %v4096_v58  ;;  %v2633_v43 = vadd.f32 %v2569_v60, %v4103_v2 }
 0x318   :  { %v2050_v17 = vsub.f32 %v1986_v57, %v2018_v3  ;;  %1926 = vadd.xlane.f32.xlu1 %v1874_v44  ;;  %v1412_v57 = vmul.f32 %v1362_v19, %v1028_v37  ;;  %vm2201_vm1 = vweird.f32 %v4944_v36  ;;  %vm1369_vm2 = vweird.f32 %v4934_v40 }
 0x319   :  { %v2197_v11 = vmul.f32 0.5, %v2196_v26  ;;  %v1730_v23 = vpop.f32.mrf.mxu2  ;;  %v2696_v2 = vpack.c.bf16 %v2633_v43, %v2632_v14  ;;  %v2019_v37 = vmul.f32 %v4985_v61, %v4985_v61  ;;  %vm1379_vm4 = vweird.f32 %v4940_v62  ;;  %vm5033_vm5 = vmor %vm2200_vm0, %vm2201_vm1 }
 0x31a   :  { %v4987_v54 = vpop.eup %3377  ;;  %v2082_v3 = vmax.f32 %v2050_v17, 0.0  ;;  %v1731_v58 = vadd.f32 %v4484_v4, %v1730_v23  ;;  %vm2210_vm10 = vweird.f32 %v4932_v6 }
 0x31b   :  { %v4994_v31 = vpop.eup %3379  ;;  %v2198_v1 = vsub.f32 1.5, %v2197_v11  ;;  %v2205_v16 = vmul.f32 %v4987_v54, %v4932_v6  ;;  %v1897_v47 = vpop.xlane.xlu0 %1896  ;;  %2788 = vmatmul.bf16.vlgmr.msra.gmra.mxu3 %v2696_v2  ;;  %vm2211_vm3 = vweird.f32 %v4987_v54  ;;  %v6105_v6 = vsub.f32 %v4628_v5, %v4879_v41 }
 0x31c   :  { %v1803_v26 = vpop.xlane.xlu1 %1802  ;;  %v4998_v18 = vpop.eup %3381  ;;  %v1374_v21 = vmul.f32 %v4994_v31, %v4940_v62  ;;  %v5012_v11 = vadd.f32 1e-05, %v2082_v3  ;;  %v5014_v17 = vmax.f32 %v1731_v58, 0.0  ;;  %v1987_v4 = vmul.f32 0.0078125, %v1897_v47  ;;  %vm5100_vm11 = vmor %vm2210_vm10, %vm2211_vm3 }
 0x31d   :  { %v2199_v38 = vmul.f32 %v4944_v36, %v2198_v1  ;;  %v2206_v44 = vmul.f32 %v4987_v54, %v2205_v16  ;;  %v1364_v60 = vmul.f32 %v4998_v18, %v4934_v40  ;;  %v5017_v43 = vmul.f32 0.0078125, %v1803_v26  ;;  %v5022_v1 = vld [vmem:[%s5888_s5] ss:$0 sm:$0xff] }
 0x31e   :  { %v1375_v19 = vmul.f32 %v4994_v31, %v1374_v21  ;;  %6095 = vst [vmem:[#allocation31_spill] sm:$0xff] %v5014_v17  ;;  %v1448_v16 = vmul.f32 %v5022_v1, %v1412_v57  ;;  %3383 = vrsqrt.f32 %v5012_v11  ;;  %1832 = vadd.xlane.f32.xlu0 %v5014_v17  ;;  %vm1380_vm6 = vweird.f32 %v4994_v31 }
 0x31f   :  { %v2207_v23 = vmul.f32 0.5, %v2206_v44  ;;  %v1365_v14 = vmul.f32 %v4998_v18, %v1364_v60  ;;  %vm1370_vm7 = vweird.f32 %v4998_v18  ;;  %v2051_v57 = vsub.f32 %v1987_v4, %v2019_v37  ;;  %vm5062_vm8 = vmor %vm1379_vm4, %vm1380_vm6 }
 0x320   :  { %v1376_v3 = vmul.f32 0.5, %v1375_v19  ;;  %v2203_v21 = vsel %vm5033_vm5, %v4944_v36, %v2199_v38  ;;  %v1875_v44 = vmul.f32 %v5014_v17, %v5014_v17  ;;  %v2020_v34 = vmul.f32 %v5017_v43, %v5017_v43  ;;  %v5055_v38 = vld [vmem:[%s5887_s4 + $0x1] ss:$0 sm:$0xff]  ;;  %vm1371_vm9 = vmor %vm1369_vm2, %vm1370_vm7 }
 0x321   :  { %v1366_v26 = vmul.f32 0.5, %v1365_v14  ;;  %v2208_v58 = vsub.f32 1.5, %v2207_v23  ;;  %v1805_v53 = vpop.xlane.xlu2 %1804  ;;  %v1733_v60 = vpop.f32.mrf.mxu2  ;;  %v2083_v20 = vmax.f32 %v2051_v57, 0.0  ;;  %v5046_v14 = vld [vmem:[#allocation11] ss:$0 sm:$0xff]  ;;  %vm2220_vm12 = vweird.f32 %v5012_v11 }
 0x322   :  { %v1377_v2 = vsub.f32 1.5, %v1376_v3  ;;  %v1484_v37 = vadd.f32 %v5046_v14, %v1448_v16  ;;  %1928 = vadd.xlane.f32.xlu2 %v1875_v44  ;;  %v5050_v36 = vmul.f32 0.0078125, %v1805_v53  ;;  %v1734_v23 = vadd.f32 %v5055_v38, %v1733_v60  ;;  %v6100_v44 = vld [vmem:[#allocation32_spill] sm:$0xff] }
 0x323   :  { %v1367_v19 = vsub.f32 1.5, %v1366_v26  ;;  %v1899_v4 = vpop.xlane.xlu0 %1898  ;;  %v6101_v53 = vmax.f32 %v6100_v44, 0.0 }
 0x324   :  { %v1378_v47 = vmul.f32 %v4994_v31, %v1377_v2  ;;  %v1988_v3 = vmul.f32 0.0078125, %v1899_v4  ;;  %v1901_v26 = vpop.xlane.xlu1 %1900  ;;  %v5067_v2 = vadd.f32 1e-05, %v2083_v20  ;;  %v5073_v60 = vpop.eup %3383  ;;  %v2209_v4 = vmul.f32 %v4987_v54, %v2208_v58 }
 0x325   :  { %v1368_v57 = vmul.f32 %v4998_v18, %v1367_v19  ;;  %v5071_v39 = vadd.f32 %v1484_v37, %v6101_v53  ;;  %v1989_v17 = vmul.f32 0.0078125, %v1901_v26  ;;  %v2021_v20 = vmul.f32 %v5050_v36, %v5050_v36 }
 0x326   :  { %v1382_v62 = vsel %vm5062_vm8, %v4994_v31, %v1378_v47  ;;  %v5085_v19 = vmax.f32 %v1734_v23, 0.0  ;;  %v6102_v37 = vsub.f32 %v4582_v28, %v4872_v55  ;;  %v2215_v16 = vmul.f32 %v5073_v60, %v5012_v11 }
 0x327   :  { %v1372_v58 = vsel %vm1371_vm9, %v4998_v18, %v1368_v57  ;;  %3385 = vrsqrt.f32 %v5067_v2  ;;  %v1597_v40 = vpack.c.bf16 %v5071_v39, %v4972_v13  ;;  %v2052_v31 = vsub.f32 %v1988_v3, %v2020_v34 }
 0x328   :  { %v2496_v26 = vmul.f32 %v2203_v21, %v6102_v37  ;;  %v2053_v47 = vsub.f32 %v1989_v17, %v2021_v20  ;;  %1834 = vadd.xlane.f32.xlu0 %v5085_v19  ;;  %v2216_v28 = vmul.f32 %v5073_v60, %v2215_v16  ;;  %v1876_v18 = vmul.f32 %v5085_v19, %v5085_v19 }
 0x329   :  { %v1413_v21 = vmul.f32 %v1372_v58, %v6105_v6  ;;  %v6106_v34 = vsub.f32 %v4580_v24, %v4877_v22  ;;  %v2113_v23 = vsub.f32 %v4638_v10, %v4891_v46  ;;  %1747 = vmatmul.bf16.gmra.mxu2 %v1597_v40  ;;  %v2084_v3 = vmax.f32 %v2052_v31, 0.0  ;;  %v1807_v44 = vpop.xlane.xlu2 %1806  ;;  %v1735_v53 = vpop.f32.mrf.mxu2 }
 0x32a   :  { %v2085_v57 = vmax.f32 %v2053_v47, 0.0  ;;  %v2213_v20 = vsel %vm5100_vm11, %v4987_v54, %v2209_v4  ;;  %v2533_v37 = vmul.f32 %v4926_v0, %v2496_v26  ;;  %v2217_v5 = vmul.f32 0.5, %v2216_v28  ;;  %1930 = vadd.xlane.f32.xlu2 %v1876_v18 }
 0x32b   :  { %v1414_v17 = vmul.f32 %v1382_v62, %v6106_v34  ;;  %v5119_v41 = vmul.f32 0.0078125, %v1807_v44  ;;  %v1736_v24 = vadd.f32 %v5055_v38, %v1735_v53  ;;  %v5122_v22 = vadd.f32 1e-05, %v2084_v3  ;;  %v6109_v3 = vld [vmem:[#allocation33_spill] sm:$0xff]  ;;  %v6111_v53 = vld [vmem:[#allocation34_spill] sm:$0xff] }
 0x32c   :  { %v5124_v62 = vadd.f32 1e-05, %v2085_v57  ;;  %v1903_v10 = vpop.xlane.xlu1 %1902  ;;  %v1449_v46 = vmul.f32 %v5022_v1, %v1413_v21  ;;  %v2218_v54 = vsub.f32 1.5, %v2217_v5  ;;  %v2497_v40 = vmul.f32 %v2213_v20, %v2113_v23 }
 0x32d   :  { %v1450_v58 = vmul.f32 %v5022_v1, %v1414_v17  ;;  %v5128_v16 = vpop.eup %3385  ;;  %v2022_v4 = vmul.f32 %v5119_v41, %v5119_v41  ;;  %v5132_v26 = vmax.f32 %v1736_v24, 0.0  ;;  %vm2221_vm13 = vweird.f32 %v5073_v60 }
 0x32e   :  { %v2225_v31 = vmul.f32 %v5128_v16, %v5067_v2  ;;  %3387 = vrsqrt.f32 %v5122_v22  ;;  %v2219_v1 = vmul.f32 %v5073_v60, %v2218_v54  ;;  %v1990_v47 = vmul.f32 0.0078125, %v1903_v10  ;;  %vm5148_vm14 = vmor %vm2220_vm12, %vm2221_vm13 }
 0x32f   :  { %3389 = vrsqrt.f32 %v5124_v62  ;;  %1836 = vadd.xlane.f32.xlu1 %v5132_v26  ;;  %v2570_v55 = vadd.f32 %v4937_v48, %v2533_v37  ;;  %v1877_v11 = vmul.f32 %v5132_v26, %v5132_v26  ;;  %v1485_v18 = vadd.f32 %v5046_v14, %v1449_v46 }
 0x330   :  { %v2226_v28 = vmul.f32 %v5128_v16, %v2225_v31  ;;  %v1486_v6 = vadd.f32 %v5046_v14, %v1450_v58  ;;  %v2054_v34 = vsub.f32 %v1990_v47, %v2022_v4  ;;  %v2534_v17 = vmul.f32 %v4926_v0, %v2497_v40 }
 0x331   :  { %1932 = vadd.xlane.f32.xlu0 %v1877_v11  ;;  %v6110_v57 = vmax.f32 %v6109_v3, 0.0  ;;  %v6112_v20 = vmax.f32 %v6111_v53, 0.0  ;;  %v1809_v5 = vpop.xlane.xlu0 %1808  ;;  %v1738_v24 = vpop.f32.mrf.mxu2  ;;  %v2223_v14 = vsel %vm5148_vm14, %v5073_v60, %v2219_v1  ;;  %v2114_v10 = vsub.f32 %v4688_v42, %v4948_v52 }
 0x332   :  { %v2227_v23 = vmul.f32 0.5, %v2226_v28  ;;  %v2086_v46 = vmax.f32 %v2054_v34, 0.0  ;;  %v2571_v58 = vadd.f32 %v4937_v48, %v2534_v17  ;;  %v5167_v54 = vmul.f32 0.0078125, %v1809_v5 }
 0x333   :  { %v5155_v44 = vadd.f32 %v1485_v18, %v6110_v57  ;;  %v5159_v37 = vadd.f32 %v1486_v6, %v6112_v20  ;;  %vm2231_vm15 = vweird.f32 %v5128_v16  ;;  %v2634_v31 = vadd.f32 %v2570_v55, %v4156_v27  ;;  %v1905_v28 = vpop.xlane.xlu2 %1904 }
 0x334   :  { %v5169_v4 = vpop.eup %3387  ;;  %v2228_v40 = vsub.f32 1.5, %v2227_v23  ;;  %v1739_v47 = vadd.f32 %v5055_v38, %v1738_v24  ;;  %v5178_v52 = vadd.f32 1e-05, %v2086_v46  ;;  %v2635_v60 = vadd.f32 %v2571_v58, %v4160_v50 }
 0x335   :  { %v5174_v11 = vpop.eup %3389  ;;  %v2235_v42 = vmul.f32 %v5169_v4, %v5122_v22  ;;  %v2498_v1 = vmul.f32 %v2223_v14, %v2114_v10  ;;  %v1598_v27 = vpack.c.bf16 %v5159_v37, %v5155_v44  ;;  %v2023_v55 = vmul.f32 %v5167_v54, %v5167_v54 }
 0x336   :  { %v2229_v18 = vmul.f32 %v5128_v16, %v2228_v40  ;;  %v2245_v6 = vmul.f32 %v5174_v11, %v5124_v62  ;;  %vm2230_vm0 = vweird.f32 %v5067_v2  ;;  %v2697_v34 = vpack.c.bf16 %v2635_v60, %v2634_v31 }
 0x337   :  { %v2236_v21 = vmul.f32 %v5169_v4, %v2235_v42  ;;  %v2115_v50 = vsub.f32 %v4693_v15, %v4985_v61  ;;  %vm5194_vm1 = vmor %vm2230_vm0, %vm2231_vm15  ;;  %v5199_v3 = vmax.f32 %v1739_v47, 0.0  ;;  %v1991_v57 = vmul.f32 0.0078125, %v1905_v28 }
 0x338   :  { %v2246_v23 = vmul.f32 %v5174_v11, %v2245_v6  ;;  %3391 = vrsqrt.f32 %v5178_v52  ;;  %2793 = vmatmul.bf16.gmra.mxu3 %v2697_v34  ;;  %v2233_v2 = vsel %vm5194_vm1, %v5128_v16, %v2229_v18  ;;  %v2535_v15 = vmul.f32 %v4926_v0, %v2498_v1 }
 0x339   :  { %v2237_v53 = vmul.f32 0.5, %v2236_v21  ;;  %1752 = vmatmul.bf16.gmra.mxu2 %v1598_v27  ;;  %v2055_v20 = vsub.f32 %v1991_v57, %v2023_v55  ;;  %1838 = vadd.xlane.f32.xlu1 %v5199_v3  ;;  %v1878_v5 = vmul.f32 %v5199_v3, %v5199_v3  ;;  %v1811_v24 = vpop.xlane.xlu0 %1810  ;;  %v1740_v14 = vpop.f32.mrf.mxu2  ;;  %v2499_v10 = vmul.f32 %v2233_v2, %v2115_v50 }
 0x33a   :  { %v2247_v61 = vmul.f32 0.5, %v2246_v23  ;;  %v5209_v58 = vmul.f32 0.0078125, %v1811_v24  ;;  %v1741_v40 = vadd.f32 %v5055_v38, %v1740_v14  ;;  %vm2241_vm2 = vweird.f32 %v5169_v4 }
 0x33b   :  { %v2238_v46 = vsub.f32 1.5, %v2237_v53  ;;  %v2087_v16 = vmax.f32 %v2055_v20, 0.0  ;;  %1934 = vadd.xlane.f32.xlu0 %v1878_v5  ;;  %v1907_v47 = vpop.xlane.xlu2 %1906  ;;  %v2536_v28 = vmul.f32 %v4926_v0, %v2499_v10  ;;  %v2572_v18 = vadd.f32 %v4937_v48, %v2535_v15 }
 0x33c   :  { %v2248_v31 = vsub.f32 1.5, %v2247_v61  ;;  %v2024_v42 = vmul.f32 %v5209_v58, %v5209_v58  ;;  %v5215_v60 = vmax.f32 %v1741_v40, 0.0  ;;  %v1992_v55 = vmul.f32 0.0078125, %v1907_v47 }
 0x33d   :  { %v5218_v1 = vadd.f32 1e-05, %v2087_v16  ;;  %v2239_v27 = vmul.f32 %v5169_v4, %v2238_v46  ;;  %v2573_v34 = vadd.f32 %v4937_v48, %v2536_v28  ;;  %vm2251_vm3 = vweird.f32 %v5174_v11 }
 0x33e   :  { %v5221_v6 = vpop.eup %3391  ;;  %1840 = vadd.xlane.f32.xlu2 %v5215_v60  ;;  %v1879_v21 = vmul.f32 %v5215_v60, %v5215_v60  ;;  %v2249_v50 = vmul.f32 %v5174_v11, %v2248_v31  ;;  %vm2240_vm4 = vweird.f32 %v5122_v22  ;;  %v2056_v17 = vsub.f32 %v1992_v55, %v2024_v42 }
 0x33f   :  { %3393 = vrsqrt.f32 %v5218_v1  ;;  %v2637_v23 = vadd.f32 %v2573_v34, %v4222_v7  ;;  %vm5235_vm5 = vmor %vm2240_vm4, %vm2241_vm2  ;;  %vm2250_vm6 = vweird.f32 %v5124_v62  ;;  %v2255_v53 = vmul.f32 %v5221_v6, %v5178_v52 }
 0x340   :  { %v2636_v2 = vadd.f32 %v2572_v18, %v4218_v32  ;;  %vm5243_vm7 = vmor %vm2250_vm6, %vm2251_vm3  ;;  %v2088_v7 = vmax.f32 %v2056_v17, 0.0  ;;  %v2243_v62 = vsel %vm5235_vm5, %v5169_v4, %v2239_v27  ;;  %v2116_v24 = vsub.f32 %v4713_v8, %v5017_v43 }
 0x341   :  { %1936 = vadd.xlane.f32.xlu1 %v1879_v21  ;;  %v1743_v15 = vpop.f32.mrf.mxu2  ;;  %v1813_v61 = vpop.xlane.xlu1 %1812  ;;  %v2117_v32 = vsub.f32 %v4738_v25, %v5050_v36  ;;  %v2253_v10 = vsel %vm5243_vm7, %v5174_v11, %v2249_v50  ;;  %v2256_v8 = vmul.f32 %v5221_v6, %v2255_v53  ;;  %vm2261_vm9 = vweird.f32 %v5221_v6 }
 0x342   :  { %v1744_v20 = vadd.f32 %v5055_v38, %v1743_v15  ;;  %v5248_v5 = vmul.f32 0.0078125, %v1813_v61  ;;  %v5260_v46 = vadd.f32 1e-05, %v2088_v7  ;;  %v2698_v40 = vpack.c.bf16 %v2637_v23, %v2636_v2 }
 0x343   :  { %v1909_v14 = vpop.xlane.xlu0 %1908  ;;  %v2500_v47 = vmul.f32 %v2243_v62, %v2116_v24  ;;  %v2501_v36 = vmul.f32 %v2253_v10, %v2117_v32  ;;  %v2257_v18 = vmul.f32 0.5, %v2256_v8  ;;  %vm2270_vm10 = vweird.f32 %v5218_v1 }
 0x344   :  { %v5262_v31 = vmax.f32 %v1744_v20, 0.0  ;;  %v2025_v16 = vmul.f32 %v5248_v5, %v5248_v5  ;;  %v1993_v43 = vmul.f32 0.0078125, %v1909_v14  ;;  %3395 = vrsqrt.f32 %v5260_v46 }
 0x345   :  { %v5266_v4 = vpop.eup %3393  ;;  %v2537_v34 = vmul.f32 %v4926_v0, %v2500_v47  ;;  %v2538_v57 = vmul.f32 %v4926_v0, %v2501_v36  ;;  %v2258_v7 = vsub.f32 1.5, %v2257_v18  ;;  %vm2260_vm12 = vweird.f32 %v5178_v52 }
 0x346   :  { %v2265_v25 = vmul.f32 %v5266_v4, %v5218_v1  ;;  %1842 = vadd.xlane.f32.xlu2 %v5262_v31  ;;  %v2057_v11 = vsub.f32 %v1993_v43, %v2025_v16  ;;  %v1880_v28 = vmul.f32 %v5262_v31, %v5262_v31  ;;  %vm2271_vm8 = vweird.f32 %v5266_v4  ;;  %vm5316_vm13 = vmor %vm2260_vm12, %vm2261_vm9 }
 0x347   :  { %v2574_v32 = vadd.f32 %v4937_v48, %v2537_v34  ;;  %v2575_v14 = vadd.f32 %v4937_v48, %v2538_v57  ;;  %v2259_v16 = vmul.f32 %v5221_v6, %v2258_v7  ;;  %vm5302_vm11 = vmor %vm2270_vm10, %vm2271_vm8  ;;  %vm2280_vm2 = vweird.f32 %v5260_v46 }
 0x348   :  { %v2266_v42 = vmul.f32 %v5266_v4, %v2265_v25  ;;  %2798 = vmatmul.bf16.gmra.mxu3 %v2698_v40  ;;  %v2089_v27 = vmax.f32 %v2057_v11, 0.0 }
 0x349   :  { %1938 = vadd.xlane.f32.xlu1 %v1880_v28  ;;  %v1745_v55 = vpop.f32.mrf.mxu2  ;;  %v1815_v21 = vpop.xlane.xlu1 %1814  ;;  %v2638_v36 = vadd.f32 %v2574_v32, %v4272_v49  ;;  %v2639_v11 = vadd.f32 %v2575_v14, %v4276_v29  ;;  %v2119_v49 = vsub.f32 %v4768_v59, %v5167_v54 }
 0x34a   :  { %v2267_v50 = vmul.f32 0.5, %v2266_v42  ;;  %v1746_v17 = vadd.f32 %v5055_v38, %v1745_v55  ;;  %v5278_v23 = vmul.f32 0.0078125, %v1815_v21  ;;  %v5281_v53 = vadd.f32 1e-05, %v2089_v27  ;;  %v5288_v20 = vpop.eup %3395 }
 0x34b   :  { %v1911_v2 = vpop.xlane.xlu0 %1910  ;;  %v2275_v8 = vmul.f32 %v5288_v20, %v5260_v46  ;;  %v2699_v54 = vpack.c.bf16 %v2639_v11, %v2638_v36  ;;  %vm2281_vm15 = vweird.f32 %v5288_v20 }
 0x34c   :  { %v2268_v15 = vsub.f32 1.5, %v2267_v50  ;;  %v5283_v61 = vmax.f32 %v1746_v17, 0.0  ;;  %v2026_v22 = vmul.f32 %v5278_v23, %v5278_v23  ;;  %3397 = vrsqrt.f32 %v5281_v53  ;;  %vm5369_vm3 = vmor %vm2280_vm2, %vm2281_vm15 }
 0x34d   :  { %v1994_v62 = vmul.f32 0.0078125, %v1911_v2  ;;  %v2276_v21 = vmul.f32 %v5288_v20, %v2275_v8  ;;  %v2118_v50 = vsub.f32 %v4749_v12, %v5119_v41  ;;  %vm2290_vm0 = vweird.f32 %v5281_v53 }
 0x34e   :  { %1844 = vadd.xlane.f32.xlu0 %v5283_v61  ;;  %v1881_v24 = vmul.f32 %v5283_v61, %v5283_v61  ;;  %v2269_v10 = vmul.f32 %v5266_v4, %v2268_v15 }
 0x34f   :  { %v2058_v40 = vsub.f32 %v1994_v62, %v2026_v22  ;;  %v2277_v22 = vmul.f32 0.5, %v2276_v21 }
 0x350   :  { %1940 = vadd.xlane.f32.xlu2 %v1881_v24  ;;  %v2273_v18 = vsel %vm5302_vm11, %v5266_v4, %v2269_v10  ;;  %v2263_v4 = vsel %vm5316_vm13, %v5221_v6, %v2259_v16 }
 0x351   :  { %v1817_v43 = vpop.xlane.xlu2 %1816  ;;  %v2090_v25 = vmax.f32 %v2058_v40, 0.0  ;;  %v2503_v17 = vmul.f32 %v2273_v18, %v2119_v49  ;;  %v2502_v15 = vmul.f32 %v2263_v4, %v2118_v50  ;;  %v2278_v16 = vsub.f32 1.5, %v2277_v22 }
 0x352   :  { %v5308_v28 = vmul.f32 0.0078125, %v1817_v43  ;;  %v5310_v42 = vpop.eup %3397  ;;  %v2121_v50 = vsub.f32 %v4780_v30, %v5248_v5  ;;  %v2120_v30 = vsub.f32 %v4774_v63, %v5209_v58 }
 0x353   :  { %v1913_v1 = vpop.xlane.xlu1 %1912  ;;  %v2285_v29 = vmul.f32 %v5310_v42, %v5281_v53  ;;  %v5324_v55 = vadd.f32 1e-05, %v2090_v25  ;;  %v2540_v6 = vmul.f32 %v4926_v0, %v2503_v17  ;;  %v2539_v40 = vmul.f32 %v4926_v0, %v2502_v15 }
 0x354   :  { %v2027_v52 = vmul.f32 %v5308_v28, %v5308_v28  ;;  %v1995_v34 = vmul.f32 0.0078125, %v1913_v1  ;;  %vm2291_vm14 = vweird.f32 %v5310_v42  ;;  %v2279_v1 = vmul.f32 %v5288_v20, %v2278_v16 }
 0x355   :  { %v2286_v59 = vmul.f32 %v5310_v42, %v2285_v29  ;;  %3399 = vrsqrt.f32 %v5324_v55  ;;  %v2577_v47 = vadd.f32 %v4937_v48, %v2540_v6  ;;  %v2576_v11 = vadd.f32 %v4937_v48, %v2539_v40  ;;  %vm5356_vm1 = vmor %vm2290_vm0, %vm2291_vm14 }
 0x356   :  { %v2059_v57 = vsub.f32 %v1995_v34, %v2027_v52  ;;  %vm2300_vm8 = vweird.f32 %v5324_v55 }
 0x357   :  { %v2287_v2 = vmul.f32 0.5, %v2286_v59  ;;  %v2641_v29 = vadd.f32 %v2577_v47, %v4336_v51 }
 0x358   :  { %2803 = vmatmul.bf16.gmra.mxu3 %v2699_v54  ;;  %v2091_v7 = vmax.f32 %v2059_v57, 0.0  ;;  %v2640_v54 = vadd.f32 %v2576_v11, %v4332_v33  ;;  %v2283_v57 = vsel %vm5369_vm3, %v5288_v20, %v2279_v1 }
 0x359   :  { %v1819_v62 = vpop.xlane.xlu2 %1818  ;;  %v2288_v32 = vsub.f32 1.5, %v2287_v2  ;;  %v2504_v33 = vmul.f32 %v2283_v57, %v2120_v30 }
 0x35a   :  { %v5336_v24 = vmul.f32 0.0078125, %v1819_v62  ;;  %v5339_v14 = vadd.f32 1e-05, %v2091_v7  ;;  %v2700_v2 = vpack.c.bf16 %v2641_v29, %v2640_v54 }
 0x35b   :  { %v1915_v12 = vpop.xlane.xlu1 %1914  ;;  %v5345_v8 = vpop.eup %3399  ;;  %v2289_v25 = vmul.f32 %v5310_v42, %v2288_v32  ;;  %v2541_v16 = vmul.f32 %v4926_v0, %v2504_v33 }
 0x35c   :  { %v2028_v41 = vmul.f32 %v5336_v24, %v5336_v24  ;;  %v1996_v10 = vmul.f32 0.0078125, %v1915_v12  ;;  %3401 = vrsqrt.f32 %v5339_v14  ;;  %v2295_v18 = vmul.f32 %v5345_v8, %v5324_v55 }
 0x35d   :  { %v2293_v53 = vsel %vm5356_vm1, %v5310_v42, %v2289_v25  ;;  %vm2301_vm5 = vweird.f32 %v5345_v8  ;;  %vm2310_vm6 = vweird.f32 %v5339_v14 }
 0x35e   :  { %v2060_v43 = vsub.f32 %v1996_v10, %v2028_v41  ;;  %v2296_v46 = vmul.f32 %v5345_v8, %v2295_v18  ;;  %v2505_v15 = vmul.f32 %v2293_v53, %v2121_v50  ;;  %v2578_v18 = vadd.f32 %v4937_v48, %v2541_v16  ;;  %vm5423_vm9 = vmor %vm2300_vm8, %vm2301_vm5 }
 0x360   :  { %v2092_v36 = vmax.f32 %v2060_v43, 0.0  ;;  %v2297_v62 = vmul.f32 0.5, %v2296_v46  ;;  %v2542_v20 = vmul.f32 %v4926_v0, %v2505_v15  ;;  %v2123_v46 = vsub.f32 %v4796_v35, %v5308_v28 }
 0x361   :  { %v1821_v27 = vpop.xlane.xlu0 %1820 }
 0x362   :  { %v5361_v52 = vmul.f32 0.0078125, %v1821_v27  ;;  %v5363_v21 = vpop.eup %3401  ;;  %v5377_v59 = vadd.f32 1e-05, %v2092_v36  ;;  %v2298_v43 = vsub.f32 1.5, %v2297_v62  ;;  %v2579_v36 = vadd.f32 %v4937_v48, %v2542_v20 }
 0x363   :  { %v1917_v34 = vpop.xlane.xlu2 %1916  ;;  %v2305_v51 = vmul.f32 %v5363_v21, %v5339_v14  ;;  %vm2311_vm4 = vweird.f32 %v5363_v21 }
 0x364   :  { %v2029_v17 = vmul.f32 %v5361_v52, %v5361_v52  ;;  %v1997_v42 = vmul.f32 0.0078125, %v1917_v34  ;;  %3403 = vrsqrt.f32 %v5377_v59  ;;  %v2299_v27 = vmul.f32 %v5345_v8, %v2298_v43  ;;  %vm5410_vm7 = vmor %vm2310_vm6, %vm2311_vm4 }
 0x365   :  { %v2306_v5 = vmul.f32 %v5363_v21, %v2305_v51  ;;  %v2643_v53 = vadd.f32 %v2579_v36, %v4372_v45  ;;  %vm2320_vm14 = vweird.f32 %v5377_v59 }
 0x366   :  { %v2061_v22 = vsub.f32 %v1997_v42, %v2029_v17  ;;  %v6131_v42 = vld [vmem:[#allocation37_spill] sm:$0xff] }
 0x367   :  { %v2307_v7 = vmul.f32 0.5, %v2306_v5  ;;  %v2642_v57 = vadd.f32 %v2578_v18, %v6131_v42  ;;  %v2303_v5 = vsel %vm5423_vm9, %v5345_v8, %v2299_v27 }
 0x368   :  { %2808 = vmatmul.bf16.gmra.mxu3 %v2700_v2  ;;  %v2093_v6 = vmax.f32 %v2061_v22, 0.0  ;;  %v6132_v2 = vld [vmem:[#allocation29_spill] sm:$0xff] }
 0x369   :  { %v1823_v32 = vpop.xlane.xlu0 %1822  ;;  %v2308_v41 = vsub.f32 1.5, %v2307_v7  ;;  %v2122_v35 = vsub.f32 %v6132_v2, %v5278_v23  ;;  %v2701_v15 = vpack.c.bf16 %v2643_v53, %v2642_v57  ;;  %v6139_v2 = vld [vmem:[#allocation38_spill] sm:$0xff] }
 0x36a   :  { %v5390_v12 = vmul.f32 0.0078125, %v1823_v32  ;;  %v5393_v10 = vadd.f32 1e-05, %v2093_v6  ;;  %v5399_v47 = vpop.eup %3403 }
 0x36b   :  { %v1919_v63 = vpop.xlane.xlu2 %1918  ;;  %v2309_v11 = vmul.f32 %v5363_v21, %v2308_v41  ;;  %v2315_v49 = vmul.f32 %v5399_v47, %v5377_v59  ;;  %v2506_v62 = vmul.f32 %v2303_v5, %v2122_v35  ;;  %vm2321_vm11 = vweird.f32 %v5399_v47 }
 0x36c   :  { %v2030_v58 = vmul.f32 %v5390_v12, %v5390_v12  ;;  %v1998_v40 = vmul.f32 0.0078125, %v1919_v63  ;;  %3405 = vrsqrt.f32 %v5393_v10  ;;  %vm2330_vm12 = vweird.f32 %v5393_v10  ;;  %vm5477_vm15 = vmor %vm2320_vm14, %vm2321_vm11 }
 0x36d   :  { %v2313_v14 = vsel %vm5410_vm7, %v5363_v21, %v2309_v11  ;;  %v2316_v55 = vmul.f32 %v5399_v47, %v2315_v49  ;;  %v2543_v43 = vmul.f32 %v4926_v0, %v2506_v62 }
 0x36e   :  { %v2062_v25 = vsub.f32 %v1998_v40, %v2030_v58  ;;  %v2507_v22 = vmul.f32 %v2313_v14, %v2123_v46  ;;  %v6135_v14 = vld [vmem:[#allocation39_spill] sm:$0xff] }
 0x36f   :  { %v2317_v6 = vmul.f32 0.5, %v2316_v55  ;;  %v2580_v49 = vadd.f32 %v4937_v48, %v2543_v43  ;;  %v6138_v55 = vld [vmem:[#allocation43_spill] sm:$0xff] }
 0x370   :  { %v2094_v1 = vmax.f32 %v2062_v25, 0.0  ;;  %v2544_v8 = vmul.f32 %v4926_v0, %v2507_v22  ;;  %v6140_v22 = vld [vmem:[#allocation30_spill] sm:$0xff] }
 0x371   :  { %v1825_v29 = vpop.xlane.xlu1 %1824  ;;  %v2318_v25 = vsub.f32 1.5, %v2317_v6  ;;  %v2644_v35 = vadd.f32 %v2580_v49, %v6139_v2 }
 0x372   :  { %v5415_v4 = vmul.f32 0.0078125, %v1825_v29  ;;  %v5417_v50 = vpop.eup %3405  ;;  %v5431_v17 = vadd.f32 1e-05, %v2094_v1  ;;  %v2581_v1 = vadd.f32 %v4937_v48, %v2544_v8 }
 0x373   :  { %v1921_v51 = vpop.xlane.xlu0 %1920  ;;  %v2325_v45 = vmul.f32 %v5417_v50, %v5393_v10  ;;  %vm2331_vm10 = vweird.f32 %v5417_v50  ;;  %v2319_v29 = vmul.f32 %v5399_v47, %v2318_v25 }
 0x374   :  { %v2031_v30 = vmul.f32 %v5415_v4, %v5415_v4  ;;  %v1999_v21 = vmul.f32 0.0078125, %v1921_v51  ;;  %3407 = vrsqrt.f32 %v5431_v17  ;;  %vm5464_vm13 = vmor %vm2330_vm12, %vm2331_vm10  ;;  %v2645_v54 = vadd.f32 %v2581_v1, %v6135_v14 }
 0x375   :  { %v2326_v28 = vmul.f32 %v5417_v50, %v2325_v45  ;;  %vm2340_vm4 = vweird.f32 %v5431_v17 }
 0x376   :  { %v2063_v7 = vsub.f32 %v1999_v21, %v2031_v30  ;;  %v2125_v30 = vsub.f32 %v6138_v55, %v5361_v52  ;;  %v2124_v52 = vsub.f32 %v6140_v22, %v5336_v24 }
 0x377   :  { %v2327_v33 = vmul.f32 0.5, %v2326_v28 }
 0x378   :  { %2813 = vmatmul.bf16.gmra.mxu3 %v2701_v15  ;;  %v2095_v32 = vmax.f32 %v2063_v7, 0.0  ;;  %v2323_v15 = vsel %vm5477_vm15, %v5399_v47, %v2319_v29 }
 0x379   :  { %v1827_v20 = vpop.xlane.xlu1 %1826  ;;  %v2328_v63 = vsub.f32 1.5, %v2327_v33  ;;  %v2702_v33 = vpack.c.bf16 %v2645_v54, %v2644_v35 }
 0x37a   :  { %v5444_v41 = vmul.f32 0.0078125, %v1827_v20  ;;  %v5447_v58 = vadd.f32 1e-05, %v2095_v32  ;;  %v5453_v36 = vpop.eup %3407  ;;  %v2508_v20 = vmul.f32 %v2323_v15, %v2124_v52 }
 0x37b   :  { %v1923_v23 = vpop.xlane.xlu0 %1922  ;;  %v2329_v18 = vmul.f32 %v5417_v50, %v2328_v63  ;;  %v2335_v34 = vmul.f32 %v5453_v36, %v5431_v17  ;;  %vm2341_vm1 = vweird.f32 %v5453_v36 }
 0x37c   :  { %v2032_v40 = vmul.f32 %v5444_v41, %v5444_v41  ;;  %v2000_v16 = vmul.f32 0.0078125, %v1923_v23  ;;  %3409 = vrsqrt.f32 %v5447_v58  ;;  %v2545_v25 = vmul.f32 %v4926_v0, %v2508_v20  ;;  %vm5531_vm5 = vmor %vm2340_vm4, %vm2341_vm1 }
 0x37d   :  { %v2333_v10 = vsel %vm5464_vm13, %v5417_v50, %v2329_v18  ;;  %v2336_v59 = vmul.f32 %v5453_v36, %v2335_v34  ;;  %vm2350_vm2 = vweird.f32 %v5447_v58 }
 0x37e   :  { %v2064_v11 = vsub.f32 %v2000_v16, %v2032_v40  ;;  %v2509_v62 = vmul.f32 %v2333_v10, %v2125_v30 }
 0x37f   :  { %v2337_v8 = vmul.f32 0.5, %v2336_v59 }
 0x380   :  { %v2096_v27 = vmax.f32 %v2064_v11, 0.0  ;;  %v2546_v40 = vmul.f32 %v4926_v0, %v2509_v62 }
 0x381   :  { %v1829_v53 = vpop.xlane.xlu2 %1828  ;;  %v2338_v11 = vsub.f32 1.5, %v2337_v8 }
 0x382   :  { %v5469_v46 = vmul.f32 0.0078125, %v1829_v53  ;;  %v5471_v45 = vpop.eup %3409  ;;  %v5485_v5 = vadd.f32 1e-05, %v2096_v27  ;;  %v2583_v49 = vadd.f32 %v4937_v48, %v2546_v40  ;;  %v2582_v53 = vadd.f32 %v4937_v48, %v2545_v25 }
 0x383   :  { %v1925_v42 = vpop.xlane.xlu1 %1924  ;;  %v2345_v21 = vmul.f32 %v5471_v45, %v5447_v58  ;;  %vm2351_vm0 = vweird.f32 %v5471_v45  ;;  %v2339_v0 = vmul.f32 %v5453_v36, %v2338_v11 }
 0x384   :  { %v2033_v28 = vmul.f32 %v5469_v46, %v5469_v46  ;;  %v2001_v50 = vmul.f32 0.0078125, %v1925_v42  ;;  %3411 = vrsqrt.f32 %v5485_v5  ;;  %vm5518_vm3 = vmor %vm2350_vm2, %vm2351_vm0  ;;  %v6143_v42 = vld [vmem:[#allocation41_spill] sm:$0xff]  ;;  %vm2360_vm10 = vweird.f32 %v5485_v5 }
 0x385   :  { %v2346_v7 = vmul.f32 %v5471_v45, %v2345_v21  ;;  %v2647_v10 = vadd.f32 %v2583_v49, %v6143_v42  ;;  %v6146_v21 = vld [vmem:[#allocation45_spill] sm:$0xff]  ;;  %v2343_v52 = vsel %vm5531_vm5, %v5453_v36, %v2339_v0 }
 0x386   :  { %v2065_v6 = vsub.f32 %v2001_v50, %v2033_v28  ;;  %v2127_v2 = vsub.f32 %v6146_v21, %v5415_v4  ;;  %v6147_v28 = vld [vmem:[#allocation40_spill] sm:$0xff] }
 0x387   :  { %v2347_v32 = vmul.f32 0.5, %v2346_v7  ;;  %v2646_v17 = vadd.f32 %v2582_v53, %v6147_v28  ;;  %v6148_v50 = vld [vmem:[#allocation44_spill] sm:$0xff]  ;;  %v5569_v53 = vld [vmem:[#allocation11 + $0x1] ss:$0 sm:$0xff] }
 0x388   :  { %2818 = vmatmul.bf16.gmra.mxu3 %v2702_v33  ;;  %v2097_v63 = vmax.f32 %v2065_v6, 0.0  ;;  %v2126_v15 = vsub.f32 %v6148_v50, %v5390_v12 }
 0x389   :  { %v1831_v23 = vpop.xlane.xlu2 %1830  ;;  %v2348_v16 = vsub.f32 1.5, %v2347_v32  ;;  %v2703_v7 = vpack.c.bf16 %v2647_v10, %v2646_v17 }
 0x38a   :  { %v5499_v47 = vadd.f32 1e-05, %v2097_v63  ;;  %v5501_v43 = vmul.f32 0.0078125, %v1831_v23  ;;  %v5507_v18 = vpop.eup %3411  ;;  %v2510_v12 = vmul.f32 %v2343_v52, %v2126_v15  ;;  %v5555_v23 = vld [vmem:[%s5888_s5 + $0x1] ss:$0 sm:$0xff]  ;;  %v2129_v15 = vsub.f32 %v4918_v9, %v5469_v46 }
 0x38b   :  { %v1927_v24 = vpop.xlane.xlu1 %1926  ;;  %v2349_v29 = vmul.f32 %v5471_v45, %v2348_v16  ;;  %v2355_v51 = vmul.f32 %v5507_v18, %v5485_v5  ;;  %vm2361_vm7 = vweird.f32 %v5507_v18  ;;  %v6155_v5 = vld [vmem:[#allocation46_spill] sm:$0xff] }
 0x38c   :  { %3413 = vrsqrt.f32 %v5499_v47  ;;  %v2034_v1 = vmul.f32 %v5501_v43, %v5501_v43  ;;  %v2002_v27 = vmul.f32 0.0078125, %v1927_v24  ;;  %v2547_v11 = vmul.f32 %v5555_v23, %v2510_v12  ;;  %vm5591_vm11 = vmor %vm2360_vm10, %vm2361_vm7 }
 0x38d   :  { %v2353_v58 = vsel %vm5518_vm3, %v5471_v45, %v2349_v29  ;;  %v2356_v22 = vmul.f32 %v5507_v18, %v2355_v51  ;;  %vm2370_vm8 = vweird.f32 %v5499_v47 }
 0x38e   :  { %v2066_v34 = vsub.f32 %v2002_v27, %v2034_v1  ;;  %v2511_v62 = vmul.f32 %v2353_v58, %v2127_v2  ;;  %v2584_v42 = vadd.f32 %v5569_v53, %v2547_v11  ;;  %v6151_v2 = vld [vmem:[#allocation20_spill] sm:$0xff] }
 0x38f   :  { %v2357_v20 = vmul.f32 0.5, %v2356_v22  ;;  %v6154_v22 = vld [vmem:[#allocation42_spill] sm:$0xff] }
 0x390   :  { %v2098_v54 = vmax.f32 %v2066_v34, 0.0  ;;  %v2548_v36 = vmul.f32 %v5555_v23, %v2511_v62 }
 0x391   :  { %v1833_v57 = vpop.xlane.xlu0 %1832  ;;  %v2358_v1 = vsub.f32 1.5, %v2357_v20 }
 0x392   :  { %v5523_v55 = vpop.eup %3413  ;;  %v5526_v48 = vmul.f32 0.0078125, %v1833_v57  ;;  %v5539_v59 = vadd.f32 1e-05, %v2098_v54  ;;  %v2585_v0 = vadd.f32 %v5569_v53, %v2548_v36 }
 0x393   :  { %v2365_v35 = vmul.f32 %v5523_v55, %v5499_v47  ;;  %vm2371_vm6 = vweird.f32 %v5523_v55  ;;  %v2359_v10 = vmul.f32 %v5507_v18, %v2358_v1 }
 0x394   :  { %v2035_v45 = vmul.f32 %v5526_v48, %v5526_v48  ;;  %3415 = vrsqrt.f32 %v5539_v59  ;;  %vm5579_vm9 = vmor %vm2370_vm8, %vm2371_vm6  ;;  %vm2380_vm14 = vweird.f32 %v5539_v59 }
 0x395   :  { %v2366_v4 = vmul.f32 %v5523_v55, %v2365_v35  ;;  %v1929_v33 = vpop.xlane.xlu2 %1928  ;;  %v2649_v35 = vadd.f32 %v2585_v0, %v6151_v2  ;;  %v2363_v9 = vsel %vm5591_vm11, %v5507_v18, %v2359_v10 }
 0x396   :  { %v2003_v6 = vmul.f32 0.0078125, %v1929_v33  ;;  %v2128_v33 = vsub.f32 %v6155_v5, %v5444_v41 }
 0x397   :  { %v2367_v32 = vmul.f32 0.5, %v2366_v4 }
 0x398   :  { %2823 = vmatmul.bf16.gmra.mxu3 %v2703_v7  ;;  %v2067_v8 = vsub.f32 %v2003_v6, %v2035_v45  ;;  %v2648_v45 = vadd.f32 %v2584_v42, %v6154_v22  ;;  %v2512_v36 = vmul.f32 %v2363_v9, %v2128_v33 }
 0x399   :  { %v2368_v40 = vsub.f32 1.5, %v2367_v32 }
 0x39a   :  { %v2099_v16 = vmax.f32 %v2067_v8, 0.0  ;;  %v5560_v25 = vpop.eup %3415  ;;  %v2704_v12 = vpack.c.bf16 %v2649_v35, %v2648_v45  ;;  %v2549_v42 = vmul.f32 %v5555_v23, %v2512_v36 }
 0x39b   :  { %v1835_v63 = vpop.xlane.xlu0 %1834  ;;  %v2375_v29 = vmul.f32 %v5560_v25, %v5539_v59  ;;  %v2369_v51 = vmul.f32 %v5523_v55, %v2368_v40  ;;  %vm2381_vm12 = vweird.f32 %v5560_v25 }
 0x39c   :  { %v5558_v24 = vmul.f32 0.0078125, %v1835_v63  ;;  %v5563_v27 = vadd.f32 1e-05, %v2099_v16  ;;  %vm5641_vm15 = vmor %vm2380_vm14, %vm2381_vm12 }
 0x39d   :  { %v1931_v34 = vpop.xlane.xlu2 %1930  ;;  %v2376_v21 = vmul.f32 %v5560_v25, %v2375_v29  ;;  %v2373_v50 = vsel %vm5579_vm9, %v5523_v55, %v2369_v51  ;;  %v5609_v55 = vld [vmem:[%s5891_s8] ss:$0 sm:$0xff] }
 0x39e   :  { %v2036_v49 = vmul.f32 %v5558_v24, %v5558_v24  ;;  %3417 = vrsqrt.f32 %v5563_v27  ;;  %v2004_v14 = vmul.f32 0.0078125, %v1931_v34  ;;  %v2789_v54 = vpop.f32.mrf.mxu3  ;;  %v2513_v20 = vmul.f32 %v2373_v50, %v2129_v15 }
 0x39f   :  { %v2377_v46 = vmul.f32 0.5, %v2376_v21  ;;  %v2790_v40 = vadd.f32 %v5609_v55, %v2789_v54  ;;  %v2586_v50 = vadd.f32 %v5569_v53, %v2549_v42  ;;  %vm2390_vm0 = vweird.f32 %v5563_v27 }
 0x3a0   :  { %v2068_v57 = vsub.f32 %v2004_v14, %v2036_v49  ;;  %v2550_v49 = vmul.f32 %v5555_v23, %v2513_v20 }
 0x3a1   :  { %v2378_v18 = vsub.f32 1.5, %v2377_v46 }
 0x3a2   :  { %v1837_v58 = vpop.xlane.xlu1 %1836  ;;  %v2100_v17 = vmax.f32 %v2068_v57, 0.0  ;;  %v2587_v21 = vadd.f32 %v5569_v53, %v2550_v49 }
 0x3a3   :  { %v5585_v28 = vmul.f32 0.0078125, %v1837_v58  ;;  %v2379_v58 = vmul.f32 %v5560_v25, %v2378_v18 }
 0x3a4   :  { %v1933_v4 = vpop.xlane.xlu0 %1932  ;;  %v5600_v7 = vpop.eup %3417  ;;  %v5604_v62 = vadd.f32 1e-05, %v2100_v17 }
 0x3a5   :  { %v2037_v52 = vmul.f32 %v5585_v28, %v5585_v28  ;;  %v2005_v6 = vmul.f32 0.0078125, %v1933_v4  ;;  %v2385_v32 = vmul.f32 %v5600_v7, %v5563_v27  ;;  %vm2391_vm13 = vweird.f32 %v5600_v7  ;;  %v6160_v4 = vld [vmem:[#allocation36_spill] sm:$0xff] }
 0x3a6   :  { %3419 = vrsqrt.f32 %v5604_v62  ;;  %v2791_v63 = vpop.f32.mrf.mxu3  ;;  %vm5653_vm1 = vmor %vm2390_vm0, %vm2391_vm13  ;;  %v2651_v5 = vadd.f32 %v2587_v21, %v6160_v4  ;;  %v2383_v46 = vsel %vm5641_vm15, %v5560_v25, %v2379_v58  ;;  %vm2400_vm6 = vweird.f32 %v5604_v62 }
 0x3a7   :  { %v2069_v8 = vsub.f32 %v2005_v6, %v2037_v52  ;;  %v2386_v41 = vmul.f32 %v5600_v7, %v2385_v32  ;;  %v2792_v11 = vadd.f32 %v5609_v55, %v2791_v63  ;;  %v2130_v6 = vsub.f32 %v4956_v56, %v5501_v43  ;;  %v6162_v63 = vld [vmem:[#allocation35_spill] sm:$0xff] }
 0x3a8   :  { %2828 = vmatmul.bf16.gmra.mxu3 %v2704_v12  ;;  %v6161_v12 = vld [vmem:[#allocation31_spill] sm:$0xff]  ;;  %v2650_v36 = vadd.f32 %v2586_v50, %v6162_v63 }
 0x3a9   :  { %v2101_v16 = vmax.f32 %v2069_v8, 0.0  ;;  %v2387_v1 = vmul.f32 0.5, %v2386_v41  ;;  %v3200_v34 = vpack.c.bf16 %v2792_v11, %v2790_v40  ;;  %v2131_v20 = vsub.f32 %v6161_v12, %v5526_v48 }
 0x3aa   :  { %v2705_v18 = vpack.c.bf16 %v2651_v5, %v2650_v36  ;;  %v2132_v36 = vsub.f32 %v5085_v19, %v5558_v24 }
 0x3ab   :  { %v5621_v29 = vadd.f32 1e-05, %v2101_v16  ;;  %v2388_v0 = vsub.f32 1.5, %v2387_v1  ;;  %3201 = vst [vmem:[#allocation14] sm:$0xff] %v3200_v34   ;;  %v2514_v1 = vmul.f32 %v2383_v46, %v2130_v6 }
 0x3ac   :  { %v1748_v51 = vpop.f32.mrf.mxu2  ;;  %v1839_v14 = vpop.xlane.xlu1 %1838 }
 0x3ad   :  { %3421 = vrsqrt.f32 %v5621_v29  ;;  %v1749_v10 = vadd.f32 %v5055_v38, %v1748_v51  ;;  %v5626_v54 = vmul.f32 0.0078125, %v1839_v14  ;;  %v5628_v57 = vpop.eup %3419  ;;  %v2389_v2 = vmul.f32 %v5600_v7, %v2388_v0 }
 0x3ae   :  { %v1935_v30 = vpop.xlane.xlu0 %1934  ;;  %v2395_v15 = vmul.f32 %v5628_v57, %v5604_v62  ;;  %v2551_v21 = vmul.f32 %v5555_v23, %v2514_v1  ;;  %vm2401_vm3 = vweird.f32 %v5628_v57  ;;  %vm2410_vm4 = vweird.f32 %v5621_v29 }
 0x3af   :  { %v5635_v35 = vmax.f32 %v1749_v10, 0.0  ;;  %v2038_v38 = vmul.f32 %v5626_v54, %v5626_v54  ;;  %v2006_v17 = vmul.f32 0.0078125, %v1935_v30  ;;  %v2393_v32 = vsel %vm5653_vm1, %v5600_v7, %v2389_v2  ;;  %v5683_v7 = vld [vmem:[%s5887_s4 + $0x1] ss:$0 sm:$0xff]  ;;  %vm5739_vm7 = vmor %vm2400_vm6, %vm2401_vm3  ;;  %s3636_s4 = smov [#allocation14]  }
 0x3b0   :  { %v2396_v40 = vmul.f32 %v5628_v57, %v2395_v15  ;;  %v2515_v49 = vmul.f32 %v2393_v32, %v2131_v20  ;;  %v2588_v5 = vadd.f32 %v5569_v53, %v2551_v21  ;;  %s2937_s13 = sshll.u32 %s3636_s4, 4  ;;  %s2938_s13 = int_to_ptr.vmem [resolvable:$true] %s2937_s13 }
 0x3b1   :  { %1846 = vadd.xlane.f32.xlu0 %v5635_v35  ;;  %v1882_v22 = vmul.f32 %v5635_v35, %v5635_v35  ;;  %v2070_v45 = vsub.f32 %v2006_v17, %v2038_v38  ;;  %v1841_v52 = vpop.xlane.xlu2 %1840 }
 0x3b2   :  { %v5658_v33 = vmul.f32 0.0078125, %v1841_v52  ;;  %v2397_v14 = vmul.f32 0.5, %v2396_v40  ;;  %v2552_v2 = vmul.f32 %v5555_v23, %v2515_v49 }
 0x3b3   :  { %v5660_v27 = vpop.eup %3421  ;;  %1942 = vadd.xlane.f32.xlu2 %v1882_v22  ;;  %v2102_v9 = vmax.f32 %v2070_v45, 0.0 }
 0x3b4   :  { %v2405_v8 = vmul.f32 %v5660_v27, %v5621_v29  ;;  %v1750_v41 = vpop.f32.mrf.mxu2  ;;  %v2039_v56 = vmul.f32 %v5658_v33, %v5658_v33  ;;  %v1937_v43 = vpop.xlane.xlu1 %1936  ;;  %v2398_v45 = vsub.f32 1.5, %v2397_v14  ;;  %v2589_v6 = vadd.f32 %v5569_v53, %v2552_v2  ;;  %v6165_v29 = vld [vmem:[#allocation22_spill] sm:$0xff] }
 0x3b5   :  { %v5678_v25 = vadd.f32 1e-05, %v2102_v9  ;;  %v1751_v48 = vadd.f32 %v5683_v7, %v1750_v41  ;;  %v2007_v16 = vmul.f32 0.0078125, %v1937_v43  ;;  %vm2411_vm2 = vweird.f32 %v5660_v27 }
 0x3b6   :  { %v2406_v11 = vmul.f32 %v5660_v27, %v2405_v8  ;;  %v2399_v12 = vmul.f32 %v5628_v57, %v2398_v45  ;;  %vm5721_vm5 = vmor %vm2410_vm4, %vm2411_vm2  ;;  %v2653_v43 = vadd.f32 %v2589_v6, %v6165_v29 }
 0x3b7   :  { %v5687_v34 = vmax.f32 %v1751_v48, 0.0  ;;  %v2071_v0 = vsub.f32 %v2007_v16, %v2039_v56  ;;  %3423 = vrsqrt.f32 %v5678_v25  ;;  %v2133_v16 = vsub.f32 %v5132_v26, %v5585_v28 }
 0x3b8   :  { %v2407_v51 = vmul.f32 0.5, %v2406_v11  ;;  %2833 = vmatmul.bf16.gmra.mxu3 %v2705_v18  ;;  %v6166_v18 = vld [vmem:[#allocation21_spill] sm:$0xff]  ;;  %vm2420_vm12 = vweird.f32 %v5678_v25 }
 0x3b9   :  { %1848 = vadd.xlane.f32.xlu1 %v5687_v34  ;;  %v1883_v42 = vmul.f32 %v5687_v34, %v5687_v34  ;;  %v2103_v10 = vmax.f32 %v2071_v0, 0.0  ;;  %v1843_v58 = vpop.xlane.xlu2 %1842  ;;  %v2652_v1 = vadd.f32 %v2588_v5, %v6166_v18 }
 0x3ba   :  { %v5693_v30 = vmul.f32 0.0078125, %v1843_v58  ;;  %v2408_v38 = vsub.f32 1.5, %v2407_v51 }
 0x3bb   :  { %1944 = vadd.xlane.f32.xlu0 %v1883_v42  ;;  %v2794_v17 = vpop.f32.mrf.mxu3  ;;  %v5697_v50 = vadd.f32 1e-05, %v2103_v10  ;;  %v2403_v10 = vsel %vm5739_vm7, %v5628_v57, %v2399_v12  ;;  %v2706_v2 = vpack.c.bf16 %v2653_v43, %v2652_v1  ;;  %v6171_v43 = vld [vmem:[#allocation24_spill] sm:$0xff] }
 0x3bc   :  { %v1753_v47 = vpop.f32.mrf.mxu2  ;;  %v2040_v15 = vmul.f32 %v5693_v30, %v5693_v30  ;;  %v1939_v22 = vpop.xlane.xlu1 %1938  ;;  %v2409_v9 = vmul.f32 %v5660_v27, %v2408_v38  ;;  %v2795_v49 = vadd.f32 %v5609_v55, %v2794_v17 }
 0x3bd   :  { %v1754_v52 = vadd.f32 %v5683_v7, %v1753_v47  ;;  %3425 = vrsqrt.f32 %v5697_v50  ;;  %v2008_v59 = vmul.f32 0.0078125, %v1939_v22  ;;  %v5703_v4 = vpop.eup %3423  ;;  %vm2430_vm10 = vweird.f32 %v5697_v50 }
 0x3be   :  { %v2415_v20 = vmul.f32 %v5703_v4, %v5678_v25  ;;  %v2413_v19 = vsel %vm5721_vm5, %v5660_v27, %v2409_v9  ;;  %vm2421_vm9 = vweird.f32 %v5703_v4  ;;  %v2134_v25 = vsub.f32 %v5199_v3, %v5626_v54 }
 0x3bf   :  { %v5709_v46 = vmax.f32 %v1754_v52, 0.0  ;;  %v2072_v32 = vsub.f32 %v2008_v59, %v2040_v15  ;;  %v2517_v38 = vmul.f32 %v2413_v19, %v2133_v16  ;;  %vm5785_vm13 = vmor %vm2420_vm12, %vm2421_vm9 }
 0x3c0   :  { %v2416_v14 = vmul.f32 %v5703_v4, %v2415_v20 }
 0x3c1   :  { %1850 = vadd.xlane.f32.xlu1 %v5709_v46  ;;  %v1884_v8 = vmul.f32 %v5709_v46, %v5709_v46  ;;  %v2104_v41 = vmax.f32 %v2072_v32, 0.0  ;;  %v1845_v63 = vpop.xlane.xlu0 %1844  ;;  %v2554_v52 = vmul.f32 %v5555_v23, %v2517_v38 }
 0x3c2   :  { %v5726_v40 = vmul.f32 0.0078125, %v1845_v63  ;;  %v2417_v22 = vmul.f32 0.5, %v2416_v14 }
 0x3c3   :  { %v5728_v48 = vpop.eup %3425  ;;  %1946 = vadd.xlane.f32.xlu0 %v1884_v8  ;;  %v2796_v11 = vpop.f32.mrf.mxu3  ;;  %v5747_v0 = vadd.f32 1e-05, %v2104_v41  ;;  %v2591_v8 = vadd.f32 %v5569_v53, %v2554_v52 }
 0x3c4   :  { %v2425_v62 = vmul.f32 %v5728_v48, %v5697_v50  ;;  %v1755_v26 = vpop.f32.mrf.mxu2  ;;  %v2797_v28 = vadd.f32 %v5609_v55, %v2796_v11  ;;  %v1941_v51 = vpop.xlane.xlu2 %1940  ;;  %v2041_v42 = vmul.f32 %v5726_v40, %v5726_v40  ;;  %v2418_v32 = vsub.f32 1.5, %v2417_v22  ;;  %v6175_v22 = vld [vmem:[#allocation26_spill] sm:$0xff] }
 0x3c5   :  { %v1756_v27 = vadd.f32 %v5683_v7, %v1755_v26  ;;  %v2009_v47 = vmul.f32 0.0078125, %v1941_v51  ;;  %3427 = vrsqrt.f32 %v5747_v0  ;;  %v2516_v7 = vmul.f32 %v2403_v10, %v2132_v36 }
 0x3c6   :  { %v2426_v58 = vmul.f32 %v5728_v48, %v2425_v62  ;;  %v3205_v21 = vpack.c.bf16 %v2797_v28, %v2795_v49  ;;  %vm2431_vm8 = vweird.f32 %v5728_v48  ;;  %v2419_v36 = vmul.f32 %v5703_v4, %v2418_v32  ;;  %v6174_v49 = vld [vmem:[#allocation23_spill] sm:$0xff] }
 0x3c7   :  { %v5757_v17 = vmax.f32 %v1756_v27, 0.0  ;;  %v2073_v45 = vsub.f32 %v2009_v47, %v2041_v42  ;;  %v2553_v9 = vmul.f32 %v5555_v23, %v2516_v7  ;;  %vm5776_vm11 = vmor %vm2430_vm10, %vm2431_vm8  ;;  %v2655_v16 = vadd.f32 %v2591_v8, %v6171_v43 }
 0x3c8   :  { %v2427_v15 = vmul.f32 0.5, %v2426_v58  ;;  %3277 = vst [vmem:[#allocation14 + $0x8] sm:$0xff] %v3205_v21   ;;  %2838 = vmatmul.bf16.gmra.mxu3 %v2706_v2  ;;  %v2135_v50 = vsub.f32 %v5215_v60, %v5658_v33  ;;  %vm2440_vm2 = vweird.f32 %v5747_v0 }
 0x3c9   :  { %1852 = vadd.xlane.f32.xlu2 %v5757_v17  ;;  %v1885_v57 = vmul.f32 %v5757_v17, %v5757_v17  ;;  %v2105_v5 = vmax.f32 %v2073_v45, 0.0  ;;  %v2590_v63 = vadd.f32 %v5569_v53, %v2553_v9  ;;  %v6176_v9 = vld [vmem:[#allocation25_spill] sm:$0xff] }
 0x3ca   :  { %v2428_v59 = vsub.f32 1.5, %v2427_v15 }
 0x3cb   :  { %1948 = vadd.xlane.f32.xlu1 %v1885_v57  ;;  %v2799_v6 = vpop.f32.mrf.mxu3  ;;  %v2169_v12 = vadd.f32 1e-05, %v2105_v5  ;;  %v5765_v20 = vpop.eup %3427  ;;  %v2654_v62 = vadd.f32 %v2590_v63, %v6174_v49 }
 0x3cc   :  { %v2429_v41 = vmul.f32 %v5728_v48, %v2428_v59  ;;  %v2435_v56 = vmul.f32 %v5765_v20, %v5747_v0  ;;  %v2800_v19 = vadd.f32 %v5609_v55, %v2799_v6  ;;  %vm2441_vm15 = vweird.f32 %v5765_v20 }
 0x3cd   :  { %3429 = vrsqrt.f32 %v2169_v12  ;;  %v2707_v27 = vpack.c.bf16 %v2655_v16, %v2654_v62  ;;  %vm2450_vm0 = vweird.f32 %v2169_v12  ;;  %vm2442_vm3 = vmor %vm2440_vm2, %vm2441_vm15  ;;  %v2137_v59 = vsub.f32 %v5283_v61, %v5726_v40  ;;  %v6177_v16 = vld [vmem:[#allocation28_spill] sm:$0xff] }
 0x3ce   :  { %v2433_v11 = vsel %vm5776_vm11, %v5728_v48, %v2429_v41  ;;  %v2423_v48 = vsel %vm5785_vm13, %v5703_v4, %v2419_v36  ;;  %v2436_v28 = vmul.f32 %v5765_v20, %v2435_v56 }
 0x3cf   :  { %v2519_v60 = vmul.f32 %v2433_v11, %v2135_v50  ;;  %v2518_v42 = vmul.f32 %v2423_v48, %v2134_v25 }
 0x3d0   :  { %v2437_v10 = vmul.f32 0.5, %v2436_v28 }
 0x3d1   :  { %v2556_v21 = vmul.f32 %v5555_v23, %v2519_v60  ;;  %v2555_v54 = vmul.f32 %v5555_v23, %v2518_v42 }
 0x3d2   :  { %v2438_v38 = vsub.f32 1.5, %v2437_v10 }
 0x3d3   :  { %v2801_v18 = vpop.f32.mrf.mxu3  ;;  %v3430_v26 = vpop.eup %3429  ;;  %v2593_v4 = vadd.f32 %v5569_v53, %v2556_v21  ;;  %v2592_v15 = vadd.f32 %v5569_v53, %v2555_v54 }
 0x3d4   :  { %v2802_v24 = vadd.f32 %v5609_v55, %v2801_v18  ;;  %v2445_v51 = vmul.f32 %v3430_v26, %v2169_v12  ;;  %vm2451_vm14 = vweird.f32 %v3430_v26  ;;  %v2439_v7 = vmul.f32 %v5765_v20, %v2438_v38  ;;  %v6178_v18 = vld [vmem:[#allocation27_spill] sm:$0xff] }
 0x3d5   :  { %vm2452_vm1 = vmor %vm2450_vm0, %vm2451_vm14  ;;  %v2657_v57 = vadd.f32 %v2593_v4, %v6175_v22  ;;  %v2656_v32 = vadd.f32 %v2592_v15, %v6176_v9  ;;  %v2136_v12 = vsub.f32 %v5262_v31, %v5693_v30 }
 0x3d6   :  { %v3210_v14 = vpack.c.bf16 %v2802_v24, %v2800_v19  ;;  %v2446_v33 = vmul.f32 %v3430_v26, %v2445_v51  ;;  %v2443_v8 = vsel %vm2442_vm3, %v5765_v20, %v2439_v7 }
 0x3d7   :  { %v2708_v63 = vpack.c.bf16 %v2657_v57, %v2656_v32  ;;  %v2520_v36 = vmul.f32 %v2443_v8, %v2136_v12 }
 0x3d8   :  { %3278 = vst [vmem:[#allocation14 + $0x10] sm:$0xff] %v3210_v14   ;;  %2843 = vmatmul.bf16.gmra.mxu3 %v2707_v27  ;;  %v2447_v58 = vmul.f32 0.5, %v2446_v33 }
 0x3d9   :  { %v2557_v40 = vmul.f32 %v5555_v23, %v2520_v36 }
 0x3da   :  { %v2448_v3 = vsub.f32 1.5, %v2447_v58 }
 0x3db   :  { %v2804_v2 = vpop.f32.mrf.mxu3  ;;  %v2594_v43 = vadd.f32 %v5569_v53, %v2557_v40 }
 0x3dc   :  { %v2449_v47 = vmul.f32 %v3430_v26, %v2448_v3  ;;  %v2805_v5 = vadd.f32 %v5609_v55, %v2804_v2 }
 0x3dd   :  { %v2658_v1 = vadd.f32 %v2594_v43, %v6178_v18 }
 0x3de   :  { %v2453_v45 = vsel %vm2452_vm1, %v3430_v26, %v2449_v47 }
 0x3df   :  { %v2521_v0 = vmul.f32 %v2453_v45, %v2137_v59 }
 0x3e1   :  { %v2558_v56 = vmul.f32 %v5555_v23, %v2521_v0 }
 0x3e3   :  { %v2806_v52 = vpop.f32.mrf.mxu3  ;;  %v2595_v29 = vadd.f32 %v5569_v53, %v2558_v56 }
 0x3e4   :  { %v2807_v6 = vadd.f32 %v5609_v55, %v2806_v52 }
 0x3e5   :  { %v2659_v20 = vadd.f32 %v2595_v29, %v6177_v16 }
 0x3e6   :  { %v3215_v41 = vpack.c.bf16 %v2807_v6, %v2805_v5 }
 0x3e7   :  { %v2709_v19 = vpack.c.bf16 %v2659_v20, %v2658_v1 }
 0x3e8   :  { %3279 = vst [vmem:[#allocation14 + $0x18] sm:$0xff] %v3215_v41   ;;  %2848 = vmatmul.bf16.gmra.mxu3 %v2708_v63 }
 0x3eb   :  { %v2809_v61 = vpop.f32.mrf.mxu3 }
 0x3ec   :  { %v2810_v31 = vadd.f32 %v5609_v55, %v2809_v61 }
 0x3f3   :  { %v2811_v11 = vpop.f32.mrf.mxu3 }
 0x3f4   :  { %v2812_v30 = vadd.f32 %v5609_v55, %v2811_v11 }
 0x3f6   :  { %v3220_v50 = vpack.c.bf16 %v2812_v30, %v2810_v31 }
 0x3f8   :  { %3280 = vst [vmem:[#allocation14 + $0x20] sm:$0xff] %v3220_v50   ;;  %2853 = vmatmul.bf16.gmra.mxu3 %v2709_v19 }
 0x3fb   :  { %v2814_v24 = vpop.f32.mrf.mxu3 }
 0x3fc   :  { %v2815_v62 = vadd.f32 %v5609_v55, %v2814_v24 }
 0x403   :  { %v2816_v49 = vpop.f32.mrf.mxu3 }
 0x404   :  { %v2817_v26 = vadd.f32 %v5609_v55, %v2816_v49 }
 0x406   :  { %v3225_v25 = vpack.c.bf16 %v2817_v26, %v2815_v62 }
 0x408   :  { %3281 = vst [vmem:[#allocation14 + $0x28] sm:$0xff] %v3225_v25  }
 0x40b   :  { %v2819_v48 = vpop.f32.mrf.mxu3 }
 0x40c   :  { %v2820_v51 = vadd.f32 %v5609_v55, %v2819_v48 }
 0x413   :  { %v2821_v28 = vpop.f32.mrf.mxu3 }
 0x414   :  { %v2822_v14 = vadd.f32 %v5609_v55, %v2821_v28 }
 0x416   :  { %v3230_v27 = vpack.c.bf16 %v2822_v14, %v2820_v51 }
 0x418   :  { %3282 = vst [vmem:[#allocation14 + $0x30] sm:$0xff] %v3230_v27  }
 0x41b   :  { %v2824_v60 = vpop.f32.mrf.mxu3 }
 0x41c   :  { %v2825_v42 = vadd.f32 %v5609_v55, %v2824_v60 }
 0x423   :  { %v2826_v33 = vpop.f32.mrf.mxu3 }
 0x424   :  { %v1847_v10 = vpop.xlane.xlu0 %1846  ;;  %v2827_v58 = vadd.f32 %v5609_v55, %v2826_v33 }
 0x425   :  { %v1978_v21 = vmul.f32 0.0078125, %v1847_v10 }
 0x426   :  { %v3235_v2 = vpack.c.bf16 %v2827_v58, %v2825_v42  ;;  %v1943_v3 = vpop.xlane.xlu2 %1942 }
 0x427   :  { %v2042_v54 = vmul.f32 %v1978_v21, %v1978_v21  ;;  %v2010_v38 = vmul.f32 0.0078125, %v1943_v3  ;;  %v2138_v51 = vsub.f32 %v5635_v35, %v1978_v21 }
 0x428   :  { %3283 = vst [vmem:[#allocation14 + $0x38] sm:$0xff] %v3235_v2  }
 0x429   :  { %v2074_v4 = vsub.f32 %v2010_v38, %v2042_v54 }
 0x42b   :  { %v2106_v47 = vmax.f32 %v2074_v4, 0.0  ;;  %v2829_v15 = vpop.f32.mrf.mxu3 }
 0x42c   :  { %v1849_v7 = vpop.xlane.xlu1 %1848  ;;  %v2830_v9 = vadd.f32 %v5609_v55, %v2829_v15 }
 0x42d   :  { %v2170_v22 = vadd.f32 1e-05, %v2106_v47  ;;  %v5830_v57 = vmul.f32 0.0078125, %v1849_v7 }
 0x42e   :  { %v1945_v45 = vpop.xlane.xlu0 %1944 }
 0x42f   :  { %3431 = vrsqrt.f32 %v2170_v22  ;;  %v2043_v52 = vmul.f32 %v5830_v57, %v5830_v57  ;;  %v2011_v59 = vmul.f32 0.0078125, %v1945_v45  ;;  %vm2460_vm5 = vweird.f32 %v2170_v22 }
 0x430   :  { %v2139_v35 = vsub.f32 %v5687_v34, %v5830_v57 }
 0x431   :  { %v2075_v5 = vsub.f32 %v2011_v59, %v2043_v52 }
 0x433   :  { %v2831_v6 = vpop.f32.mrf.mxu3  ;;  %v2107_v32 = vmax.f32 %v2075_v5, 0.0 }
 0x434   :  { %v2832_v8 = vadd.f32 %v5609_v55, %v2831_v6  ;;  %v1851_v12 = vpop.xlane.xlu1 %1850 }
 0x435   :  { %v3432_v41 = vpop.eup %3431  ;;  %v5836_v63 = vmul.f32 0.0078125, %v1851_v12  ;;  %v2171_v36 = vadd.f32 1e-05, %v2107_v32 }
 0x436   :  { %v2455_v0 = vmul.f32 %v3432_v41, %v2170_v22  ;;  %v3240_v56 = vpack.c.bf16 %v2832_v8, %v2830_v9  ;;  %v1947_v61 = vpop.xlane.xlu0 %1946  ;;  %vm2461_vm4 = vweird.f32 %v3432_v41 }
 0x437   :  { %v2044_v40 = vmul.f32 %v5836_v63, %v5836_v63  ;;  %v2012_v29 = vmul.f32 0.0078125, %v1947_v61  ;;  %3433 = vrsqrt.f32 %v2171_v36  ;;  %vm2462_vm6 = vmor %vm2460_vm5, %vm2461_vm4  ;;  %vm2470_vm8 = vweird.f32 %v2171_v36 }
 0x438   :  { %v2456_v43 = vmul.f32 %v3432_v41, %v2455_v0  ;;  %3284 = vst [vmem:[#allocation14 + $0x40] sm:$0xff] %v3240_v56  }
 0x439   :  { %v2076_v16 = vsub.f32 %v2012_v29, %v2044_v40 }
 0x43a   :  { %v2457_v20 = vmul.f32 0.5, %v2456_v43 }
 0x43b   :  { %v2108_v11 = vmax.f32 %v2076_v16, 0.0  ;;  %v2834_v31 = vpop.f32.mrf.mxu3 }
 0x43c   :  { %v2458_v30 = vsub.f32 1.5, %v2457_v20  ;;  %v1853_v18 = vpop.xlane.xlu2 %1852  ;;  %v2835_v33 = vadd.f32 %v5609_v55, %v2834_v31 }
 0x43d   :  { %v2172_v1 = vadd.f32 1e-05, %v2108_v11  ;;  %v5840_v50 = vmul.f32 0.0078125, %v1853_v18  ;;  %v3434_v19 = vpop.eup %3433 }
 0x43e   :  { %v2459_v24 = vmul.f32 %v3432_v41, %v2458_v30  ;;  %v1949_v49 = vpop.xlane.xlu1 %1948  ;;  %v2465_v62 = vmul.f32 %v3434_v19, %v2171_v36  ;;  %vm2471_vm7 = vweird.f32 %v3434_v19  ;;  %v2140_v36 = vsub.f32 %v5709_v46, %v5836_v63 }
 0x43f   :  { %3435 = vrsqrt.f32 %v2172_v1  ;;  %v2045_v26 = vmul.f32 %v5840_v50, %v5840_v50  ;;  %v2013_v25 = vmul.f32 0.0078125, %v1949_v49  ;;  %vm2472_vm9 = vmor %vm2470_vm8, %vm2471_vm7  ;;  %vm2480_vm11 = vweird.f32 %v2172_v1 }
 0x440   :  { %v2463_v48 = vsel %vm2462_vm6, %v3432_v41, %v2459_v24  ;;  %v2466_v28 = vmul.f32 %v3434_v19, %v2465_v62 }
 0x441   :  { %v2077_v14 = vsub.f32 %v2013_v25, %v2045_v26  ;;  %v2522_v58 = vmul.f32 %v2463_v48, %v2138_v51 }
 0x442   :  { %v2467_v27 = vmul.f32 0.5, %v2466_v28 }
 0x443   :  { %v2836_v60 = vpop.f32.mrf.mxu3  ;;  %v2109_v42 = vmax.f32 %v2077_v14, 0.0  ;;  %v2559_v15 = vmul.f32 %v5555_v23, %v2522_v58 }
 0x444   :  { %v2837_v10 = vadd.f32 %v5609_v55, %v2836_v60  ;;  %v2468_v3 = vsub.f32 1.5, %v2467_v27 }
 0x445   :  { %v3436_v2 = vpop.eup %3435  ;;  %v2173_v38 = vadd.f32 1e-05, %v2109_v42  ;;  %v2596_v6 = vadd.f32 %v5569_v53, %v2559_v15 }
 0x446   :  { %v2475_v54 = vmul.f32 %v3436_v2, %v2172_v1  ;;  %v3245_v4 = vpack.c.bf16 %v2837_v10, %v2835_v33  ;;  %v2469_v47 = vmul.f32 %v3434_v19, %v2468_v3  ;;  %vm2481_vm10 = vweird.f32 %v3436_v2 }
 0x447   :  { %3437 = vrsqrt.f32 %v2173_v38  ;;  %vm2482_vm12 = vmor %vm2480_vm11, %vm2481_vm10  ;;  %v2660_v8 = vadd.f32 %v2596_v6, %v4972_v13  ;;  %vm2490_vm14 = vweird.f32 %v2173_v38 }
 0x448   :  { %v2476_v21 = vmul.f32 %v3436_v2, %v2475_v54  ;;  %3285 = vst [vmem:[#allocation14 + $0x48] sm:$0xff] %v3245_v4   ;;  %v2473_v7 = vsel %vm2472_vm9, %v3434_v19, %v2469_v47 }
 0x449   :  { %v2523_v45 = vmul.f32 %v2473_v7, %v2139_v35 }
 0x44a   :  { %v2477_v22 = vmul.f32 0.5, %v2476_v21 }
 0x44b   :  { %v2839_v52 = vpop.f32.mrf.mxu3  ;;  %v2560_v5 = vmul.f32 %v5555_v23, %v2523_v45 }
 0x44c   :  { %v2478_v59 = vsub.f32 1.5, %v2477_v22  ;;  %v2840_v43 = vadd.f32 %v5609_v55, %v2839_v52 }
 0x44d   :  { %v3438_v9 = vpop.eup %3437  ;;  %v2597_v34 = vadd.f32 %v5569_v53, %v2560_v5 }
 0x44e   :  { %v2479_v32 = vmul.f32 %v3436_v2, %v2478_v59  ;;  %v2485_v57 = vmul.f32 %v3438_v9, %v2173_v38  ;;  %vm2491_vm13 = vweird.f32 %v3438_v9 }
 0x44f   :  { %v2661_v12 = vadd.f32 %v2597_v34, %v5071_v39  ;;  %v2141_v39 = vsub.f32 %v5757_v17, %v5840_v50  ;;  %vm2492_vm15 = vmor %vm2490_vm14, %vm2491_vm13 }
 0x450   :  { %v2483_v41 = vsel %vm2482_vm12, %v3436_v2, %v2479_v32  ;;  %v2486_v0 = vmul.f32 %v3438_v9, %v2485_v57 }
 0x451   :  { %v2710_v56 = vpack.c.bf16 %v2661_v12, %v2660_v8  ;;  %v2524_v29 = vmul.f32 %v2483_v41, %v2140_v36 }
 0x452   :  { %v2487_v61 = vmul.f32 0.5, %v2486_v0 }
 0x453   :  { %v2841_v40 = vpop.f32.mrf.mxu3  ;;  %2858 = vmatmul.bf16.gmra.mxu3 %v2710_v56  ;;  %v2561_v46 = vmul.f32 %v5555_v23, %v2524_v29 }
 0x454   :  { %v2842_v16 = vadd.f32 %v5609_v55, %v2841_v40  ;;  %v2488_v20 = vsub.f32 1.5, %v2487_v61 }
 0x455   :  { %v2598_v1 = vadd.f32 %v5569_v53, %v2561_v46 }
 0x456   :  { %v3250_v11 = vpack.c.bf16 %v2842_v16, %v2840_v43  ;;  %v2489_v13 = vmul.f32 %v3438_v9, %v2488_v20 }
 0x457   :  { %v2662_v24 = vadd.f32 %v2598_v1, %v5155_v44 }
 0x458   :  { %3286 = vst [vmem:[#allocation14 + $0x50] sm:$0xff] %v3250_v11   ;;  %v2493_v63 = vsel %vm2492_vm15, %v3438_v9, %v2489_v13 }
 0x459   :  { %v2525_v31 = vmul.f32 %v2493_v63, %v2141_v39 }
 0x45b   :  { %v2844_v30 = vpop.f32.mrf.mxu3  ;;  %v2562_v18 = vmul.f32 %v5555_v23, %v2525_v31 }
 0x45c   :  { %v2845_v17 = vadd.f32 %v5609_v55, %v2844_v30 }
 0x45d   :  { %v2599_v19 = vadd.f32 %v5569_v53, %v2562_v18 }
 0x45f   :  { %v2663_v49 = vadd.f32 %v2599_v19, %v5159_v37 }
 0x461   :  { %v2711_v62 = vpack.c.bf16 %v2663_v49, %v2662_v24 }
 0x463   :  { %v2846_v26 = vpop.f32.mrf.mxu3  ;;  %2863 = vmatmul.bf16.gmra.mxu3 %v2711_v62 }
 0x464   :  { %v2847_v50 = vadd.f32 %v5609_v55, %v2846_v26 }
 0x466   :  { %v3255_v25 = vpack.c.bf16 %v2847_v50, %v2845_v17 }
 0x468   :  { %3287 = vst [vmem:[#allocation14 + $0x58] sm:$0xff] %v3255_v25  }
 0x46b   :  { %v2849_v48 = vpop.f32.mrf.mxu3 }
 0x46c   :  { %v2850_v23 = vadd.f32 %v5609_v55, %v2849_v48 }
 0x473   :  { %v2851_v28 = vpop.f32.mrf.mxu3 }
 0x474   :  { %v2852_v51 = vadd.f32 %v5609_v55, %v2851_v28 }
 0x476   :  { %v3260_v53 = vpack.c.bf16 %v2852_v51, %v2850_v23 }
 0x478   :  { %3288 = vst [vmem:[#allocation14 + $0x60] sm:$0xff] %v3260_v53  }
 0x47b   :  { %v2854_v44 = vpop.f32.mrf.mxu3 }
 0x47c   :  { %v2855_v37 = vadd.f32 %v5609_v55, %v2854_v44 }
 0x483   :  { %v2856_v14 = vpop.f32.mrf.mxu3 }
 0x484   :  { %v2857_v27 = vadd.f32 %v5609_v55, %v2856_v14 }
 0x486   :  { %v3265_v60 = vpack.c.bf16 %v2857_v27, %v2855_v37 }
 0x488   :  { %3289 = vst [vmem:[#allocation14 + $0x68] sm:$0xff] %v3265_v60  }
 0x4d6   :  { %v2859_v33 = vpop.f32.mrf.mxu3 }
 0x4d7   :  { %v2860_v10 = vadd.f32 %v5609_v55, %v2859_v33 }
 0x4de   :  { %v2861_v42 = vpop.f32.mrf.mxu3 }
 0x4df   :  { %v2862_v58 = vadd.f32 %v5609_v55, %v2861_v42 }
 0x4e1   :  { %v3270_v2 = vpack.c.bf16 %v2862_v58, %v2860_v10 }
 0x4e3   :  { %3290 = vst [vmem:[#allocation14 + $0x70] sm:$0xff] %v3270_v2  }
 0x4e6   :  { %v2864_v3 = vpop.f32.mrf.mxu3 }
 0x4e7   :  { %v2865_v38 = vadd.f32 %v5609_v55, %v2864_v3 }
 0x4ee   :  { %v2866_v54 = vpop.f32.mrf.mxu3 }
 0x4ef   :  { %v2867_v4 = vadd.f32 %v5609_v55, %v2866_v54 }
 0x4f1   :  { %v3275_v47 = vpack.c.bf16 %v2867_v4, %v2865_v38 }
 0x4f3   :  { %3291 = vst [vmem:[#allocation14 + $0x78] sm:$0xff] %v3275_v47  }
 0x4f4   :  { %2945 = dma.vmem_to_hbm [thread:$0]  %s2938_s13, 2048, %s2940_s16, [#allocation5], %s3627_s17, %s3627_s17, %s3628_s18  }
 0x4f5   :  { %3624 = dma.done.wait [#allocation5], 2048  }
 0x4f6   :  { %3625 = vsyncadd [#allocation5], 4294965248 }
 0x4f7   :  { %2950 = vsyncpa [#allocation4], 1 }
 0x4f8   :  { %2951 = vsyncpa [#allocation7], 1 }
 0x4f9   :  { %2952 = vsyncpa [#allocation10], 1 }
 0x4fa   :  { %2953 = vsyncpa [#allocation13], 1 }
 0x4fb   :  { %2954 = vsyncpa [#allocation5], 1 }

</bundles_post_ra>
